<compile_context>
chip_gen: v7x
topology: tpu7x:2x2x1
jax: 0.10.0
libtpu: 0.0.40
codegen_flags: <defaults>
</compile_context>

<pallas_src>
import math

import jax
import jax.numpy as jnp
from jax.experimental import pallas as pl
from jax.experimental.pallas import tpu as pltpu

PAD = 0  # padding_idx of the node embedding


# ---------------------------------------------------------------------------
# In-kernel helpers
# ---------------------------------------------------------------------------
def _layernorm(x, gamma, beta, eps=1e-5):
    mu = jnp.mean(x, axis=-1, keepdims=True)
    xc = x - mu
    var = jnp.mean(xc * xc, axis=-1, keepdims=True)
    return xc * jax.lax.rsqrt(var + eps) * gamma + beta


# ---------------------------------------------------------------------------
# Single fused kernel: 3 branches (unrolled) + attention fusion + final LN
# ---------------------------------------------------------------------------
def encoder_kernel(e_bf_ref, e_ref, p_ref, wa_ref, wb_ref, v2_ref, v1_ref,
                   pf_ref, o_ref):
    e_bf = e_bf_ref[...]                         # (N, H)  bf16 — MXU operand
    e = e_ref[...]                               # (N, H)  f32  — fusion Query

    xs = []
    for br in range(3):                          # unrolled: no grid-step overhead
        p = p_ref[br]                            # (N, N)  bf16 propagation matrix
        wa = wa_ref[br]                          # (H, 2H) bf16 conv1 weight
        wb = wb_ref[br]                          # (2H, H) bf16 conv2 weight
        v2 = v2_ref[br]                          # (3, 2H) f32: conv1 bias / ln1 gamma / ln1 beta
        v1 = v1_ref[br]                          # (3, H)  f32: conv2 bias / ln2 gamma / ln2 beta

        # conv1 reassociated: (P @ X) @ W + b  (contract P against the narrow X first)
        pe = jnp.dot(p, e_bf, preferred_element_type=jnp.float32)
        h = jnp.dot(pe.astype(jnp.bfloat16), wa, preferred_element_type=jnp.float32)
        h = h + v2[0:1, :]
        h = jnp.maximum(h, 0.0)                  # ReLU (dropout = identity in eval)
        h = _layernorm(h, v2[1:2, :], v2[2:3, :])          # LayerNorm(2H)

        # conv2: P @ (H @ W) + b  (2H -> H shrink happens before the N x N contraction)
        hw = jnp.dot(h.astype(jnp.bfloat16), wb, preferred_element_type=jnp.float32)
        h2 = jnp.dot(p, hw.astype(jnp.bfloat16), preferred_element_type=jnp.float32)
        h2 = h2 + v1[0:1, :]
        h2 = jnp.maximum(h2, 0.0)
        h2 = _layernorm(h2, v1[1:2, :], v1[2:3, :])        # LayerNorm(H)
        xs.append(h2)

    # Per-node 3-way attention fusion: Q = embedding row, K = V = branch outputs.
    x1, x2, x3 = xs
    pf = pf_ref[...]                             # (2, H): final LayerNorm gamma / beta
    scale = 1.0 / math.sqrt(e.shape[-1])
    s1 = jnp.sum(e * x1, axis=-1, keepdims=True) * scale   # (N, 1)
    s2 = jnp.sum(e * x2, axis=-1, keepdims=True) * scale
    s3 = jnp.sum(e * x3, axis=-1, keepdims=True) * scale
    m = jnp.maximum(jnp.maximum(s1, s2), s3)
    e1 = jnp.exp(s1 - m)
    e2 = jnp.exp(s2 - m)
    e3 = jnp.exp(s3 - m)
    # approx reciprocal goes to the EUP slot; ~1e-3 relative on the softmax sum
    inv_denom = pl.reciprocal(e1 + e2 + e3, approx=True)
    fused = (e1 * x1 + e2 * x2 + e3 * x3) * inv_denom       # softmax-weighted V

    # dropout(norm(fused)) -> dropout is identity in eval
    o_ref[...] = _layernorm(fused, pf[0:1, :], pf[1:2, :])


# ---------------------------------------------------------------------------
# Wrapper
# ---------------------------------------------------------------------------
@jax.jit
def static_graph_encoder(embedding_f32, embedding_bf16, p_stack_bf16, params):
    wa, wb, v2, v1, pf = params
    num_nodes, hidden = embedding_f32.shape

    # Advisory cost estimate (2 N^2 H matmuls + 2 N*H*2H matmuls per branch).
    flops = 3 * (4 * num_nodes * num_nodes * hidden
                 + 8 * num_nodes * hidden * hidden)
    bytes_accessed = (p_stack_bf16.size * 2
                      + embedding_bf16.size * 2 + embedding_f32.size * 4
                      + wa.size * 2 + wb.size * 2
                      + (v2.size + v1.size + pf.size) * 4
                      + num_nodes * hidden * 4)
    transcendentals = 10 * num_nodes            # exp (softmax) + rsqrt (LayerNorms)

    vmem_spec = pl.BlockSpec(memory_space=pltpu.MemorySpace.VMEM)
    return pl.pallas_call(
        encoder_kernel,
        out_shape=jax.ShapeDtypeStruct((num_nodes, hidden), jnp.float32),
        in_specs=[vmem_spec] * 8,
        out_specs=vmem_spec,
        cost_estimate=pl.CostEstimate(flops=flops,
                                      transcendentals=transcendentals,
                                      bytes_accessed=bytes_accessed),
    )(embedding_bf16, embedding_f32, p_stack_bf16, wa, wb, v2, v1, pf)


# ---------------------------------------------------------------------------
# Plain-JAX glue: edge_index -> dense propagation matrices, parameter init
# ---------------------------------------------------------------------------
def gcn_norm_dense(edge_index, num_nodes):
    """D^-1/2 (A + I) D^-1/2 with A[dst, src] accumulated per edge (GCNConv)."""
    src, dst = edge_index[0], edge_index[1]
    a = jnp.zeros((num_nodes, num_nodes), jnp.float32)
    a = a.at[dst, src].add(1.0)                        # message src -> dst
    a = a + jnp.eye(num_nodes, dtype=jnp.float32)      # add self loops
    deg = jnp.sum(a, axis=1)
    dinv = jnp.where(deg > 0, jax.lax.rsqrt(deg), 0.0)
    return dinv[:, None] * a * dinv[None, :]


def hypergraph_norm_dense(edge_index, num_nodes, num_hyperedges):
    """D^-1 H W B^-1 H^T with W = I (HypergraphConv, use_attention=False)."""
    node, edge = edge_index[0], edge_index[1]
    h = jnp.zeros((num_nodes, num_hyperedges), jnp.float32)
    h = h.at[node, edge].add(1.0)
    d = jnp.sum(h, axis=1)                              # node degree
    b = jnp.sum(h, axis=0)                              # hyperedge degree
    dinv = jnp.where(d > 0, 1.0 / d, 0.0)
    binv = jnp.where(b > 0, 1.0 / b, 0.0)
    return (dinv[:, None] * h) @ (binv[:, None] * h.T)


def init_params(key, hidden_dim):
    """Synthetic packed parameters: stacked per-branch weights + bias/norm slabs."""
    def glorot(k, shape):
        fan_in, fan_out = shape[-2], shape[-1]
        lim = math.sqrt(6.0 / (fan_in + fan_out))
        return jax.random.uniform(k, shape, jnp.float32, -lim, lim)

    h, h2 = hidden_dim, hidden_dim * 2
    ka, kb, kv2, kv1, kpf = jax.random.split(key, 5)

    wa = glorot(ka, (3, h, h2))                     # conv1 weight per branch
    wb = glorot(kb, (3, h2, h))                     # conv2 weight per branch

    def vec_slab(k, width):                         # (3 branches, 3 kinds, width)
        kbias, kg, kbe = jax.random.split(k, 3)
        bias = 0.1 * jax.random.normal(kbias, (3, width), jnp.float32)
        gamma = 1.0 + 0.1 * jax.random.normal(kg, (3, width), jnp.float32)
        beta = 0.1 * jax.random.normal(kbe, (3, width), jnp.float32)
        return jnp.stack([bias, gamma, beta], axis=1)

    v2 = vec_slab(kv2, h2)                          # conv1-stage bias / ln1 gamma / ln1 beta
    v1 = vec_slab(kv1, h)                           # conv2-stage bias / ln2 gamma / ln2 beta

    kg, kbe = jax.random.split(kpf)
    pf = jnp.stack([1.0 + 0.1 * jax.random.normal(kg, (h,), jnp.float32),
                    0.1 * jax.random.normal(kbe, (h,), jnp.float32)])   # (2, h)
    return wa, wb, v2, v1, pf


# ---------------------------------------------------------------------------
# Pure-JAX f32 reference of the same forward (for a tolerance check)
# ---------------------------------------------------------------------------
def reference_forward(e_q, e_gnn, p_stack, wa, wb, v2, v1, pf):
    def ln(x, g, b, eps=1e-5):
        mu = jnp.mean(x, axis=-1, keepdims=True)
        var = jnp.mean((x - mu) ** 2, axis=-1, keepdims=True)
        return (x - mu) / jnp.sqrt(var + eps) * g + b

    xs = []
    for br in range(3):
        p = p_stack[br]
        h = p @ (e_gnn @ wa[br]) + v2[br, 0]
        h = jnp.maximum(h, 0.0)
        h = ln(h, v2[br, 1], v2[br, 2])
        g = p @ (h @ wb[br]) + v1[br, 0]
        g = jnp.maximum(g, 0.0)
        g = ln(g, v1[br, 1], v1[br, 2])
        xs.append(g)

    hdim = e_q.shape[-1]
    scores = jnp.stack([jnp.sum(e_q * x, axis=-1) for x in xs], axis=-1) / math.sqrt(hdim)
    w = jax.nn.softmax(scores, axis=-1)
    fused = sum(w[:, i:i + 1] * xs[i] for i in range(3))
    return ln(fused, pf[0], pf[1])


# ---------------------------------------------------------------------------
if __name__ == "__main__":
    key = jax.random.PRNGKey(0)
    num_nodes, hidden_dim = 128, 32
    num_hyperedges = 32

    k_emb, k_soc, k_dif, k_hyp, k_par = jax.random.split(key, 5)

    # nn.Embedding(num_nodes, hidden_dim, padding_idx=PAD).weight
    emb = jax.random.normal(k_emb, (num_nodes, hidden_dim), jnp.float32)
    emb = emb.at[PAD].set(0.0)

    # static_graphs = [social_graph, diffusion_graph, hypergraph] as edge_index
    soc_edges = jax.random.randint(k_soc, (2, 512), 0, num_nodes)
    dif_edges = jax.random.randint(k_dif, (2, 512), 0, num_nodes)
    hyp_nodes = jax.random.randint(jax.random.fold_in(k_hyp, 0), (256,), 0, num_nodes)
    hyp_hedges = jax.random.randint(jax.random.fold_in(k_hyp, 1), (256,), 0,
                                    num_hyperedges)
    hyp_edges = jnp.stack([hyp_nodes, hyp_hedges])

    a_soc = gcn_norm_dense(soc_edges, num_nodes)
    a_dif = gcn_norm_dense(dif_edges, num_nodes)
    p_hyp = hypergraph_norm_dense(hyp_edges, num_nodes, num_hyperedges)
    p_stack = jnp.stack([a_soc, a_dif, p_hyp])          # (3, N, N) f32

    wa, wb, v2, v1, pf = init_params(k_par, hidden_dim)

    # bf16 MXU operands host-side (halves HBM traffic for the big P matrices and
    # avoids per-branch in-kernel casts); LN/softmax params and the fusion Query
    # embedding stay f32.
    p_bf = p_stack.astype(jnp.bfloat16)
    wa_bf = wa.astype(jnp.bfloat16)
    wb_bf = wb.astype(jnp.bfloat16)
    emb_bf = emb.astype(jnp.bfloat16)

    out = static_graph_encoder(emb, emb_bf, p_bf, (wa_bf, wb_bf, v2, v1, pf))
    out = jax.block_until_ready(out)

    assert out.shape == (num_nodes, hidden_dim), out.shape
    assert bool(jnp.all(jnp.isfinite(out)))

    # Tolerance check vs an f32 reference using the same (bf16-rounded) operands.
    ref = reference_forward(emb, emb_bf.astype(jnp.float32),
                            p_bf.astype(jnp.float32),
                            wa_bf.astype(jnp.float32), wb_bf.astype(jnp.float32),
                            v2, v1, pf)
    rel_err = float(jnp.linalg.norm(out - ref) / jnp.linalg.norm(ref))
    assert rel_err < 0.1, f"relative error vs reference too large: {rel_err}"

    print("KERNEL_OK")
</pallas_src>

<mosaic_0001>
module attributes {stable_mosaic.version = 11 : i64} {
  func.func @encoder_kernel(%arg0: memref<128x32xbf16, #tpu.memory_space<vmem>>, %arg1: memref<128x32xf32, #tpu.memory_space<vmem>>, %arg2: memref<3x128x128xbf16, #tpu.memory_space<vmem>>, %arg3: memref<3x32x64xbf16, #tpu.memory_space<vmem>>, %arg4: memref<3x64x32xbf16, #tpu.memory_space<vmem>>, %arg5: memref<3x3x64xf32, #tpu.memory_space<vmem>>, %arg6: memref<3x3x32xf32, #tpu.memory_space<vmem>>, %arg7: memref<2x32xf32, #tpu.memory_space<vmem>>, %arg8: memref<128x32xf32, #tpu.memory_space<vmem>>) attributes {dimension_semantics = [], scalar_prefetch = 0 : i64, scratch_operands = 0 : i64, tpu.core_type = #tpu.core_type<tc>} {
    %c0 = arith.constant 0 : index
    %c0_0 = arith.constant 0 : index
    %0 = vector.load %arg0[%c0, %c0_0] : memref<128x32xbf16, #tpu.memory_space<vmem>>, vector<128x32xbf16>
    %c0_1 = arith.constant 0 : index
    %c0_2 = arith.constant 0 : index
    %1 = vector.load %arg1[%c0_1, %c0_2] : memref<128x32xf32, #tpu.memory_space<vmem>>, vector<128x32xf32>
    %c0_3 = arith.constant 0 : index
    %c0_4 = arith.constant 0 : index
    %c0_5 = arith.constant 0 : index
    %2 = vector.load %arg2[%c0_3, %c0_4, %c0_5] : memref<3x128x128xbf16, #tpu.memory_space<vmem>>, vector<1x128x128xbf16>
    %3 = vector.shape_cast %2 : vector<1x128x128xbf16> to vector<128x128xbf16>
    %c0_6 = arith.constant 0 : index
    %c0_7 = arith.constant 0 : index
    %c0_8 = arith.constant 0 : index
    %4 = vector.load %arg3[%c0_6, %c0_7, %c0_8] : memref<3x32x64xbf16, #tpu.memory_space<vmem>>, vector<1x32x64xbf16>
    %5 = vector.shape_cast %4 : vector<1x32x64xbf16> to vector<32x64xbf16>
    %c0_9 = arith.constant 0 : index
    %c0_10 = arith.constant 0 : index
    %c0_11 = arith.constant 0 : index
    %6 = vector.load %arg4[%c0_9, %c0_10, %c0_11] : memref<3x64x32xbf16, #tpu.memory_space<vmem>>, vector<1x64x32xbf16>
    %7 = vector.shape_cast %6 : vector<1x64x32xbf16> to vector<64x32xbf16>
    %c0_12 = arith.constant 0 : index
    %c0_13 = arith.constant 0 : index
    %c0_14 = arith.constant 0 : index
    %8 = vector.load %arg5[%c0_12, %c0_13, %c0_14] : memref<3x3x64xf32, #tpu.memory_space<vmem>>, vector<1x3x64xf32>
    %9 = vector.shape_cast %8 : vector<1x3x64xf32> to vector<3x64xf32>
    %c0_15 = arith.constant 0 : index
    %c0_16 = arith.constant 0 : index
    %c0_17 = arith.constant 0 : index
    %10 = vector.load %arg6[%c0_15, %c0_16, %c0_17] : memref<3x3x32xf32, #tpu.memory_space<vmem>>, vector<1x3x32xf32>
    %11 = vector.shape_cast %10 : vector<1x3x32xf32> to vector<3x32xf32>
    %cst = arith.constant dense<0.000000e+00> : vector<128x32xf32>
    %12 = tpu.matmul %3, %0, %cst {dimension_numbers = #tpu.dot_dimension_numbers<[1], [0], [0], [1], [0, 0, 1, 1], [], []>} : vector<128x128xbf16>, vector<128x32xbf16>, vector<128x32xf32> -> vector<128x32xf32>
    %13 = arith.truncf %12 : vector<128x32xf32> to vector<128x32xbf16>
    %cst_18 = arith.constant dense<0.000000e+00> : vector<128x64xf32>
    %14 = tpu.matmul %13, %5, %cst_18 {dimension_numbers = #tpu.dot_dimension_numbers<[1], [0], [0], [1], [0, 0, 1, 1], [], []>} : vector<128x32xbf16>, vector<32x64xbf16>, vector<128x64xf32> -> vector<128x64xf32>
    %15 = vector.extract_strided_slice %9 {offsets = [0, 0], sizes = [1, 64], strides = [1, 1]} : vector<3x64xf32> to vector<1x64xf32>
    %16 = vector.broadcast %15 : vector<1x64xf32> to vector<128x64xf32>
    %17 = arith.addf %14, %16 : vector<128x64xf32>
    %cst_19 = arith.constant 0.000000e+00 : f32
    %18 = vector.broadcast %cst_19 : f32 to vector<128x64xf32>
    %19 = arith.maximumf %17, %18 : vector<128x64xf32>
    %20 = vector.extract_strided_slice %9 {offsets = [1, 0], sizes = [1, 64], strides = [1, 1]} : vector<3x64xf32> to vector<1x64xf32>
    %21 = vector.extract_strided_slice %9 {offsets = [2, 0], sizes = [1, 64], strides = [1, 1]} : vector<3x64xf32> to vector<1x64xf32>
    %cst_20 = arith.constant dense<0.000000e+00> : vector<128xf32>
    %22 = vector.multi_reduction <add>, %19, %cst_20 [1] : vector<128x64xf32> to vector<128xf32>
    %23 = vector.shape_cast %22 : vector<128xf32> to vector<128x1xf32>
    %cst_21 = arith.constant 6.400000e+01 : f32
    %24 = vector.broadcast %cst_21 : f32 to vector<128x1xf32>
    %25 = arith.divf %23, %24 : vector<128x1xf32>
    %26 = vector.broadcast %25 : vector<128x1xf32> to vector<128x64xf32>
    %27 = arith.subf %19, %26 : vector<128x64xf32>
    %28 = arith.mulf %27, %27 : vector<128x64xf32>
    %cst_22 = arith.constant dense<0.000000e+00> : vector<128xf32>
    %29 = vector.multi_reduction <add>, %28, %cst_22 [1] : vector<128x64xf32> to vector<128xf32>
    %30 = vector.shape_cast %29 : vector<128xf32> to vector<128x1xf32>
    %cst_23 = arith.constant 6.400000e+01 : f32
    %31 = vector.broadcast %cst_23 : f32 to vector<128x1xf32>
    %32 = arith.divf %30, %31 : vector<128x1xf32>
    %cst_24 = arith.constant 9.99999974E-6 : f32
    %33 = vector.broadcast %cst_24 : f32 to vector<128x1xf32>
    %34 = arith.addf %32, %33 : vector<128x1xf32>
    %35 = math.rsqrt %34 : vector<128x1xf32>
    %36 = vector.broadcast %35 : vector<128x1xf32> to vector<128x64xf32>
    %37 = arith.mulf %27, %36 : vector<128x64xf32>
    %38 = vector.broadcast %20 : vector<1x64xf32> to vector<128x64xf32>
    %39 = arith.mulf %37, %38 : vector<128x64xf32>
    %40 = vector.broadcast %21 : vector<1x64xf32> to vector<128x64xf32>
    %41 = arith.addf %39, %40 : vector<128x64xf32>
    %42 = arith.truncf %41 : vector<128x64xf32> to vector<128x64xbf16>
    %cst_25 = arith.constant dense<0.000000e+00> : vector<128x32xf32>
    %43 = tpu.matmul %42, %7, %cst_25 {dimension_numbers = #tpu.dot_dimension_numbers<[1], [0], [0], [1], [0, 0, 1, 1], [], []>} : vector<128x64xbf16>, vector<64x32xbf16>, vector<128x32xf32> -> vector<128x32xf32>
    %44 = arith.truncf %43 : vector<128x32xf32> to vector<128x32xbf16>
    %cst_26 = arith.constant dense<0.000000e+00> : vector<128x32xf32>
    %45 = tpu.matmul %3, %44, %cst_26 {dimension_numbers = #tpu.dot_dimension_numbers<[1], [0], [0], [1], [0, 0, 1, 1], [], []>} : vector<128x128xbf16>, vector<128x32xbf16>, vector<128x32xf32> -> vector<128x32xf32>
    %46 = vector.extract_strided_slice %11 {offsets = [0, 0], sizes = [1, 32], strides = [1, 1]} : vector<3x32xf32> to vector<1x32xf32>
    %47 = vector.broadcast %46 : vector<1x32xf32> to vector<128x32xf32>
    %48 = arith.addf %45, %47 : vector<128x32xf32>
    %cst_27 = arith.constant 0.000000e+00 : f32
    %49 = vector.broadcast %cst_27 : f32 to vector<128x32xf32>
    %50 = arith.maximumf %48, %49 : vector<128x32xf32>
    %51 = vector.extract_strided_slice %11 {offsets = [1, 0], sizes = [1, 32], strides = [1, 1]} : vector<3x32xf32> to vector<1x32xf32>
    %52 = vector.extract_strided_slice %11 {offsets = [2, 0], sizes = [1, 32], strides = [1, 1]} : vector<3x32xf32> to vector<1x32xf32>
    %cst_28 = arith.constant dense<0.000000e+00> : vector<128xf32>
    %53 = vector.multi_reduction <add>, %50, %cst_28 [1] : vector<128x32xf32> to vector<128xf32>
    %54 = vector.shape_cast %53 : vector<128xf32> to vector<128x1xf32>
    %cst_29 = arith.constant 3.200000e+01 : f32
    %55 = vector.broadcast %cst_29 : f32 to vector<128x1xf32>
    %56 = arith.divf %54, %55 : vector<128x1xf32>
    %57 = vector.broadcast %56 : vector<128x1xf32> to vector<128x32xf32>
    %58 = arith.subf %50, %57 : vector<128x32xf32>
    %59 = arith.mulf %58, %58 : vector<128x32xf32>
    %cst_30 = arith.constant dense<0.000000e+00> : vector<128xf32>
    %60 = vector.multi_reduction <add>, %59, %cst_30 [1] : vector<128x32xf32> to vector<128xf32>
    %61 = vector.shape_cast %60 : vector<128xf32> to vector<128x1xf32>
    %cst_31 = arith.constant 3.200000e+01 : f32
    %62 = vector.broadcast %cst_31 : f32 to vector<128x1xf32>
    %63 = arith.divf %61, %62 : vector<128x1xf32>
    %cst_32 = arith.constant 9.99999974E-6 : f32
    %64 = vector.broadcast %cst_32 : f32 to vector<128x1xf32>
    %65 = arith.addf %63, %64 : vector<128x1xf32>
    %66 = math.rsqrt %65 : vector<128x1xf32>
    %67 = vector.broadcast %66 : vector<128x1xf32> to vector<128x32xf32>
    %68 = arith.mulf %58, %67 : vector<128x32xf32>
    %69 = vector.broadcast %51 : vector<1x32xf32> to vector<128x32xf32>
    %70 = arith.mulf %68, %69 : vector<128x32xf32>
    %71 = vector.broadcast %52 : vector<1x32xf32> to vector<128x32xf32>
    %72 = arith.addf %70, %71 : vector<128x32xf32>
    %c1 = arith.constant 1 : index
    %c0_33 = arith.constant 0 : index
    %c0_34 = arith.constant 0 : index
    %73 = vector.load %arg2[%c1, %c0_33, %c0_34] : memref<3x128x128xbf16, #tpu.memory_space<vmem>>, vector<1x128x128xbf16>
    %74 = vector.shape_cast %73 : vector<1x128x128xbf16> to vector<128x128xbf16>
    %c1_35 = arith.constant 1 : index
    %c0_36 = arith.constant 0 : index
    %c0_37 = arith.constant 0 : index
    %75 = vector.load %arg3[%c1_35, %c0_36, %c0_37] : memref<3x32x64xbf16, #tpu.memory_space<vmem>>, vector<1x32x64xbf16>
    %76 = vector.shape_cast %75 : vector<1x32x64xbf16> to vector<32x64xbf16>
    %c1_38 = arith.constant 1 : index
    %c0_39 = arith.constant 0 : index
    %c0_40 = arith.constant 0 : index
    %77 = vector.load %arg4[%c1_38, %c0_39, %c0_40] : memref<3x64x32xbf16, #tpu.memory_space<vmem>>, vector<1x64x32xbf16>
    %78 = vector.shape_cast %77 : vector<1x64x32xbf16> to vector<64x32xbf16>
    %c1_41 = arith.constant 1 : index
    %c0_42 = arith.constant 0 : index
    %c0_43 = arith.constant 0 : index
    %79 = vector.load %arg5[%c1_41, %c0_42, %c0_43] : memref<3x3x64xf32, #tpu.memory_space<vmem>>, vector<1x3x64xf32>
    %80 = vector.shape_cast %79 : vector<1x3x64xf32> to vector<3x64xf32>
    %c1_44 = arith.constant 1 : index
    %c0_45 = arith.constant 0 : index
    %c0_46 = arith.constant 0 : index
    %81 = vector.load %arg6[%c1_44, %c0_45, %c0_46] : memref<3x3x32xf32, #tpu.memory_space<vmem>>, vector<1x3x32xf32>
    %82 = vector.shape_cast %81 : vector<1x3x32xf32> to vector<3x32xf32>
    %cst_47 = arith.constant dense<0.000000e+00> : vector<128x32xf32>
    %83 = tpu.matmul %74, %0, %cst_47 {dimension_numbers = #tpu.dot_dimension_numbers<[1], [0], [0], [1], [0, 0, 1, 1], [], []>} : vector<128x128xbf16>, vector<128x32xbf16>, vector<128x32xf32> -> vector<128x32xf32>
    %84 = arith.truncf %83 : vector<128x32xf32> to vector<128x32xbf16>
    %cst_48 = arith.constant dense<0.000000e+00> : vector<128x64xf32>
    %85 = tpu.matmul %84, %76, %cst_48 {dimension_numbers = #tpu.dot_dimension_numbers<[1], [0], [0], [1], [0, 0, 1, 1], [], []>} : vector<128x32xbf16>, vector<32x64xbf16>, vector<128x64xf32> -> vector<128x64xf32>
    %86 = vector.extract_strided_slice %80 {offsets = [0, 0], sizes = [1, 64], strides = [1, 1]} : vector<3x64xf32> to vector<1x64xf32>
    %87 = vector.broadcast %86 : vector<1x64xf32> to vector<128x64xf32>
    %88 = arith.addf %85, %87 : vector<128x64xf32>
    %cst_49 = arith.constant 0.000000e+00 : f32
    %89 = vector.broadcast %cst_49 : f32 to vector<128x64xf32>
    %90 = arith.maximumf %88, %89 : vector<128x64xf32>
    %91 = vector.extract_strided_slice %80 {offsets = [1, 0], sizes = [1, 64], strides = [1, 1]} : vector<3x64xf32> to vector<1x64xf32>
    %92 = vector.extract_strided_slice %80 {offsets = [2, 0], sizes = [1, 64], strides = [1, 1]} : vector<3x64xf32> to vector<1x64xf32>
    %cst_50 = arith.constant dense<0.000000e+00> : vector<128xf32>
    %93 = vector.multi_reduction <add>, %90, %cst_50 [1] : vector<128x64xf32> to vector<128xf32>
    %94 = vector.shape_cast %93 : vector<128xf32> to vector<128x1xf32>
    %cst_51 = arith.constant 6.400000e+01 : f32
    %95 = vector.broadcast %cst_51 : f32 to vector<128x1xf32>
    %96 = arith.divf %94, %95 : vector<128x1xf32>
    %97 = vector.broadcast %96 : vector<128x1xf32> to vector<128x64xf32>
    %98 = arith.subf %90, %97 : vector<128x64xf32>
    %99 = arith.mulf %98, %98 : vector<128x64xf32>
    %cst_52 = arith.constant dense<0.000000e+00> : vector<128xf32>
    %100 = vector.multi_reduction <add>, %99, %cst_52 [1] : vector<128x64xf32> to vector<128xf32>
    %101 = vector.shape_cast %100 : vector<128xf32> to vector<128x1xf32>
    %cst_53 = arith.constant 6.400000e+01 : f32
    %102 = vector.broadcast %cst_53 : f32 to vector<128x1xf32>
    %103 = arith.divf %101, %102 : vector<128x1xf32>
    %cst_54 = arith.constant 9.99999974E-6 : f32
    %104 = vector.broadcast %cst_54 : f32 to vector<128x1xf32>
    %105 = arith.addf %103, %104 : vector<128x1xf32>
    %106 = math.rsqrt %105 : vector<128x1xf32>
    %107 = vector.broadcast %106 : vector<128x1xf32> to vector<128x64xf32>
    %108 = arith.mulf %98, %107 : vector<128x64xf32>
    %109 = vector.broadcast %91 : vector<1x64xf32> to vector<128x64xf32>
    %110 = arith.mulf %108, %109 : vector<128x64xf32>
    %111 = vector.broadcast %92 : vector<1x64xf32> to vector<128x64xf32>
    %112 = arith.addf %110, %111 : vector<128x64xf32>
    %113 = arith.truncf %112 : vector<128x64xf32> to vector<128x64xbf16>
    %cst_55 = arith.constant dense<0.000000e+00> : vector<128x32xf32>
    %114 = tpu.matmul %113, %78, %cst_55 {dimension_numbers = #tpu.dot_dimension_numbers<[1], [0], [0], [1], [0, 0, 1, 1], [], []>} : vector<128x64xbf16>, vector<64x32xbf16>, vector<128x32xf32> -> vector<128x32xf32>
    %115 = arith.truncf %114 : vector<128x32xf32> to vector<128x32xbf16>
    %cst_56 = arith.constant dense<0.000000e+00> : vector<128x32xf32>
    %116 = tpu.matmul %74, %115, %cst_56 {dimension_numbers = #tpu.dot_dimension_numbers<[1], [0], [0], [1], [0, 0, 1, 1], [], []>} : vector<128x128xbf16>, vector<128x32xbf16>, vector<128x32xf32> -> vector<128x32xf32>
    %117 = vector.extract_strided_slice %82 {offsets = [0, 0], sizes = [1, 32], strides = [1, 1]} : vector<3x32xf32> to vector<1x32xf32>
    %118 = vector.broadcast %117 : vector<1x32xf32> to vector<128x32xf32>
    %119 = arith.addf %116, %118 : vector<128x32xf32>
    %cst_57 = arith.constant 0.000000e+00 : f32
    %120 = vector.broadcast %cst_57 : f32 to vector<128x32xf32>
    %121 = arith.maximumf %119, %120 : vector<128x32xf32>
    %122 = vector.extract_strided_slice %82 {offsets = [1, 0], sizes = [1, 32], strides = [1, 1]} : vector<3x32xf32> to vector<1x32xf32>
    %123 = vector.extract_strided_slice %82 {offsets = [2, 0], sizes = [1, 32], strides = [1, 1]} : vector<3x32xf32> to vector<1x32xf32>
    %cst_58 = arith.constant dense<0.000000e+00> : vector<128xf32>
    %124 = vector.multi_reduction <add>, %121, %cst_58 [1] : vector<128x32xf32> to vector<128xf32>
    %125 = vector.shape_cast %124 : vector<128xf32> to vector<128x1xf32>
    %cst_59 = arith.constant 3.200000e+01 : f32
    %126 = vector.broadcast %cst_59 : f32 to vector<128x1xf32>
    %127 = arith.divf %125, %126 : vector<128x1xf32>
    %128 = vector.broadcast %127 : vector<128x1xf32> to vector<128x32xf32>
    %129 = arith.subf %121, %128 : vector<128x32xf32>
    %130 = arith.mulf %129, %129 : vector<128x32xf32>
    %cst_60 = arith.constant dense<0.000000e+00> : vector<128xf32>
    %131 = vector.multi_reduction <add>, %130, %cst_60 [1] : vector<128x32xf32> to vector<128xf32>
    %132 = vector.shape_cast %131 : vector<128xf32> to vector<128x1xf32>
    %cst_61 = arith.constant 3.200000e+01 : f32
    %133 = vector.broadcast %cst_61 : f32 to vector<128x1xf32>
    %134 = arith.divf %132, %133 : vector<128x1xf32>
    %cst_62 = arith.constant 9.99999974E-6 : f32
    %135 = vector.broadcast %cst_62 : f32 to vector<128x1xf32>
    %136 = arith.addf %134, %135 : vector<128x1xf32>
    %137 = math.rsqrt %136 : vector<128x1xf32>
    %138 = vector.broadcast %137 : vector<128x1xf32> to vector<128x32xf32>
    %139 = arith.mulf %129, %138 : vector<128x32xf32>
    %140 = vector.broadcast %122 : vector<1x32xf32> to vector<128x32xf32>
    %141 = arith.mulf %139, %140 : vector<128x32xf32>
    %142 = vector.broadcast %123 : vector<1x32xf32> to vector<128x32xf32>
    %143 = arith.addf %141, %142 : vector<128x32xf32>
    %c2 = arith.constant 2 : index
    %c0_63 = arith.constant 0 : index
    %c0_64 = arith.constant 0 : index
    %144 = vector.load %arg2[%c2, %c0_63, %c0_64] : memref<3x128x128xbf16, #tpu.memory_space<vmem>>, vector<1x128x128xbf16>
    %145 = vector.shape_cast %144 : vector<1x128x128xbf16> to vector<128x128xbf16>
    %c2_65 = arith.constant 2 : index
    %c0_66 = arith.constant 0 : index
    %c0_67 = arith.constant 0 : index
    %146 = vector.load %arg3[%c2_65, %c0_66, %c0_67] : memref<3x32x64xbf16, #tpu.memory_space<vmem>>, vector<1x32x64xbf16>
    %147 = vector.shape_cast %146 : vector<1x32x64xbf16> to vector<32x64xbf16>
    %c2_68 = arith.constant 2 : index
    %c0_69 = arith.constant 0 : index
    %c0_70 = arith.constant 0 : index
    %148 = vector.load %arg4[%c2_68, %c0_69, %c0_70] : memref<3x64x32xbf16, #tpu.memory_space<vmem>>, vector<1x64x32xbf16>
    %149 = vector.shape_cast %148 : vector<1x64x32xbf16> to vector<64x32xbf16>
    %c2_71 = arith.constant 2 : index
    %c0_72 = arith.constant 0 : index
    %c0_73 = arith.constant 0 : index
    %150 = vector.load %arg5[%c2_71, %c0_72, %c0_73] : memref<3x3x64xf32, #tpu.memory_space<vmem>>, vector<1x3x64xf32>
    %151 = vector.shape_cast %150 : vector<1x3x64xf32> to vector<3x64xf32>
    %c2_74 = arith.constant 2 : index
    %c0_75 = arith.constant 0 : index
    %c0_76 = arith.constant 0 : index
    %152 = vector.load %arg6[%c2_74, %c0_75, %c0_76] : memref<3x3x32xf32, #tpu.memory_space<vmem>>, vector<1x3x32xf32>
    %153 = vector.shape_cast %152 : vector<1x3x32xf32> to vector<3x32xf32>
    %cst_77 = arith.constant dense<0.000000e+00> : vector<128x32xf32>
    %154 = tpu.matmul %145, %0, %cst_77 {dimension_numbers = #tpu.dot_dimension_numbers<[1], [0], [0], [1], [0, 0, 1, 1], [], []>} : vector<128x128xbf16>, vector<128x32xbf16>, vector<128x32xf32> -> vector<128x32xf32>
    %155 = arith.truncf %154 : vector<128x32xf32> to vector<128x32xbf16>
    %cst_78 = arith.constant dense<0.000000e+00> : vector<128x64xf32>
    %156 = tpu.matmul %155, %147, %cst_78 {dimension_numbers = #tpu.dot_dimension_numbers<[1], [0], [0], [1], [0, 0, 1, 1], [], []>} : vector<128x32xbf16>, vector<32x64xbf16>, vector<128x64xf32> -> vector<128x64xf32>
    %157 = vector.extract_strided_slice %151 {offsets = [0, 0], sizes = [1, 64], strides = [1, 1]} : vector<3x64xf32> to vector<1x64xf32>
    %158 = vector.broadcast %157 : vector<1x64xf32> to vector<128x64xf32>
    %159 = arith.addf %156, %158 : vector<128x64xf32>
    %cst_79 = arith.constant 0.000000e+00 : f32
    %160 = vector.broadcast %cst_79 : f32 to vector<128x64xf32>
    %161 = arith.maximumf %159, %160 : vector<128x64xf32>
    %162 = vector.extract_strided_slice %151 {offsets = [1, 0], sizes = [1, 64], strides = [1, 1]} : vector<3x64xf32> to vector<1x64xf32>
    %163 = vector.extract_strided_slice %151 {offsets = [2, 0], sizes = [1, 64], strides = [1, 1]} : vector<3x64xf32> to vector<1x64xf32>
    %cst_80 = arith.constant dense<0.000000e+00> : vector<128xf32>
    %164 = vector.multi_reduction <add>, %161, %cst_80 [1] : vector<128x64xf32> to vector<128xf32>
    %165 = vector.shape_cast %164 : vector<128xf32> to vector<128x1xf32>
    %cst_81 = arith.constant 6.400000e+01 : f32
    %166 = vector.broadcast %cst_81 : f32 to vector<128x1xf32>
    %167 = arith.divf %165, %166 : vector<128x1xf32>
    %168 = vector.broadcast %167 : vector<128x1xf32> to vector<128x64xf32>
    %169 = arith.subf %161, %168 : vector<128x64xf32>
    %170 = arith.mulf %169, %169 : vector<128x64xf32>
    %cst_82 = arith.constant dense<0.000000e+00> : vector<128xf32>
    %171 = vector.multi_reduction <add>, %170, %cst_82 [1] : vector<128x64xf32> to vector<128xf32>
    %172 = vector.shape_cast %171 : vector<128xf32> to vector<128x1xf32>
    %cst_83 = arith.constant 6.400000e+01 : f32
    %173 = vector.broadcast %cst_83 : f32 to vector<128x1xf32>
    %174 = arith.divf %172, %173 : vector<128x1xf32>
    %cst_84 = arith.constant 9.99999974E-6 : f32
    %175 = vector.broadcast %cst_84 : f32 to vector<128x1xf32>
    %176 = arith.addf %174, %175 : vector<128x1xf32>
    %177 = math.rsqrt %176 : vector<128x1xf32>
    %178 = vector.broadcast %177 : vector<128x1xf32> to vector<128x64xf32>
    %179 = arith.mulf %169, %178 : vector<128x64xf32>
    %180 = vector.broadcast %162 : vector<1x64xf32> to vector<128x64xf32>
    %181 = arith.mulf %179, %180 : vector<128x64xf32>
    %182 = vector.broadcast %163 : vector<1x64xf32> to vector<128x64xf32>
    %183 = arith.addf %181, %182 : vector<128x64xf32>
    %184 = arith.truncf %183 : vector<128x64xf32> to vector<128x64xbf16>
    %cst_85 = arith.constant dense<0.000000e+00> : vector<128x32xf32>
    %185 = tpu.matmul %184, %149, %cst_85 {dimension_numbers = #tpu.dot_dimension_numbers<[1], [0], [0], [1], [0, 0, 1, 1], [], []>} : vector<128x64xbf16>, vector<64x32xbf16>, vector<128x32xf32> -> vector<128x32xf32>
    %186 = arith.truncf %185 : vector<128x32xf32> to vector<128x32xbf16>
    %cst_86 = arith.constant dense<0.000000e+00> : vector<128x32xf32>
    %187 = tpu.matmul %145, %186, %cst_86 {dimension_numbers = #tpu.dot_dimension_numbers<[1], [0], [0], [1], [0, 0, 1, 1], [], []>} : vector<128x128xbf16>, vector<128x32xbf16>, vector<128x32xf32> -> vector<128x32xf32>
    %188 = vector.extract_strided_slice %153 {offsets = [0, 0], sizes = [1, 32], strides = [1, 1]} : vector<3x32xf32> to vector<1x32xf32>
    %189 = vector.broadcast %188 : vector<1x32xf32> to vector<128x32xf32>
    %190 = arith.addf %187, %189 : vector<128x32xf32>
    %cst_87 = arith.constant 0.000000e+00 : f32
    %191 = vector.broadcast %cst_87 : f32 to vector<128x32xf32>
    %192 = arith.maximumf %190, %191 : vector<128x32xf32>
    %193 = vector.extract_strided_slice %153 {offsets = [1, 0], sizes = [1, 32], strides = [1, 1]} : vector<3x32xf32> to vector<1x32xf32>
    %194 = vector.extract_strided_slice %153 {offsets = [2, 0], sizes = [1, 32], strides = [1, 1]} : vector<3x32xf32> to vector<1x32xf32>
    %cst_88 = arith.constant dense<0.000000e+00> : vector<128xf32>
    %195 = vector.multi_reduction <add>, %192, %cst_88 [1] : vector<128x32xf32> to vector<128xf32>
    %196 = vector.shape_cast %195 : vector<128xf32> to vector<128x1xf32>
    %cst_89 = arith.constant 3.200000e+01 : f32
    %197 = vector.broadcast %cst_89 : f32 to vector<128x1xf32>
    %198 = arith.divf %196, %197 : vector<128x1xf32>
    %199 = vector.broadcast %198 : vector<128x1xf32> to vector<128x32xf32>
    %200 = arith.subf %192, %199 : vector<128x32xf32>
    %201 = arith.mulf %200, %200 : vector<128x32xf32>
    %cst_90 = arith.constant dense<0.000000e+00> : vector<128xf32>
    %202 = vector.multi_reduction <add>, %201, %cst_90 [1] : vector<128x32xf32> to vector<128xf32>
    %203 = vector.shape_cast %202 : vector<128xf32> to vector<128x1xf32>
    %cst_91 = arith.constant 3.200000e+01 : f32
    %204 = vector.broadcast %cst_91 : f32 to vector<128x1xf32>
    %205 = arith.divf %203, %204 : vector<128x1xf32>
    %cst_92 = arith.constant 9.99999974E-6 : f32
    %206 = vector.broadcast %cst_92 : f32 to vector<128x1xf32>
    %207 = arith.addf %205, %206 : vector<128x1xf32>
    %208 = math.rsqrt %207 : vector<128x1xf32>
    %209 = vector.broadcast %208 : vector<128x1xf32> to vector<128x32xf32>
    %210 = arith.mulf %200, %209 : vector<128x32xf32>
    %211 = vector.broadcast %193 : vector<1x32xf32> to vector<128x32xf32>
    %212 = arith.mulf %210, %211 : vector<128x32xf32>
    %213 = vector.broadcast %194 : vector<1x32xf32> to vector<128x32xf32>
    %214 = arith.addf %212, %213 : vector<128x32xf32>
    %c0_93 = arith.constant 0 : index
    %c0_94 = arith.constant 0 : index
    %215 = vector.load %arg7[%c0_93, %c0_94] : memref<2x32xf32, #tpu.memory_space<vmem>>, vector<2x32xf32>
    %216 = arith.mulf %1, %72 : vector<128x32xf32>
    %cst_95 = arith.constant dense<0.000000e+00> : vector<128xf32>
    %217 = vector.multi_reduction <add>, %216, %cst_95 [1] : vector<128x32xf32> to vector<128xf32>
    %218 = vector.shape_cast %217 : vector<128xf32> to vector<128x1xf32>
    %cst_96 = arith.constant 0.176776692 : f32
    %219 = vector.broadcast %cst_96 : f32 to vector<128x1xf32>
    %220 = arith.mulf %218, %219 : vector<128x1xf32>
    %221 = arith.mulf %1, %143 : vector<128x32xf32>
    %cst_97 = arith.constant dense<0.000000e+00> : vector<128xf32>
    %222 = vector.multi_reduction <add>, %221, %cst_97 [1] : vector<128x32xf32> to vector<128xf32>
    %223 = vector.shape_cast %222 : vector<128xf32> to vector<128x1xf32>
    %cst_98 = arith.constant 0.176776692 : f32
    %224 = vector.broadcast %cst_98 : f32 to vector<128x1xf32>
    %225 = arith.mulf %223, %224 : vector<128x1xf32>
    %226 = arith.mulf %1, %214 : vector<128x32xf32>
    %cst_99 = arith.constant dense<0.000000e+00> : vector<128xf32>
    %227 = vector.multi_reduction <add>, %226, %cst_99 [1] : vector<128x32xf32> to vector<128xf32>
    %228 = vector.shape_cast %227 : vector<128xf32> to vector<128x1xf32>
    %cst_100 = arith.constant 0.176776692 : f32
    %229 = vector.broadcast %cst_100 : f32 to vector<128x1xf32>
    %230 = arith.mulf %228, %229 : vector<128x1xf32>
    %231 = arith.maximumf %220, %225 : vector<128x1xf32>
    %232 = arith.maximumf %231, %230 : vector<128x1xf32>
    %233 = arith.subf %220, %232 : vector<128x1xf32>
    %234 = math.exp %233 : vector<128x1xf32>
    %235 = arith.subf %225, %232 : vector<128x1xf32>
    %236 = math.exp %235 : vector<128x1xf32>
    %237 = arith.subf %230, %232 : vector<128x1xf32>
    %238 = math.exp %237 : vector<128x1xf32>
    %239 = arith.addf %234, %236 : vector<128x1xf32>
    %240 = arith.addf %239, %238 : vector<128x1xf32>
    %241 = tpu.reciprocal %240 {approx = true} : vector<128x1xf32> -> vector<128x1xf32>
    %242 = vector.broadcast %234 : vector<128x1xf32> to vector<128x32xf32>
    %243 = arith.mulf %242, %72 : vector<128x32xf32>
    %244 = vector.broadcast %236 : vector<128x1xf32> to vector<128x32xf32>
    %245 = arith.mulf %244, %143 : vector<128x32xf32>
    %246 = arith.addf %243, %245 : vector<128x32xf32>
    %247 = vector.broadcast %238 : vector<128x1xf32> to vector<128x32xf32>
    %248 = arith.mulf %247, %214 : vector<128x32xf32>
    %249 = arith.addf %246, %248 : vector<128x32xf32>
    %250 = vector.broadcast %241 : vector<128x1xf32> to vector<128x32xf32>
    %251 = arith.mulf %249, %250 : vector<128x32xf32>
    %252 = vector.extract_strided_slice %215 {offsets = [0, 0], sizes = [1, 32], strides = [1, 1]} : vector<2x32xf32> to vector<1x32xf32>
    %253 = vector.extract_strided_slice %215 {offsets = [1, 0], sizes = [1, 32], strides = [1, 1]} : vector<2x32xf32> to vector<1x32xf32>
    %cst_101 = arith.constant dense<0.000000e+00> : vector<128xf32>
    %254 = vector.multi_reduction <add>, %251, %cst_101 [1] : vector<128x32xf32> to vector<128xf32>
    %255 = vector.shape_cast %254 : vector<128xf32> to vector<128x1xf32>
    %cst_102 = arith.constant 3.200000e+01 : f32
    %256 = vector.broadcast %cst_102 : f32 to vector<128x1xf32>
    %257 = arith.divf %255, %256 : vector<128x1xf32>
    %258 = vector.broadcast %257 : vector<128x1xf32> to vector<128x32xf32>
    %259 = arith.subf %251, %258 : vector<128x32xf32>
    %260 = arith.mulf %259, %259 : vector<128x32xf32>
    %cst_103 = arith.constant dense<0.000000e+00> : vector<128xf32>
    %261 = vector.multi_reduction <add>, %260, %cst_103 [1] : vector<128x32xf32> to vector<128xf32>
    %262 = vector.shape_cast %261 : vector<128xf32> to vector<128x1xf32>
    %cst_104 = arith.constant 3.200000e+01 : f32
    %263 = vector.broadcast %cst_104 : f32 to vector<128x1xf32>
    %264 = arith.divf %262, %263 : vector<128x1xf32>
    %cst_105 = arith.constant 9.99999974E-6 : f32
    %265 = vector.broadcast %cst_105 : f32 to vector<128x1xf32>
    %266 = arith.addf %264, %265 : vector<128x1xf32>
    %267 = math.rsqrt %266 : vector<128x1xf32>
    %268 = vector.broadcast %267 : vector<128x1xf32> to vector<128x32xf32>
    %269 = arith.mulf %259, %268 : vector<128x32xf32>
    %270 = vector.broadcast %252 : vector<1x32xf32> to vector<128x32xf32>
    %271 = arith.mulf %269, %270 : vector<128x32xf32>
    %272 = vector.broadcast %253 : vector<1x32xf32> to vector<128x32xf32>
    %273 = arith.addf %271, %272 : vector<128x32xf32>
    %c0_106 = arith.constant 0 : index
    %c0_107 = arith.constant 0 : index
    %274 = vector.load %arg8[%c0_106, %c0_107] : memref<128x32xf32, #tpu.memory_space<vmem>>, vector<128x32xf32>
    tpu.vector_store %arg8[%c0_106, %c0_107], %273 {strides = array<i32>} : memref<128x32xf32, #tpu.memory_space<vmem>>, vector<128x32xf32>,
    return
  }
}

</mosaic_0001>

<bundles_post_ra>
// kernel: static_graph_encoder.1
= control target key start
LH: loop header
LB: loop body
LE: loop exit
PB: predicated region body
PF: predicated region fallthrough
CT: control target
= control target key end

     0   :  { %vm309_vm0 = vcmask 261120   ;;  %v293_v42 = vlaneseq  ;;  %vm447_vm1 = vcmask 523264   ;;  %s8636_s0 = inlined_call_operand.vmem [shape: bf16[128,32], index: 0, kind: input, shape index: {}]   ;;  %s8637_s2 = inlined_call_operand.vmem [shape: bf16[3,128,128], index: 2, kind: input, shape index: {}]   ;;  %s8638_s3 = inlined_call_operand.vmem [shape: bf16[3,32,64], index: 3, kind: input, shape index: {}]   ;;  %s8639_s5 = inlined_call_operand.vmem [shape: f32[3,3,64], index: 5, kind: input, shape index: {}]   ;;  %s8640_s4 = inlined_call_operand.vmem [shape: bf16[3,64,32], index: 4, kind: input, shape index: {}]   ;;  %s8641_s6 = inlined_call_operand.vmem [shape: f32[3,3,32], index: 6, kind: input, shape index: {}]   ;;  %s8642_s1 = inlined_call_operand.vmem [shape: f32[128,32], index: 1, kind: input, shape index: {}]   ;;  %s8643_s7 = inlined_call_operand.vmem [shape: f32[2,32], index: 7, kind: input, shape index: {}]   ;;  %s8644_s8 = inlined_call_operand.vmem [shape: f32[128,32], index: 8, kind: output, shape index: {}]  }
   0x1   :  { %v5419_v0 = vld [vmem:[%s8636_s0] sm:$0xff]   ;;  %v5424_v1 = vld [vmem:[%s8636_s0 + $0x8] sm:$0xff]   ;;  %v5432_v2 = vld [vmem:[%s8636_s0 + $0x10] sm:$0xff]  }
   0x2   :  { %4603 = vmatprep.subr.bf16.mxu0 %v5419_v0  ;;  %v5438_v3 = vld [vmem:[%s8636_s0 + $0x18] sm:$0xff]   ;;  %v4951_v4 = vld [vmem:[%s8637_s2] sm:$0xff]   ;;  %v5455_v6 = vld [vmem:[%s8636_s0 + $0x28] sm:$0xff]   ;;  %v5528_v43 = vshrl.u32 %v293_v42, 7 }
   0x3   :  { %4604 = vmatpush3.bf16.msra.mxu0 %v5419_v0  ;;  %4619 = vmatprep.mubr.bf16.mxu0 %v4951_v4  ;;  %v5449_v5 = vld [vmem:[%s8636_s0 + $0x20] sm:$0xff]   ;;  %v5464_v8 = vld [vmem:[%s8636_s0 + $0x30] sm:$0xff]   ;;  %v5471_v9 = vld [vmem:[%s8636_s0 + $0x38] sm:$0xff]  }
   0x4   :  { %4605 = vmatprep.subr.bf16.mxu0 %v5424_v1  ;;  %v4959_v7 = vld [vmem:[%s8638_s3] sm:$0xff]   ;;  %v5480_v10 = vld [vmem:[%s8637_s2 + $0x8] sm:$0xff]   ;;  %v5486_v11 = vld [vmem:[%s8637_s2 + $0x10] sm:$0xff]   ;;  %v5531_v44 = vsub.s32 0, %v5528_v43 }
   0x5   :  { %4635 = vmatprep.subr.bf16.mxu1 %v4959_v7  ;;  %v5493_v12 = vld [vmem:[%s8637_s2 + $0x18] sm:$0xff]   ;;  %v5498_v13 = vld [vmem:[%s8637_s2 + $0x20] sm:$0xff]   ;;  %v5505_v14 = vld [vmem:[%s8637_s2 + $0x28] sm:$0xff]  }
   0x6   :  { %4636 = vmatpush3.bf16.msra.mxu1 %v4959_v7  ;;  %v5510_v15 = vld [vmem:[%s8637_s2 + $0x30] sm:$0xff]   ;;  %v4958_v16 = vld [vmem:[%s8637_s2 + $0x38] sm:$0xff]   ;;  %v4960_v17 = vld [vmem:[%s8638_s3 + $0x8] sm:$0xff]   ;;  %8771 = vst [vmem:[#allocation2_spill] sm:$0xff] %v5531_v44 }
   0x7   :  { %4606 = vmatpush3.bf16.msra.mxu0 %v5424_v1  ;;  %4637 = vmatprep.subr.bf16.mxu1 %v4960_v17  ;;  %v5536_v45 = vld [vmem:[%s8639_s5] sm:$0x7] }
   0x8   :  { %4607 = vmatprep.subr.bf16.mxu0 %v5432_v2  ;;  %v5540_v46 = vrot.slane %v5536_v45, %v5531_v44 }
   0xa   :  { %4638 = vmatpush3.bf16.msra.mxu1 %v4960_v17 }
   0xb   :  { %4608 = vmatpush3.bf16.msra.mxu0 %v5432_v2 }
   0xc   :  { %4609 = vmatprep.subr.bf16.mxu0 %v5438_v3 }
   0xf   :  { %4610 = vmatpush3.bf16.msra.mxu0 %v5438_v3 }
  0x10   :  { %4611 = vmatprep.subr.bf16.mxu0 %v5449_v5 }
  0x13   :  { %4612 = vmatpush3.bf16.msra.mxu0 %v5449_v5 }
  0x14   :  { %4613 = vmatprep.subr.bf16.mxu0 %v5455_v6 }
  0x17   :  { %4614 = vmatpush3.bf16.msra.mxu0 %v5455_v6 }
  0x18   :  { %4615 = vmatprep.subr.bf16.mxu0 %v5464_v8 }
  0x1b   :  { %4616 = vmatpush3.bf16.msra.mxu0 %v5464_v8 }
  0x1c   :  { %4617 = vmatprep.subr.bf16.mxu0 %v5471_v9 }
  0x1f   :  { %4618 = vmatpush3.bf16.msra.mxu0 %v5471_v9 }
  0x22   :  { %4620 = vmatmul.mubr.bf16.vlgmr.msra.gmra.mrb[0].mxu0 %v5480_v10 }
  0x23   :  { %4623 = vmatprep.mubr.bf16.mxu0 %v5486_v11 }
  0x2a   :  { %4624 = vmatmul.mubr.bf16.gmra.mrb[4].mxu0 %v5493_v12 }
  0x2b   :  { %4627 = vmatprep.mubr.bf16.mxu0 %v5498_v13 }
  0x32   :  { %4628 = vmatmul.mubr.bf16.gmra.mrb[8].mxu0 %v5505_v14 }
  0x33   :  { %4631 = vmatprep.mubr.bf16.mxu0 %v5510_v15 }
  0x3a   :  { %4632 = vmatmul.mubr.bf16.gmra.mrb[12].mxu0 %v4958_v16 }
  0x3b   :  { %4695 = vmatprep.mubr.bf16.mxu0 %v4951_v4 }
  0xf5   :  { %v4621_v18 = vpop.f32.mrb[0].mxu0 }
  0xf6   :  { %v222_v19 = vpop.f32.mrb[1].mxu0 }
  0xf7   :  { %v4622_v20 = vpop.f32.mrb[2].mxu0 }
  0xf8   :  { %v286_v21 = vpack.c.bf16 %v4622_v20, %v4621_v18  ;;  %v225_v22 = vpop.f32.mrb[3].mxu0 }
  0xf9   :  { %v285_v23 = vpack.c.bf16 %v225_v22, %v222_v19 }
  0xfb   :  { %4639 = vmatprep.mubr.msk.bf16.mxu1 %vm309_vm0, %v285_v23 }
  0xfc   :  { %4640 = vmatmul.mubr.msk.bf16.vlgmr.msra.gmra.mrb[0].mxu1 %vm309_vm0, %v286_v21 }
  0xfd   :  { %v4625_v24 = vpop.f32.mrb[4].mxu0 }
  0xfe   :  { %v238_v25 = vpop.f32.mrb[5].mxu0 }
  0xff   :  { %v4626_v26 = vpop.f32.mrb[6].mxu0 }
 0x100   :  { %v288_v27 = vpack.c.bf16 %v4626_v26, %v4625_v24  ;;  %v241_v28 = vpop.f32.mrb[7].mxu0 }
 0x101   :  { %v287_v29 = vpack.c.bf16 %v241_v28, %v238_v25 }
 0x103   :  { %4643 = vmatprep.mubr.msk.bf16.mxu1 %vm309_vm0, %v287_v29 }
 0x104   :  { %4644 = vmatmul.mubr.msk.bf16.gmra.mrb[4].mxu1 %vm309_vm0, %v288_v27 }
 0x105   :  { %v4629_v30 = vpop.f32.mrb[8].mxu0 }
 0x106   :  { %v254_v31 = vpop.f32.mrb[9].mxu0 }
 0x107   :  { %v4630_v32 = vpop.f32.mrb[10].mxu0 }
 0x108   :  { %v290_v33 = vpack.c.bf16 %v4630_v32, %v4629_v30  ;;  %v257_v34 = vpop.f32.mrb[11].mxu0 }
 0x109   :  { %v289_v35 = vpack.c.bf16 %v257_v34, %v254_v31 }
 0x10b   :  { %4647 = vmatprep.mubr.msk.bf16.mxu1 %vm309_vm0, %v289_v35 }
 0x10c   :  { %4648 = vmatmul.mubr.msk.bf16.gmra.mrb[8].mxu1 %vm309_vm0, %v290_v33 }
 0x10d   :  { %v4633_v36 = vpop.f32.mrb[12].mxu0 }
 0x10e   :  { %v270_v37 = vpop.f32.mrb[13].mxu0 }
 0x10f   :  { %v4634_v38 = vpop.f32.mrb[14].mxu0 }
 0x110   :  { %v292_v39 = vpack.c.bf16 %v4634_v38, %v4633_v36  ;;  %v273_v40 = vpop.f32.mrb[15].mxu0 }
 0x111   :  { %v291_v41 = vpack.c.bf16 %v273_v40, %v270_v37 }
 0x113   :  { %4651 = vmatprep.mubr.msk.bf16.mxu1 %vm309_vm0, %v291_v41 }
 0x114   :  { %4652 = vmatmul.mubr.msk.bf16.gmra.mrb[12].mxu1 %vm309_vm0, %v292_v39 }
 0x1cf   :  { %v4641_v47 = vpop.f32.mrb[0].mxu1 }
 0x1d0   :  { %v5543_v48 = vadd.f32 %v4641_v47, %v5540_v46  ;;  %v368_v49 = vpop.f32.mrb[1].mxu1 }
 0x1d1   :  { %v5546_v50 = vadd.f32 %v368_v49, %v5540_v46  ;;  %v4642_v51 = vpop.f32.mrb[2].mxu1 }
 0x1d2   :  { %v433_v52 = vmax.f32 %v5543_v48, 0.0  ;;  %v5550_v53 = vadd.f32 %v4642_v51, %v5540_v46  ;;  %v371_v54 = vpop.f32.mrb[3].mxu1 }
 0x1d3   :  { %v431_v55 = vmax.f32 %v5546_v50, 0.0  ;;  %v5554_v56 = vadd.f32 %v371_v54, %v5540_v46 }
 0x1d4   :  { %v434_v57 = vmax.f32 %v5550_v53, 0.0  ;;  %v454_v58 = vsel %vm447_vm1, %v433_v52, 0.0 }
 0x1d5   :  { %v432_v59 = vmax.f32 %v5554_v56, 0.0  ;;  %455 = vadd.xlane.f32.xlu1 %v454_v58  ;;  %v448_v60 = vsel %vm447_vm1, %v431_v55, 0.0 }
 0x1d6   :  { %449 = vadd.xlane.f32.xlu0 %v448_v60  ;;  %v457_v63 = vsel %vm447_vm1, %v434_v57, 0.0 }
 0x1d7   :  { %v4645_v61 = vpop.f32.mrb[4].mxu1  ;;  %v451_v17 = vsel %vm447_vm1, %v432_v59, 0.0 }
 0x1d8   :  { %v384_v62 = vpop.f32.mrb[5].mxu1  ;;  %v5568_v4 = vadd.f32 %v4645_v61, %v5540_v46 }
 0x1d9   :  { %v5571_v7 = vadd.f32 %v384_v62, %v5540_v46  ;;  %458 = vadd.xlane.f32.xlu1 %v457_v63  ;;  %v4646_v16 = vpop.f32.mrb[6].mxu1 }
 0x1da   :  { %452 = vadd.xlane.f32.xlu0 %v451_v17  ;;  %v387_v18 = vpop.f32.mrb[7].mxu1  ;;  %v5578_v20 = vadd.f32 %v4646_v16, %v5540_v46  ;;  %v437_v22 = vmax.f32 %v5568_v4, 0.0 }
 0x1db   :  { %v435_v19 = vmax.f32 %v5571_v7, 0.0  ;;  %v5581_v21 = vadd.f32 %v387_v18, %v5540_v46 }
 0x1dc   :  { %v438_v25 = vmax.f32 %v5578_v20, 0.0  ;;  %v466_v32 = vsel %vm447_vm1, %v437_v22, 0.0 }
 0x1dd   :  { %v436_v23 = vmax.f32 %v5581_v21, 0.0  ;;  %v460_v24 = vsel %vm447_vm1, %v435_v19, 0.0 }
 0x1de   :  { %461 = vadd.xlane.f32.xlu0 %v460_v24  ;;  %v469_v37 = vsel %vm447_vm1, %v438_v25, 0.0 }
 0x1df   :  { %v4649_v26 = vpop.f32.mrb[8].mxu1  ;;  %v463_v27 = vsel %vm447_vm1, %v436_v23, 0.0 }
 0x1e0   :  { %464 = vadd.xlane.f32.xlu1 %v463_v27  ;;  %v400_v28 = vpop.f32.mrb[9].mxu1  ;;  %v5593_v29 = vadd.f32 %v4649_v26, %v5540_v46 }
 0x1e1   :  { %v5596_v30 = vadd.f32 %v400_v28, %v5540_v46  ;;  %v4650_v31 = vpop.f32.mrb[10].mxu1 }
 0x1e2   :  { %467 = vadd.xlane.f32.xlu0 %v466_v32  ;;  %v403_v33 = vpop.f32.mrb[11].mxu1  ;;  %v5603_v35 = vadd.f32 %v4650_v31, %v5540_v46  ;;  %v441_v38 = vmax.f32 %v5593_v29, 0.0  ;;  %v4961_v32 = vld [vmem:[%s8640_s4] sm:$0xff]  }
 0x1e3   :  { %v439_v34 = vmax.f32 %v5596_v30, 0.0  ;;  %v5606_v36 = vadd.f32 %v403_v33, %v5540_v46  ;;  %4655 = vmatprep.subr.bf16.mxu1 %v4961_v32 }
 0x1e4   :  { %470 = vadd.xlane.f32.xlu1 %v469_v37  ;;  %v442_v41 = vmax.f32 %v5603_v35, 0.0  ;;  %v478_v60 = vsel %vm447_vm1, %v441_v38, 0.0  ;;  %4656 = vmatpush3.bf16.msra.mxu1 %v4961_v32 }
 0x1e5   :  { %v440_v39 = vmax.f32 %v5606_v36, 0.0  ;;  %v472_v40 = vsel %vm447_vm1, %v439_v34, 0.0 }
 0x1e6   :  { %473 = vadd.xlane.f32.xlu0 %v472_v40  ;;  %v481_v17 = vsel %vm447_vm1, %v442_v41, 0.0 }
 0x1e7   :  { %v4653_v42 = vpop.f32.mrb[12].mxu1  ;;  %v475_v47 = vsel %vm447_vm1, %v440_v39, 0.0 }
 0x1e8   :  { %476 = vadd.xlane.f32.xlu1 %v475_v47  ;;  %v416_v49 = vpop.f32.mrb[13].mxu1  ;;  %v5621_v51 = vadd.f32 %v4653_v42, %v5540_v46 }
 0x1e9   :  { %v5624_v54 = vadd.f32 %v416_v49, %v5540_v46  ;;  %v4654_v58 = vpop.f32.mrb[14].mxu1 }
 0x1ea   :  { %479 = vadd.xlane.f32.xlu0 %v478_v60  ;;  %v419_v61 = vpop.f32.mrb[15].mxu1  ;;  %v5631_v63 = vadd.f32 %v4654_v58, %v5540_v46  ;;  %v445_v18 = vmax.f32 %v5621_v51, 0.0 }
 0x1eb   :  { %v443_v62 = vmax.f32 %v5624_v54, 0.0  ;;  %v5634_v16 = vadd.f32 %v419_v61, %v5540_v46 }
 0x1ec   :  { %482 = vadd.xlane.f32.xlu1 %v481_v17  ;;  %v446_v27 = vmax.f32 %v5631_v63, 0.0  ;;  %v490_v28 = vsel %vm447_vm1, %v445_v18, 0.0  ;;  %v4962_v63 = vld [vmem:[%s8640_s4 + $0x8] sm:$0xff]  }
 0x1ed   :  { %v444_v24 = vmax.f32 %v5634_v16, 0.0  ;;  %v484_v26 = vsel %vm447_vm1, %v443_v62, 0.0  ;;  %4657 = vmatprep.subr.bf16.mxu1 %v4962_v63 }
 0x1ee   :  { %485 = vadd.xlane.f32.xlu0 %v484_v26  ;;  %v493_v31 = vsel %vm447_vm1, %v446_v27, 0.0  ;;  %4658 = vmatpush3.bf16.msra.mxu1 %v4962_v63 }
 0x1ef   :  { %v487_v46 = vsel %vm447_vm1, %v444_v24, 0.0 }
 0x1f0   :  { %488 = vadd.xlane.f32.xlu1 %v487_v46 }
 0x1f2   :  { %491 = vadd.xlane.f32.xlu0 %v490_v28 }
 0x1f4   :  { %494 = vadd.xlane.f32.xlu1 %v493_v31 }
 0x262   :  { %v456_v33 = vpop.xlane.xlu1 %455 }
 0x263   :  { %v499_v37 = vmul.f32 0.015625, %v456_v33  ;;  %v450_v40 = vpop.xlane.xlu0 %449 }
 0x264   :  { %v497_v42 = vmul.f32 0.015625, %v450_v40 }
 0x265   :  { %v5659_v47 = vsub.f32 %v433_v52, %v499_v37 }
 0x266   :  { %v5663_v49 = vsub.f32 %v431_v55, %v497_v42  ;;  %v459_v58 = vpop.xlane.xlu1 %458 }
 0x267   :  { %v500_v60 = vmul.f32 0.015625, %v459_v58  ;;  %v453_v61 = vpop.xlane.xlu0 %452  ;;  %v531_v50 = vmul.f32 %v5659_v47, %v5659_v47 }
 0x268   :  { %v498_v17 = vmul.f32 0.015625, %v453_v61  ;;  %v529_v26 = vmul.f32 %v5663_v49, %v5663_v49 }
 0x269   :  { %v5669_v46 = vsub.f32 %v434_v57, %v500_v60  ;;  %v551_v33 = vsel %vm447_vm1, %v531_v50, 0.0 }
 0x26a   :  { %v5673_v48 = vsub.f32 %v432_v59, %v498_v17  ;;  %v545_v52 = vsel %vm447_vm1, %v529_v26, 0.0 }
 0x26b   :  { %v462_v55 = vpop.xlane.xlu0 %461  ;;  %546 = vadd.xlane.f32.xlu0 %v545_v52  ;;  %v532_v53 = vmul.f32 %v5669_v46, %v5669_v46 }
 0x26c   :  { %v501_v28 = vmul.f32 0.015625, %v462_v55  ;;  %v530_v31 = vmul.f32 %v5673_v48, %v5673_v48 }
 0x26d   :  { %v465_v32 = vpop.xlane.xlu1 %464  ;;  %v554_v7 = vsel %vm447_vm1, %v532_v53, 0.0 }
 0x26e   :  { %v5684_v56 = vsub.f32 %v435_v19, %v501_v28  ;;  %v502_v57 = vmul.f32 0.015625, %v465_v32  ;;  %v548_v59 = vsel %vm447_vm1, %v530_v31, 0.0 }
 0x26f   :  { %v468_v37 = vpop.xlane.xlu0 %467  ;;  %549 = vadd.xlane.f32.xlu1 %v548_v59  ;;  %552 = vadd.xlane.f32.xlu0 %v551_v33 }
 0x270   :  { %v5690_v40 = vsub.f32 %v436_v23, %v502_v57  ;;  %v503_v42 = vmul.f32 0.015625, %v468_v37  ;;  %v533_v58 = vmul.f32 %v5684_v56, %v5684_v56 }
 0x271   :  { %v471_v60 = vpop.xlane.xlu1 %470 }
 0x272   :  { %v5697_v19 = vsub.f32 %v437_v22, %v503_v42  ;;  %v504_v61 = vmul.f32 0.015625, %v471_v60  ;;  %v557_v17 = vsel %vm447_vm1, %v533_v58, 0.0  ;;  %v534_v26 = vmul.f32 %v5690_v40, %v5690_v40 }
 0x273   :  { %v474_v21 = vpop.xlane.xlu0 %473  ;;  %555 = vadd.xlane.f32.xlu1 %v554_v7  ;;  %558 = vadd.xlane.f32.xlu0 %v557_v17 }
 0x274   :  { %v5704_v23 = vsub.f32 %v438_v25, %v504_v61  ;;  %v505_v52 = vmul.f32 0.015625, %v474_v21  ;;  %v535_v50 = vmul.f32 %v5697_v19, %v5697_v19  ;;  %v560_v22 = vsel %vm447_vm1, %v534_v26, 0.0 }
 0x275   :  { %v477_v4 = vpop.xlane.xlu1 %476 }
 0x276   :  { %v5711_v55 = vsub.f32 %v439_v34, %v505_v52  ;;  %v506_v28 = vmul.f32 0.015625, %v477_v4  ;;  %v563_v31 = vsel %vm447_vm1, %v535_v50, 0.0  ;;  %v536_v32 = vmul.f32 %v5704_v23, %v5704_v23 }
 0x277   :  { %v480_v20 = vpop.xlane.xlu0 %479  ;;  %561 = vadd.xlane.f32.xlu1 %v560_v22  ;;  %564 = vadd.xlane.f32.xlu0 %v563_v31 }
 0x278   :  { %v5718_v25 = vsub.f32 %v440_v39, %v506_v28  ;;  %v507_v53 = vmul.f32 0.015625, %v480_v20  ;;  %v537_v57 = vmul.f32 %v5711_v55, %v5711_v55  ;;  %v566_v34 = vsel %vm447_vm1, %v536_v32, 0.0  ;;  %v4964_v20 = vld [vmem:[%s8640_s4 + $0x18] sm:$0xff]  }
 0x279   :  { %v483_v30 = vpop.xlane.xlu1 %482 }
 0x27a   :  { %v5725_v59 = vsub.f32 %v441_v38, %v507_v53  ;;  %v508_v33 = vmul.f32 0.015625, %v483_v30  ;;  %v569_v37 = vsel %vm447_vm1, %v537_v57, 0.0  ;;  %v538_v42 = vmul.f32 %v5718_v25, %v5718_v25 }
 0x27b   :  { %567 = vadd.xlane.f32.xlu1 %v566_v34  ;;  %570 = vadd.xlane.f32.xlu0 %v569_v37  ;;  %v486_v36 = vpop.xlane.xlu0 %485 }
 0x27c   :  { %v5732_v39 = vsub.f32 %v442_v41, %v508_v33  ;;  %v509_v58 = vmul.f32 0.015625, %v486_v36  ;;  %v539_v60 = vmul.f32 %v5725_v59, %v5725_v59  ;;  %v572_v38 = vsel %vm447_vm1, %v538_v42, 0.0 }
 0x27d   :  { %v489_v29 = vpop.xlane.xlu1 %488 }
 0x27e   :  { %v5739_v7 = vsub.f32 %v443_v62, %v509_v58  ;;  %v510_v61 = vmul.f32 0.015625, %v489_v29  ;;  %v575_v17 = vsel %vm447_vm1, %v539_v60, 0.0  ;;  %v540_v26 = vmul.f32 %v5732_v39, %v5732_v39 }
 0x27f   :  { %573 = vadd.xlane.f32.xlu1 %v572_v38  ;;  %576 = vadd.xlane.f32.xlu0 %v575_v17  ;;  %v492_v35 = vpop.xlane.xlu0 %491 }
 0x280   :  { %v5746_v41 = vsub.f32 %v444_v24, %v510_v61  ;;  %v511_v21 = vmul.f32 0.015625, %v492_v35  ;;  %v541_v52 = vmul.f32 %v5739_v7, %v5739_v7  ;;  %v578_v62 = vsel %vm447_vm1, %v540_v26, 0.0 }
 0x281   :  { %v495_v54 = vpop.xlane.xlu1 %494  ;;  %v5780_v35 = vsub.s32 1, %v5528_v43 }
 0x282   :  { %v5753_v50 = vsub.f32 %v445_v18, %v511_v21  ;;  %v512_v4 = vmul.f32 0.015625, %v495_v54  ;;  %v581_v22 = vsel %vm447_vm1, %v541_v52, 0.0  ;;  %v542_v28 = vmul.f32 %v5746_v41, %v5746_v41 }
 0x283   :  { %579 = vadd.xlane.f32.xlu1 %v578_v62  ;;  %582 = vadd.xlane.f32.xlu0 %v581_v22  ;;  %8772 = vst [vmem:[#allocation3_spill] sm:$0xff] %v5780_v35 }
 0x284   :  { %v5760_v16 = vsub.f32 %v446_v27, %v512_v4  ;;  %v543_v24 = vmul.f32 %v5753_v50, %v5753_v50  ;;  %v584_v31 = vsel %vm447_vm1, %v542_v28, 0.0  ;;  %v4963_v27 = vld [vmem:[%s8640_s4 + $0x10] sm:$0xff]  }
 0x285   :  { %4659 = vmatprep.subr.bf16.mxu1 %v4963_v27 }
 0x286   :  { %v587_v51 = vsel %vm447_vm1, %v543_v24, 0.0  ;;  %v544_v18 = vmul.f32 %v5760_v16, %v5760_v16  ;;  %4660 = vmatpush3.bf16.msra.mxu1 %v4963_v27  ;;  %v5784_v24 = vrot.slane %v5536_v45, %v5780_v35 }
 0x287   :  { %585 = vadd.xlane.f32.xlu1 %v584_v31  ;;  %588 = vadd.xlane.f32.xlu0 %v587_v51  ;;  %v5787_v31 = vsub.s32 2, %v5528_v43 }
 0x288   :  { %v590_v32 = vsel %vm447_vm1, %v544_v18, 0.0  ;;  %4661 = vmatprep.subr.bf16.mxu1 %v4964_v20 }
 0x289   :  { %8773 = vst [vmem:[#allocation4_spill] sm:$0xff] %v5787_v31 }
 0x28a   :  { %4662 = vmatpush3.bf16.msra.mxu1 %v4964_v20 }
 0x28b   :  { %591 = vadd.xlane.f32.xlu1 %v590_v32  ;;  %4711 = vmatprep.subr.bf16.mxu1 %v5419_v0 }
 0x2f8   :  { %v547_v53 = vpop.xlane.xlu0 %546 }
 0x2f9   :  { %v593_v57 = vmul.f32 0.015625, %v547_v53 }
 0x2fb   :  { %v609_v30 = vadd.f32 1e-05, %v593_v57 }
 0x2fc   :  { %v550_v34 = vpop.xlane.xlu1 %549  ;;  %v553_v33 = vpop.xlane.xlu0 %552 }
 0x2fd   :  { %4993 = vrsqrt.f32 %v609_v30  ;;  %v594_v37 = vmul.f32 0.015625, %v550_v34  ;;  %v595_v42 = vmul.f32 0.015625, %v553_v33  ;;  %v5792_v34 = vrot.slane %v5536_v45, %v5787_v31 }
 0x2ff   :  { %v610_v36 = vadd.f32 1e-05, %v594_v37  ;;  %v611_v58 = vadd.f32 1e-05, %v595_v42 }
 0x300   :  { %v556_v60 = vpop.xlane.xlu1 %555  ;;  %v559_v29 = vpop.xlane.xlu0 %558 }
 0x301   :  { %4995 = vrsqrt.f32 %v610_v36  ;;  %v596_v38 = vmul.f32 0.015625, %v556_v60  ;;  %v597_v61 = vmul.f32 0.015625, %v559_v29 }
 0x302   :  { %4997 = vrsqrt.f32 %v611_v58 }
 0x303   :  { %v612_v17 = vadd.f32 1e-05, %v596_v38  ;;  %v613_v26 = vadd.f32 1e-05, %v597_v61 }
 0x304   :  { %v562_v21 = vpop.xlane.xlu1 %561  ;;  %v565_v52 = vpop.xlane.xlu0 %564 }
 0x305   :  { %4999 = vrsqrt.f32 %v612_v17  ;;  %v598_v54 = vmul.f32 0.015625, %v562_v21  ;;  %v599_v62 = vmul.f32 0.015625, %v565_v52 }
 0x306   :  { %5001 = vrsqrt.f32 %v613_v26 }
 0x307   :  { %v4994_v4 = vpop.eup %4993  ;;  %v614_v22 = vadd.f32 1e-05, %v598_v54  ;;  %v615_v28 = vadd.f32 1e-05, %v599_v62 }
 0x308   :  { %v568_v51 = vpop.xlane.xlu1 %567  ;;  %v571_v18 = vpop.xlane.xlu0 %570  ;;  %v641_v32 = vmul.f32 %v4994_v4, %v5663_v49 }
 0x309   :  { %5003 = vrsqrt.f32 %v614_v22  ;;  %v600_v63 = vmul.f32 0.015625, %v568_v51  ;;  %v601_v27 = vmul.f32 0.015625, %v571_v18 }
 0x30a   :  { %5005 = vrsqrt.f32 %v615_v28  ;;  %v661_v42 = vmul.f32 %v5784_v24, %v641_v32 }
 0x30b   :  { %v4996_v20 = vpop.eup %4995  ;;  %v616_v53 = vadd.f32 1e-05, %v600_v63  ;;  %v617_v57 = vadd.f32 1e-05, %v601_v27 }
 0x30c   :  { %v4998_v30 = vpop.eup %4997  ;;  %v574_v33 = vpop.xlane.xlu1 %573  ;;  %v642_v43 = vmul.f32 %v4996_v20, %v5673_v48  ;;  %v681_v52 = vadd.f32 %v5792_v34, %v661_v42 }
 0x30d   :  { %v577_v37 = vpop.xlane.xlu0 %576  ;;  %v643_v49 = vmul.f32 %v4998_v30, %v5659_v47  ;;  %5007 = vrsqrt.f32 %v616_v53  ;;  %v602_v36 = vmul.f32 0.015625, %v574_v33 }
 0x30e   :  { %v603_v58 = vmul.f32 0.015625, %v577_v37  ;;  %5009 = vrsqrt.f32 %v617_v57  ;;  %v662_v60 = vmul.f32 %v5784_v24, %v642_v43 }
 0x30f   :  { %v5000_v29 = vpop.eup %4999  ;;  %v618_v38 = vadd.f32 1e-05, %v602_v36  ;;  %v663_v45 = vmul.f32 %v5784_v24, %v643_v49 }
 0x310   :  { %v619_v61 = vadd.f32 1e-05, %v603_v58  ;;  %v5002_v17 = vpop.eup %5001  ;;  %v644_v26 = vmul.f32 %v5000_v29, %v5669_v46  ;;  %v580_v21 = vpop.xlane.xlu1 %579  ;;  %v682_v47 = vadd.f32 %v5792_v34, %v662_v60 }
 0x311   :  { %v583_v48 = vpop.xlane.xlu0 %582  ;;  %5011 = vrsqrt.f32 %v618_v38  ;;  %v604_v54 = vmul.f32 0.015625, %v580_v21  ;;  %v645_v28 = vmul.f32 %v5002_v17, %v5684_v56  ;;  %v683_v46 = vadd.f32 %v5792_v34, %v663_v45 }
 0x312   :  { %v605_v62 = vmul.f32 0.015625, %v583_v48  ;;  %v664_v4 = vmul.f32 %v5784_v24, %v644_v26  ;;  %5013 = vrsqrt.f32 %v619_v61  ;;  %v697_v22 = vpack.c.bf16 %v682_v47, %v681_v52 }
 0x313   :  { %v5004_v51 = vpop.eup %5003  ;;  %v620_v18 = vadd.f32 1e-05, %v604_v54  ;;  %v665_v30 = vmul.f32 %v5784_v24, %v645_v28 }
 0x314   :  { %v621_v32 = vadd.f32 1e-05, %v605_v62  ;;  %v5006_v63 = vpop.eup %5005  ;;  %v684_v27 = vadd.f32 %v5792_v34, %v664_v4  ;;  %v586_v20 = vpop.xlane.xlu1 %585  ;;  %4663 = vmatprep.mubr.msk.bf16.mxu1 %vm447_vm1, %v697_v22  ;;  %v646_v57 = vmul.f32 %v5004_v51, %v5690_v40 }
 0x315   :  { %v589_v53 = vpop.xlane.xlu0 %588  ;;  %5015 = vrsqrt.f32 %v620_v18  ;;  %v606_v33 = vmul.f32 0.015625, %v586_v20  ;;  %v647_v56 = vmul.f32 %v5006_v63, %v5697_v19  ;;  %v685_v40 = vadd.f32 %v5792_v34, %v665_v30 }
 0x316   :  { %v607_v37 = vmul.f32 0.015625, %v589_v53  ;;  %5017 = vrsqrt.f32 %v621_v32  ;;  %v698_v43 = vpack.c.bf16 %v684_v27, %v683_v46  ;;  %v666_v42 = vmul.f32 %v5784_v24, %v646_v57 }
 0x317   :  { %v5008_v49 = vpop.eup %5007  ;;  %v622_v36 = vadd.f32 1e-05, %v606_v33  ;;  %v667_v17 = vmul.f32 %v5784_v24, %v647_v56 }
 0x318   :  { %v623_v58 = vadd.f32 1e-05, %v607_v37  ;;  %v5010_v60 = vpop.eup %5009  ;;  %v592_v29 = vpop.xlane.xlu1 %591  ;;  %4664 = vmatmul.mubr.msk.bf16.vlgmr.msra.gmra.mrb[16].mxu1 %vm447_vm1, %v698_v43  ;;  %v686_v38 = vadd.f32 %v5792_v34, %v666_v42  ;;  %v648_v61 = vmul.f32 %v5008_v49, %v5704_v23 }
 0x319   :  { %5019 = vrsqrt.f32 %v622_v36  ;;  %v608_v19 = vmul.f32 0.015625, %v592_v29  ;;  %v649_v45 = vmul.f32 %v5010_v60, %v5711_v55  ;;  %4712 = vmatpush3.bf16.msra.mxu1 %v5419_v0  ;;  %v687_v23 = vadd.f32 %v5792_v34, %v667_v17  ;;  %v4972_v60 = vld [vmem:[%s8637_s2 + $0x78] sm:$0xff]  }
 0x31a   :  { %5021 = vrsqrt.f32 %v623_v58  ;;  %v699_v26 = vpack.c.bf16 %v686_v38, %v685_v40  ;;  %v668_v21 = vmul.f32 %v5784_v24, %v648_v61  ;;  %4713 = vmatprep.subr.bf16.mxu1 %v5424_v1 }
 0x31b   :  { %v5012_v48 = vpop.eup %5011  ;;  %v624_v52 = vadd.f32 1e-05, %v608_v19  ;;  %v669_v55 = vmul.f32 %v5784_v24, %v649_v45 }
 0x31c   :  { %v5014_v47 = vpop.eup %5013  ;;  %4667 = vmatprep.mubr.msk.bf16.mxu1 %vm447_vm1, %v699_v26  ;;  %v688_v54 = vadd.f32 %v5792_v34, %v668_v21  ;;  %v650_v62 = vmul.f32 %v5012_v48, %v5718_v25 }
 0x31d   :  { %5023 = vrsqrt.f32 %v624_v52  ;;  %v651_v0 = vmul.f32 %v5014_v47, %v5725_v59  ;;  %4714 = vmatpush3.bf16.msra.mxu1 %v5424_v1  ;;  %v689_v18 = vadd.f32 %v5792_v34, %v669_v55 }
 0x31e   :  { %v700_v4 = vpack.c.bf16 %v688_v54, %v687_v23  ;;  %v670_v22 = vmul.f32 %v5784_v24, %v650_v62  ;;  %4715 = vmatprep.subr.bf16.mxu1 %v5432_v2 }
 0x31f   :  { %v5016_v28 = vpop.eup %5015  ;;  %v671_v63 = vmul.f32 %v5784_v24, %v651_v0 }
 0x320   :  { %v5018_v51 = vpop.eup %5017  ;;  %4668 = vmatmul.mubr.msk.bf16.gmra.mrb[20].mxu1 %vm447_vm1, %v700_v4  ;;  %v690_v25 = vadd.f32 %v5792_v34, %v670_v22  ;;  %v652_v32 = vmul.f32 %v5016_v28, %v5732_v39 }
 0x321   :  { %v653_v59 = vmul.f32 %v5018_v51, %v5739_v7  ;;  %4716 = vmatpush3.bf16.msra.mxu1 %v5432_v2  ;;  %v691_v53 = vadd.f32 %v5792_v34, %v671_v63  ;;  %v4973_v63 = vld [vmem:[%s8638_s3 + $0x10] sm:$0xff]  }
 0x322   :  { %v701_v1 = vpack.c.bf16 %v690_v25, %v689_v18  ;;  %v672_v46 = vmul.f32 %v5784_v24, %v652_v32  ;;  %4717 = vmatprep.subr.bf16.mxu1 %v5438_v3 }
 0x323   :  { %v5020_v27 = vpop.eup %5019  ;;  %v673_v30 = vmul.f32 %v5784_v24, %v653_v59 }
 0x324   :  { %v5022_v20 = vpop.eup %5021  ;;  %4671 = vmatprep.mubr.msk.bf16.mxu1 %vm447_vm1, %v701_v1  ;;  %v692_v57 = vadd.f32 %v5792_v34, %v672_v46  ;;  %v654_v39 = vmul.f32 %v5020_v27, %v5746_v41 }
 0x325   :  { %v655_v7 = vmul.f32 %v5022_v20, %v5753_v50  ;;  %4718 = vmatpush3.bf16.msra.mxu1 %v5438_v3  ;;  %v693_v56 = vadd.f32 %v5792_v34, %v673_v30 }
 0x326   :  { %v702_v2 = vpack.c.bf16 %v692_v57, %v691_v53  ;;  %v674_v33 = vmul.f32 %v5784_v24, %v654_v39  ;;  %4719 = vmatprep.subr.bf16.mxu1 %v5449_v5  ;;  %v4974_v53 = vld [vmem:[%s8638_s3 + $0x18] sm:$0xff]  }
 0x327   :  { %v5024_v37 = vpop.eup %5023  ;;  %v675_v42 = vmul.f32 %v5784_v24, %v655_v7 }
 0x328   :  { %4672 = vmatmul.mubr.msk.bf16.gmra.mrb[24].mxu1 %vm447_vm1, %v702_v2  ;;  %v694_v43 = vadd.f32 %v5792_v34, %v674_v33  ;;  %v656_v41 = vmul.f32 %v5024_v37, %v5760_v16  ;;  %v5862_v16 = vld [vmem:[%s8637_s2 + $0x40] sm:$0xff]  }
 0x329   :  { %4720 = vmatpush3.bf16.msra.mxu1 %v5449_v5  ;;  %v695_v49 = vadd.f32 %v5792_v34, %v675_v42  ;;  %v4966_v5 = vld [vmem:[%s8637_s2 + $0x48] sm:$0xff]  }
 0x32a   :  { %v703_v50 = vpack.c.bf16 %v694_v43, %v693_v56  ;;  %v676_v3 = vmul.f32 %v5784_v24, %v656_v41  ;;  %4721 = vmatprep.subr.bf16.mxu1 %v5455_v6  ;;  %v4969_v24 = vld [vmem:[%s8637_s2 + $0x60] sm:$0xff]  }
 0x32c   :  { %4675 = vmatprep.mubr.msk.bf16.mxu1 %vm447_vm1, %v703_v50  ;;  %v696_v36 = vadd.f32 %v5792_v34, %v676_v3  ;;  %v4971_v34 = vld [vmem:[%s8637_s2 + $0x70] sm:$0xff]  }
 0x32d   :  { %4722 = vmatpush3.bf16.msra.mxu1 %v5455_v6  ;;  %v4967_v6 = vld [vmem:[%s8637_s2 + $0x50] sm:$0xff]  }
 0x32e   :  { %v704_v58 = vpack.c.bf16 %v696_v36, %v695_v49  ;;  %4723 = vmatprep.subr.bf16.mxu1 %v5464_v8 }
 0x330   :  { %4676 = vmatmul.mubr.msk.bf16.gmra.mrb[28].mxu1 %vm447_vm1, %v704_v58 }
 0x331   :  { %4724 = vmatpush3.bf16.msra.mxu1 %v5464_v8  ;;  %4727 = vmatprep.mubr.bf16.mxu1 %v5862_v16  ;;  %v4968_v8 = vld [vmem:[%s8637_s2 + $0x58] sm:$0xff]  }
 0x332   :  { %4725 = vmatprep.subr.bf16.mxu1 %v5471_v9 }
 0x335   :  { %4726 = vmatpush3.bf16.msra.mxu1 %v5471_v9  ;;  %v4970_v9 = vld [vmem:[%s8637_s2 + $0x68] sm:$0xff]  }
 0x338   :  { %4728 = vmatmul.mubr.bf16.vlgmr.msra.gmra.mrb[32].mxu1 %v4966_v5 }
 0x339   :  { %4731 = vmatprep.mubr.bf16.mxu1 %v4967_v6 }
 0x340   :  { %4732 = vmatmul.mubr.bf16.gmra.mrb[36].mxu1 %v4968_v8 }
 0x341   :  { %4735 = vmatprep.mubr.bf16.mxu1 %v4969_v24 }
 0x348   :  { %4736 = vmatmul.mubr.bf16.gmra.mrb[40].mxu1 %v4970_v9 }
 0x349   :  { %4739 = vmatprep.mubr.bf16.mxu1 %v4971_v34 }
 0x350   :  { %4740 = vmatmul.mubr.bf16.gmra.mrb[44].mxu1 %v4972_v60 }
 0x3eb   :  { %v4665_v29 = vpop.f32.mrb[16].mxu1 }
 0x3ec   :  { %v787_v40 = vpop.f32.mrb[17].mxu1 }
 0x3ed   :  { %v4666_v38 = vpop.f32.mrb[18].mxu1 }
 0x3ee   :  { %v851_v61 = vpack.c.bf16 %v4666_v38, %v4665_v29  ;;  %v790_v17 = vpop.f32.mrb[19].mxu1 }
 0x3ef   :  { %v850_v19 = vpack.c.bf16 %v790_v17, %v787_v40 }
 0x3f1   :  { %4679 = vmatprep.subr.bf16.mxu0 %v850_v19 }
 0x3f2   :  { %4680 = vmatpush3.bf16.msra.mxu0 %v850_v19 }
 0x3f3   :  { %v4669_v45 = vpop.f32.mrb[20].mxu1  ;;  %4681 = vmatprep.subr.bf16.mxu0 %v851_v61 }
 0x3f4   :  { %v803_v26 = vpop.f32.mrb[21].mxu1 }
 0x3f5   :  { %v4670_v21 = vpop.f32.mrb[22].mxu1 }
 0x3f6   :  { %v853_v48 = vpack.c.bf16 %v4670_v21, %v4669_v45  ;;  %v806_v52 = vpop.f32.mrb[23].mxu1  ;;  %4682 = vmatpush3.bf16.msra.mxu0 %v851_v61  ;;  %v5950_v45 = vld [vmem:[%s8639_s5 + $0x4] sm:$0x7] }
 0x3f7   :  { %v852_v47 = vpack.c.bf16 %v806_v52, %v803_v26  ;;  %v5954_v26 = vrot.slane %v5950_v45, %v5531_v44 }
 0x3f9   :  { %4683 = vmatprep.subr.bf16.mxu0 %v852_v47 }
 0x3fa   :  { %4684 = vmatpush3.bf16.msra.mxu0 %v852_v47 }
 0x3fb   :  { %v4673_v23 = vpop.f32.mrb[24].mxu1  ;;  %4685 = vmatprep.subr.bf16.mxu0 %v853_v48 }
 0x3fc   :  { %v819_v54 = vpop.f32.mrb[25].mxu1 }
 0x3fd   :  { %v4674_v62 = vpop.f32.mrb[26].mxu1 }
 0x3fe   :  { %v855_v55 = vpack.c.bf16 %v4674_v62, %v4673_v23  ;;  %v822_v0 = vpop.f32.mrb[27].mxu1  ;;  %4686 = vmatpush3.bf16.msra.mxu0 %v853_v48 }
 0x3ff   :  { %v854_v4 = vpack.c.bf16 %v822_v0, %v819_v54 }
 0x401   :  { %4687 = vmatprep.subr.bf16.mxu0 %v854_v4 }
 0x402   :  { %4688 = vmatpush3.bf16.msra.mxu0 %v854_v4 }
 0x403   :  { %v4677_v22 = vpop.f32.mrb[28].mxu1  ;;  %4689 = vmatprep.subr.bf16.mxu0 %v855_v55 }
 0x404   :  { %v835_v28 = vpop.f32.mrb[29].mxu1 }
 0x405   :  { %v4678_v51 = vpop.f32.mrb[30].mxu1 }
 0x406   :  { %v857_v18 = vpack.c.bf16 %v4678_v51, %v4677_v22  ;;  %v838_v25 = vpop.f32.mrb[31].mxu1  ;;  %4690 = vmatpush3.bf16.msra.mxu0 %v855_v55 }
 0x407   :  { %v856_v32 = vpack.c.bf16 %v838_v25, %v835_v28 }
 0x409   :  { %4691 = vmatprep.subr.bf16.mxu0 %v856_v32 }
 0x40a   :  { %4692 = vmatpush3.bf16.msra.mxu0 %v856_v32 }
 0x40b   :  { %4693 = vmatprep.subr.bf16.mxu0 %v857_v18  ;;  %v4729_v59 = vpop.f32.mrb[32].mxu1 }
 0x40c   :  { %v1341_v1 = vpop.f32.mrb[33].mxu1 }
 0x40d   :  { %v4730_v46 = vpop.f32.mrb[34].mxu1 }
 0x40e   :  { %4694 = vmatpush3.bf16.msra.mxu0 %v857_v18  ;;  %v1405_v27 = vpack.c.bf16 %v4730_v46, %v4729_v59  ;;  %v1344_v20 = vpop.f32.mrb[35].mxu1 }
 0x40f   :  { %4743 = vmatprep.subr.bf16.mxu0 %v4973_v63  ;;  %v1404_v57 = vpack.c.bf16 %v1344_v20, %v1341_v1 }
 0x411   :  { %4696 = vmatmul.mubr.bf16.vlgmr.msra.gmra.mrb[16].mxu0 %v5480_v10 }
 0x412   :  { %4744 = vmatpush3.bf16.msra.mxu0 %v4973_v63  ;;  %4699 = vmatprep.mubr.bf16.mxu0 %v5486_v11 }
 0x413   :  { %4745 = vmatprep.subr.bf16.mxu0 %v4974_v53  ;;  %v4733_v39 = vpop.f32.mrb[36].mxu1 }
 0x414   :  { %v1357_v30 = vpop.f32.mrb[37].mxu1 }
 0x415   :  { %v4734_v7 = vpop.f32.mrb[38].mxu1 }
 0x416   :  { %4746 = vmatpush3.bf16.msra.mxu0 %v4974_v53  ;;  %v1407_v2 = vpack.c.bf16 %v4734_v7, %v4733_v39  ;;  %v1360_v33 = vpop.f32.mrb[39].mxu1 }
 0x417   :  { %v1406_v37 = vpack.c.bf16 %v1360_v33, %v1357_v30 }
 0x419   :  { %4700 = vmatmul.mubr.bf16.gmra.mrb[20].mxu0 %v5493_v12  ;;  %v5345_v12 = vld [vmem:[%s8637_s2 + $0x38] sm:$0xff]  }
 0x41a   :  { %4703 = vmatprep.mubr.bf16.mxu0 %v5498_v13 }
 0x41b   :  { %v4737_v56 = vpop.f32.mrb[40].mxu1 }
 0x41c   :  { %v1373_v43 = vpop.f32.mrb[41].mxu1 }
 0x41d   :  { %v4738_v41 = vpop.f32.mrb[42].mxu1 }
 0x41e   :  { %v1409_v42 = vpack.c.bf16 %v4738_v41, %v4737_v56  ;;  %v1376_v10 = vpop.f32.mrb[43].mxu1 }
 0x41f   :  { %v1408_v50 = vpack.c.bf16 %v1376_v10, %v1373_v43 }
 0x421   :  { %4704 = vmatmul.mubr.bf16.gmra.mrb[24].mxu0 %v5505_v14 }
 0x422   :  { %4707 = vmatprep.mubr.bf16.mxu0 %v5510_v15 }
 0x423   :  { %v4741_v11 = vpop.f32.mrb[44].mxu1 }
 0x424   :  { %v1389_v3 = vpop.f32.mrb[45].mxu1 }
 0x425   :  { %v4742_v49 = vpop.f32.mrb[46].mxu1 }
 0x426   :  { %v1411_v36 = vpack.c.bf16 %v4742_v49, %v4741_v11  ;;  %v1392_v58 = vpop.f32.mrb[47].mxu1 }
 0x427   :  { %v1410_v5 = vpack.c.bf16 %v1392_v58, %v1389_v3 }
 0x429   :  { %4708 = vmatmul.mubr.bf16.gmra.mrb[28].mxu0 %v5345_v12 }
 0x42a   :  { %4747 = vmatprep.mubr.msk.bf16.mxu0 %vm309_vm0, %v1404_v57 }
 0x431   :  { %4748 = vmatmul.mubr.msk.bf16.vlgmr.msra.gmra.mrb[32].mxu0 %vm309_vm0, %v1405_v27 }
 0x432   :  { %4751 = vmatprep.mubr.msk.bf16.mxu0 %vm309_vm0, %v1406_v37 }
 0x439   :  { %4752 = vmatmul.mubr.msk.bf16.gmra.mrb[36].mxu0 %vm309_vm0, %v1407_v2 }
 0x43a   :  { %4755 = vmatprep.mubr.msk.bf16.mxu0 %vm309_vm0, %v1408_v50 }
 0x441   :  { %4756 = vmatmul.mubr.msk.bf16.gmra.mrb[40].mxu0 %vm309_vm0, %v1409_v42 }
 0x442   :  { %4759 = vmatprep.mubr.msk.bf16.mxu0 %vm309_vm0, %v1410_v5 }
 0x449   :  { %4760 = vmatmul.mubr.msk.bf16.gmra.mrb[44].mxu0 %vm309_vm0, %v1411_v36 }
 0x44a   :  { %4803 = vmatprep.mubr.bf16.mxu0 %v5862_v16 }
 0x4e4   :  { %v5915_v13 = vpop.f32.mrb[16].mxu0 }
 0x4e5   :  { %v5917_v14 = vpop.f32.mrb[17].mxu0 }
 0x4e6   :  { %v5919_v15 = vpop.f32.mrb[18].mxu0 }
 0x4e7   :  { %v5921_v6 = vpop.f32.mrb[19].mxu0 }
 0x4ec   :  { %v5923_v8 = vpop.f32.mrb[20].mxu0 }
 0x4ed   :  { %v5925_v24 = vpop.f32.mrb[21].mxu0 }
 0x4ee   :  { %v5927_v9 = vpop.f32.mrb[22].mxu0 }
 0x4ef   :  { %v5929_v34 = vpop.f32.mrb[23].mxu0 }
 0x4f4   :  { %v5931_v60 = vpop.f32.mrb[24].mxu0 }
 0x4f5   :  { %v5933_v29 = vpop.f32.mrb[25].mxu0 }
 0x4f6   :  { %v5935_v16 = vpop.f32.mrb[26].mxu0 }
 0x4f7   :  { %v5937_v40 = vpop.f32.mrb[27].mxu0 }
 0x4fc   :  { %v5939_v38 = vpop.f32.mrb[28].mxu0 }
 0x4fd   :  { %v5941_v61 = vpop.f32.mrb[29].mxu0 }
 0x4fe   :  { %v5943_v17 = vpop.f32.mrb[30].mxu0 }
 0x4ff   :  { %v5945_v19 = vpop.f32.mrb[31].mxu0 }
 0x504   :  { %v4749_v21 = vpop.f32.mrb[32].mxu0 }
 0x505   :  { %v1486_v48 = vpop.f32.mrb[33].mxu0  ;;  %v5957_v52 = vadd.f32 %v4749_v21, %v5954_v26 }
 0x506   :  { %v5960_v47 = vadd.f32 %v1486_v48, %v5954_v26  ;;  %v4750_v23 = vpop.f32.mrb[34].mxu0 }
 0x507   :  { %v1489_v54 = vpop.f32.mrb[35].mxu0  ;;  %v5964_v55 = vadd.f32 %v4750_v23, %v5954_v26  ;;  %v1551_v4 = vmax.f32 %v5957_v52, 0.0 }
 0x508   :  { %v1549_v62 = vmax.f32 %v5960_v47, 0.0  ;;  %v5967_v0 = vadd.f32 %v1489_v54, %v5954_v26 }
 0x509   :  { %v1552_v51 = vmax.f32 %v5964_v55, 0.0  ;;  %v1571_v46 = vsel %vm447_vm1, %v1551_v4, 0.0 }
 0x50a   :  { %v1550_v22 = vmax.f32 %v5967_v0, 0.0  ;;  %v1565_v28 = vsel %vm447_vm1, %v1549_v62, 0.0 }
 0x50b   :  { %1566 = vadd.xlane.f32.xlu0 %v1565_v28  ;;  %v1574_v39 = vsel %vm447_vm1, %v1552_v51, 0.0 }
 0x50c   :  { %v4753_v18 = vpop.f32.mrb[36].mxu0  ;;  %v1568_v25 = vsel %vm447_vm1, %v1550_v22, 0.0 }
 0x50d   :  { %v1502_v32 = vpop.f32.mrb[37].mxu0  ;;  %1569 = vadd.xlane.f32.xlu1 %v1568_v25  ;;  %v5979_v63 = vadd.f32 %v4753_v18, %v5954_v26 }
 0x50e   :  { %v5982_v59 = vadd.f32 %v1502_v32, %v5954_v26  ;;  %v4754_v1 = vpop.f32.mrb[38].mxu0 }
 0x50f   :  { %v1505_v27 = vpop.f32.mrb[39].mxu0  ;;  %1572 = vadd.xlane.f32.xlu0 %v1571_v46  ;;  %v5989_v53 = vadd.f32 %v4754_v1, %v5954_v26  ;;  %v1555_v30 = vmax.f32 %v5979_v63, 0.0 }
 0x510   :  { %v1553_v20 = vmax.f32 %v5982_v59, 0.0  ;;  %v5992_v57 = vadd.f32 %v1505_v27, %v5954_v26 }
 0x511   :  { %1575 = vadd.xlane.f32.xlu1 %v1574_v39  ;;  %v1556_v33 = vmax.f32 %v5989_v53, 0.0  ;;  %v1583_v50 = vsel %vm447_vm1, %v1555_v30, 0.0 }
 0x512   :  { %v1554_v7 = vmax.f32 %v5992_v57, 0.0  ;;  %v1577_v2 = vsel %vm447_vm1, %v1553_v20, 0.0 }
 0x513   :  { %1578 = vadd.xlane.f32.xlu0 %v1577_v2  ;;  %v1586_v58 = vsel %vm447_vm1, %v1556_v33, 0.0 }
 0x514   :  { %v4757_v37 = vpop.f32.mrb[40].mxu0  ;;  %v1580_v56 = vsel %vm447_vm1, %v1554_v7, 0.0 }
 0x515   :  { %v1518_v43 = vpop.f32.mrb[41].mxu0  ;;  %1581 = vadd.xlane.f32.xlu1 %v1580_v56  ;;  %v6007_v41 = vadd.f32 %v4757_v37, %v5954_v26 }
 0x516   :  { %v6010_v42 = vadd.f32 %v1518_v43, %v5954_v26  ;;  %v4758_v10 = vpop.f32.mrb[42].mxu0 }
 0x517   :  { %v1521_v11 = vpop.f32.mrb[43].mxu0  ;;  %1584 = vadd.xlane.f32.xlu0 %v1583_v50  ;;  %v6017_v49 = vadd.f32 %v4758_v10, %v5954_v26  ;;  %v1559_v5 = vmax.f32 %v6007_v41, 0.0 }
 0x518   :  { %v1557_v3 = vmax.f32 %v6010_v42, 0.0  ;;  %v6020_v36 = vadd.f32 %v1521_v11, %v5954_v26 }
 0x519   :  { %1587 = vadd.xlane.f32.xlu1 %v1586_v58  ;;  %v1560_v48 = vmax.f32 %v6017_v49, 0.0  ;;  %v1595_v1 = vsel %vm447_vm1, %v1559_v5, 0.0 }
 0x51a   :  { %v1558_v12 = vmax.f32 %v6020_v36, 0.0  ;;  %v1589_v21 = vsel %vm447_vm1, %v1557_v3, 0.0 }
 0x51b   :  { %1590 = vadd.xlane.f32.xlu0 %v1589_v21  ;;  %v1598_v37 = vsel %vm447_vm1, %v1560_v48, 0.0  ;;  %v4975_v21 = vld [vmem:[%s8640_s4 + $0x20] sm:$0xff]  }
 0x51c   :  { %v4761_v23 = vpop.f32.mrb[44].mxu0  ;;  %v1592_v54 = vsel %vm447_vm1, %v1558_v12, 0.0  ;;  %4763 = vmatprep.subr.bf16.mxu1 %v4975_v21 }
 0x51d   :  { %v1534_v28 = vpop.f32.mrb[45].mxu0  ;;  %1593 = vadd.xlane.f32.xlu1 %v1592_v54  ;;  %v6035_v18 = vadd.f32 %v4761_v23, %v5954_v26  ;;  %4764 = vmatpush3.bf16.msra.mxu1 %v4975_v21 }
 0x51e   :  { %v6038_v25 = vadd.f32 %v1534_v28, %v5954_v26  ;;  %v4762_v32 = vpop.f32.mrb[46].mxu0 }
 0x51f   :  { %v1537_v46 = vpop.f32.mrb[47].mxu0  ;;  %1596 = vadd.xlane.f32.xlu0 %v1595_v1  ;;  %v6045_v39 = vadd.f32 %v4762_v32, %v5954_v26  ;;  %v1563_v56 = vmax.f32 %v6035_v18, 0.0 }
 0x520   :  { %v1561_v27 = vmax.f32 %v6038_v25, 0.0  ;;  %v6048_v2 = vadd.f32 %v1537_v46, %v5954_v26 }
 0x521   :  { %1599 = vadd.xlane.f32.xlu1 %v1598_v37  ;;  %v1564_v50 = vmax.f32 %v6045_v39, 0.0  ;;  %v1607_v11 = vsel %vm447_vm1, %v1563_v56, 0.0  ;;  %v4976_v39 = vld [vmem:[%s8640_s4 + $0x28] sm:$0xff]  }
 0x522   :  { %v1562_v43 = vmax.f32 %v6048_v2, 0.0  ;;  %v1601_v10 = vsel %vm447_vm1, %v1561_v27, 0.0  ;;  %4765 = vmatprep.subr.bf16.mxu1 %v4976_v39 }
 0x523   :  { %1602 = vadd.xlane.f32.xlu0 %v1601_v10  ;;  %v1610_v58 = vsel %vm447_vm1, %v1564_v50, 0.0  ;;  %4766 = vmatpush3.bf16.msra.mxu1 %v4976_v39 }
 0x524   :  { %v1604_v26 = vsel %vm447_vm1, %v1562_v43, 0.0 }
 0x525   :  { %1605 = vadd.xlane.f32.xlu1 %v1604_v26 }
 0x527   :  { %1608 = vadd.xlane.f32.xlu0 %v1607_v11 }
 0x529   :  { %1611 = vadd.xlane.f32.xlu1 %v1610_v58 }
 0x598   :  { %v1567_v23 = vpop.xlane.xlu0 %1566 }
 0x599   :  { %v1613_v54 = vmul.f32 0.015625, %v1567_v23 }
 0x59a   :  { %v1570_v28 = vpop.xlane.xlu1 %1569 }
 0x59b   :  { %v6073_v32 = vsub.f32 %v1549_v62, %v1613_v54  ;;  %v1614_v1 = vmul.f32 0.015625, %v1570_v28 }
 0x59c   :  { %v1573_v46 = vpop.xlane.xlu0 %1572 }
 0x59d   :  { %v6077_v37 = vsub.f32 %v1550_v22, %v1614_v1  ;;  %v1615_v10 = vmul.f32 0.015625, %v1573_v46  ;;  %v1645_v26 = vmul.f32 %v6073_v32, %v6073_v32 }
 0x59e   :  { %v1576_v11 = vpop.xlane.xlu1 %1575 }
 0x59f   :  { %v6083_v58 = vsub.f32 %v1551_v4, %v1615_v10  ;;  %v1616_v21 = vmul.f32 0.015625, %v1576_v11  ;;  %v1661_v47 = vsel %vm447_vm1, %v1645_v26, 0.0  ;;  %v1646_v62 = vmul.f32 %v6077_v37, %v6077_v37 }
 0x5a0   :  { %1662 = vadd.xlane.f32.xlu0 %v1661_v47  ;;  %v1579_v23 = vpop.xlane.xlu0 %1578 }
 0x5a1   :  { %v6090_v0 = vsub.f32 %v1552_v51, %v1616_v21  ;;  %v1617_v22 = vmul.f32 0.015625, %v1579_v23  ;;  %v1664_v54 = vsel %vm447_vm1, %v1646_v62, 0.0  ;;  %v1647_v52 = vmul.f32 %v6083_v58, %v6083_v58 }
 0x5a2   :  { %1665 = vadd.xlane.f32.xlu1 %v1664_v54  ;;  %v1582_v4 = vpop.xlane.xlu1 %1581 }
 0x5a3   :  { %v6097_v28 = vsub.f32 %v1553_v20, %v1617_v22  ;;  %v1618_v1 = vmul.f32 0.015625, %v1582_v4  ;;  %v1667_v46 = vsel %vm447_vm1, %v1647_v52, 0.0  ;;  %v1648_v55 = vmul.f32 %v6090_v0, %v6090_v0 }
 0x5a4   :  { %1668 = vadd.xlane.f32.xlu0 %v1667_v46  ;;  %v1585_v51 = vpop.xlane.xlu0 %1584 }
 0x5a5   :  { %v6104_v10 = vsub.f32 %v1554_v7, %v1618_v1  ;;  %v1619_v26 = vmul.f32 0.015625, %v1585_v51  ;;  %v1670_v11 = vsel %vm447_vm1, %v1648_v55, 0.0  ;;  %v1649_v59 = vmul.f32 %v6097_v28, %v6097_v28 }
 0x5a6   :  { %1671 = vadd.xlane.f32.xlu1 %v1670_v11  ;;  %v1588_v20 = vpop.xlane.xlu1 %1587 }
 0x5a7   :  { %v6111_v21 = vsub.f32 %v1555_v30, %v1619_v26  ;;  %v1620_v47 = vmul.f32 0.015625, %v1588_v20  ;;  %v1673_v62 = vsel %vm447_vm1, %v1649_v59, 0.0  ;;  %v1650_v57 = vmul.f32 %v6104_v10, %v6104_v10 }
 0x5a8   :  { %1674 = vadd.xlane.f32.xlu0 %v1673_v62  ;;  %v1591_v7 = vpop.xlane.xlu0 %1590 }
 0x5a9   :  { %v6118_v23 = vsub.f32 %v1556_v33, %v1620_v47  ;;  %v1621_v22 = vmul.f32 0.015625, %v1591_v7  ;;  %v1676_v54 = vsel %vm447_vm1, %v1650_v57, 0.0  ;;  %v1651_v63 = vmul.f32 %v6111_v21, %v6111_v21 }
 0x5aa   :  { %1677 = vadd.xlane.f32.xlu1 %v1676_v54  ;;  %v1594_v30 = vpop.xlane.xlu1 %1593 }
 0x5ab   :  { %v6125_v52 = vsub.f32 %v1557_v3, %v1621_v22  ;;  %v1622_v4 = vmul.f32 0.015625, %v1594_v30  ;;  %v1679_v1 = vsel %vm447_vm1, %v1651_v63, 0.0  ;;  %v1652_v53 = vmul.f32 %v6118_v23, %v6118_v23 }
 0x5ac   :  { %1680 = vadd.xlane.f32.xlu0 %v1679_v1  ;;  %v1597_v33 = vpop.xlane.xlu0 %1596 }
 0x5ad   :  { %v6132_v46 = vsub.f32 %v1558_v12, %v1622_v4  ;;  %v1623_v55 = vmul.f32 0.015625, %v1597_v33  ;;  %v1682_v51 = vsel %vm447_vm1, %v1652_v53, 0.0  ;;  %v1653_v42 = vmul.f32 %v6125_v52, %v6125_v52 }
 0x5ae   :  { %1683 = vadd.xlane.f32.xlu1 %v1682_v51  ;;  %v1600_v3 = vpop.xlane.xlu1 %1599 }
 0x5af   :  { %v6139_v26 = vsub.f32 %v1559_v5, %v1623_v55  ;;  %v1624_v11 = vmul.f32 0.015625, %v1600_v3  ;;  %v1685_v59 = vsel %vm447_vm1, %v1653_v42, 0.0  ;;  %v1654_v36 = vmul.f32 %v6132_v46, %v6132_v46  ;;  %v4978_v42 = vld [vmem:[%s8640_s4 + $0x38] sm:$0xff]   ;;  %v6195_v3 = vld [vmem:[%s8636_s0] sm:$0xff]  }
 0x5b0   :  { %1686 = vadd.xlane.f32.xlu0 %v1685_v59  ;;  %v1603_v12 = vpop.xlane.xlu0 %1602 }
 0x5b1   :  { %v6146_v20 = vsub.f32 %v1560_v48, %v1624_v11  ;;  %v1625_v47 = vmul.f32 0.015625, %v1603_v12  ;;  %v1688_v62 = vsel %vm447_vm1, %v1654_v36, 0.0  ;;  %v1655_v41 = vmul.f32 %v6139_v26, %v6139_v26 }
 0x5b2   :  { %1689 = vadd.xlane.f32.xlu1 %v1688_v62  ;;  %v1606_v5 = vpop.xlane.xlu1 %1605 }
 0x5b3   :  { %v6153_v57 = vsub.f32 %v1561_v27, %v1625_v47  ;;  %v1626_v7 = vmul.f32 0.015625, %v1606_v5  ;;  %v1691_v22 = vsel %vm447_vm1, %v1655_v41, 0.0  ;;  %v1656_v49 = vmul.f32 %v6146_v20, %v6146_v20 }
 0x5b4   :  { %1692 = vadd.xlane.f32.xlu0 %v1691_v22  ;;  %v1609_v48 = vpop.xlane.xlu0 %1608 }
 0x5b5   :  { %v6160_v54 = vsub.f32 %v1562_v43, %v1626_v7  ;;  %v1627_v63 = vmul.f32 0.015625, %v1609_v48  ;;  %v1694_v30 = vsel %vm447_vm1, %v1656_v49, 0.0  ;;  %v1657_v25 = vmul.f32 %v6153_v57, %v6153_v57 }
 0x5b6   :  { %1695 = vadd.xlane.f32.xlu1 %v1694_v30  ;;  %v1612_v27 = vpop.xlane.xlu1 %1611 }
 0x5b7   :  { %v6167_v4 = vsub.f32 %v1563_v56, %v1627_v63  ;;  %v1628_v1 = vmul.f32 0.015625, %v1612_v27  ;;  %v1697_v53 = vsel %vm447_vm1, %v1657_v25, 0.0  ;;  %v1658_v2 = vmul.f32 %v6160_v54, %v6160_v54 }
 0x5b8   :  { %1698 = vadd.xlane.f32.xlu0 %v1697_v53 }
 0x5b9   :  { %v6174_v43 = vsub.f32 %v1564_v50, %v1628_v1  ;;  %v1700_v33 = vsel %vm447_vm1, %v1658_v2, 0.0  ;;  %v1659_v55 = vmul.f32 %v6167_v4, %v6167_v4  ;;  %v4977_v50 = vld [vmem:[%s8640_s4 + $0x30] sm:$0xff]  }
 0x5ba   :  { %1701 = vadd.xlane.f32.xlu1 %v1700_v33  ;;  %4767 = vmatprep.subr.bf16.mxu1 %v4977_v50 }
 0x5bb   :  { %v1703_v18 = vsel %vm447_vm1, %v1659_v55, 0.0  ;;  %v1660_v56 = vmul.f32 %v6174_v43, %v6174_v43  ;;  %4768 = vmatpush3.bf16.msra.mxu1 %v4977_v50  ;;  %v6200_v55 = vrot.slane %v5950_v45, %v5780_v35 }
 0x5bc   :  { %1704 = vadd.xlane.f32.xlu0 %v1703_v18  ;;  %4769 = vmatprep.subr.bf16.mxu1 %v4978_v42 }
 0x5bd   :  { %v1706_v51 = vsel %vm447_vm1, %v1660_v56, 0.0 }
 0x5be   :  { %1707 = vadd.xlane.f32.xlu1 %v1706_v51 }
 0x5bf   :  { %4770 = vmatpush3.bf16.msra.mxu1 %v4978_v42 }
 0x5c0   :  { %4819 = vmatprep.subr.bf16.mxu1 %v6195_v3 }
 0x62d   :  { %v1663_v11 = vpop.xlane.xlu0 %1662 }
 0x62e   :  { %v1709_v59 = vmul.f32 0.015625, %v1663_v11 }
 0x62f   :  { %v1666_v36 = vpop.xlane.xlu1 %1665 }
 0x630   :  { %v1725_v12 = vadd.f32 1e-05, %v1709_v59  ;;  %v1710_v47 = vmul.f32 0.015625, %v1666_v36 }
 0x631   :  { %v1669_v62 = vpop.xlane.xlu0 %1668 }
 0x632   :  { %5025 = vrsqrt.f32 %v1725_v12  ;;  %v1726_v41 = vadd.f32 1e-05, %v1710_v47  ;;  %v1711_v5 = vmul.f32 0.015625, %v1669_v62  ;;  %v6205_v12 = vrot.slane %v5950_v45, %v5787_v31 }
 0x633   :  { %v1672_v7 = vpop.xlane.xlu1 %1671 }
 0x634   :  { %5027 = vrsqrt.f32 %v1726_v41  ;;  %v1727_v22 = vadd.f32 1e-05, %v1711_v5  ;;  %v1712_v49 = vmul.f32 0.015625, %v1672_v7 }
 0x635   :  { %v1675_v48 = vpop.xlane.xlu0 %1674 }
 0x636   :  { %5029 = vrsqrt.f32 %v1727_v22  ;;  %v1728_v63 = vadd.f32 1e-05, %v1712_v49  ;;  %v1713_v30 = vmul.f32 0.015625, %v1675_v48 }
 0x637   :  { %v1678_v25 = vpop.xlane.xlu1 %1677 }
 0x638   :  { %5031 = vrsqrt.f32 %v1728_v63  ;;  %v1729_v27 = vadd.f32 1e-05, %v1713_v30  ;;  %v1714_v1 = vmul.f32 0.015625, %v1678_v25 }
 0x639   :  { %v1681_v53 = vpop.xlane.xlu0 %1680 }
 0x63a   :  { %5033 = vrsqrt.f32 %v1729_v27  ;;  %v1730_v2 = vadd.f32 1e-05, %v1714_v1  ;;  %v1715_v33 = vmul.f32 0.015625, %v1681_v53 }
 0x63b   :  { %v1684_v18 = vpop.xlane.xlu1 %1683 }
 0x63c   :  { %v5026_v56 = vpop.eup %5025  ;;  %5035 = vrsqrt.f32 %v1730_v2  ;;  %v1731_v51 = vadd.f32 1e-05, %v1715_v33  ;;  %v1716_v39 = vmul.f32 0.015625, %v1684_v18 }
 0x63d   :  { %v1687_v50 = vpop.xlane.xlu0 %1686  ;;  %v1757_v42 = vmul.f32 %v5026_v56, %v6073_v32 }
 0x63e   :  { %v5028_v11 = vpop.eup %5027  ;;  %5037 = vrsqrt.f32 %v1731_v51  ;;  %v1732_v59 = vadd.f32 1e-05, %v1716_v39  ;;  %v1717_v36 = vmul.f32 0.015625, %v1687_v50 }
 0x63f   :  { %v1690_v47 = vpop.xlane.xlu1 %1689  ;;  %v1758_v62 = vmul.f32 %v5028_v11, %v6077_v37  ;;  %v1777_v41 = vmul.f32 %v6200_v55, %v1757_v42 }
 0x640   :  { %v5030_v5 = vpop.eup %5029  ;;  %5039 = vrsqrt.f32 %v1732_v59  ;;  %v1733_v7 = vadd.f32 1e-05, %v1717_v36  ;;  %v1718_v22 = vmul.f32 0.015625, %v1690_v47 }
 0x641   :  { %v1759_v49 = vmul.f32 %v5030_v5, %v6083_v58  ;;  %v1693_v32 = vpop.xlane.xlu0 %1692  ;;  %v1778_v48 = vmul.f32 %v6200_v55, %v1758_v62  ;;  %v1797_v1 = vadd.f32 %v6205_v12, %v1777_v41 }
 0x642   :  { %v5032_v63 = vpop.eup %5031  ;;  %5041 = vrsqrt.f32 %v1733_v7  ;;  %v1734_v30 = vadd.f32 1e-05, %v1718_v22  ;;  %v1719_v25 = vmul.f32 0.015625, %v1693_v32 }
 0x643   :  { %v1779_v45 = vmul.f32 %v6200_v55, %v1759_v49  ;;  %v1760_v27 = vmul.f32 %v5032_v63, %v6090_v0  ;;  %v1696_v37 = vpop.xlane.xlu1 %1695  ;;  %v1798_v53 = vadd.f32 %v6205_v12, %v1778_v48 }
 0x644   :  { %v5034_v2 = vpop.eup %5033  ;;  %5043 = vrsqrt.f32 %v1734_v30  ;;  %v1735_v33 = vadd.f32 1e-05, %v1719_v25  ;;  %v1720_v58 = vmul.f32 0.015625, %v1696_v37 }
 0x645   :  { %v1780_v18 = vmul.f32 %v6200_v55, %v1760_v27  ;;  %v1699_v56 = vpop.xlane.xlu0 %1698  ;;  %v1813_v51 = vpack.c.bf16 %v1798_v53, %v1797_v1  ;;  %v1761_v39 = vmul.f32 %v5034_v2, %v6097_v28  ;;  %v1799_v0 = vadd.f32 %v6205_v12, %v1779_v45 }
 0x646   :  { %v5036_v50 = vpop.eup %5035  ;;  %5045 = vrsqrt.f32 %v1735_v33  ;;  %v1736_v42 = vadd.f32 1e-05, %v1720_v58  ;;  %v1721_v11 = vmul.f32 0.015625, %v1699_v56 }
 0x647   :  { %v1800_v59 = vadd.f32 %v6205_v12, %v1780_v18  ;;  %v1702_v36 = vpop.xlane.xlu1 %1701  ;;  %4771 = vmatprep.mubr.msk.bf16.mxu1 %vm447_vm1, %v1813_v51  ;;  %v1762_v47 = vmul.f32 %v5036_v50, %v6104_v10  ;;  %v1781_v62 = vmul.f32 %v6200_v55, %v1761_v39  ;;  %v5347_v18 = vld [vmem:[%s8636_s0 + $0x8] sm:$0xff]  }
 0x648   :  { %v5038_v41 = vpop.eup %5037  ;;  %5047 = vrsqrt.f32 %v1736_v42  ;;  %v1737_v5 = vadd.f32 1e-05, %v1721_v11  ;;  %v1722_v7 = vmul.f32 0.015625, %v1702_v36 }
 0x649   :  { %v1705_v28 = vpop.xlane.xlu0 %1704  ;;  %v1814_v22 = vpack.c.bf16 %v1800_v59, %v1799_v0  ;;  %v1782_v49 = vmul.f32 %v6200_v55, %v1762_v47  ;;  %v1763_v32 = vmul.f32 %v5038_v41, %v6111_v21  ;;  %v1801_v10 = vadd.f32 %v6205_v12, %v1781_v62  ;;  %v5348_v59 = vld [vmem:[%s8636_s0 + $0x10] sm:$0xff]  }
 0x64a   :  { %v5040_v48 = vpop.eup %5039  ;;  %5049 = vrsqrt.f32 %v1737_v5  ;;  %v1738_v63 = vadd.f32 1e-05, %v1722_v7  ;;  %v1723_v30 = vmul.f32 0.015625, %v1705_v28 }
 0x64b   :  { %v1708_v25 = vpop.xlane.xlu1 %1707  ;;  %4772 = vmatmul.mubr.msk.bf16.vlgmr.msra.gmra.mrb[48].mxu1 %vm447_vm1, %v1814_v22  ;;  %v1802_v45 = vadd.f32 %v6205_v12, %v1782_v49  ;;  %v1764_v27 = vmul.f32 %v5040_v48, %v6118_v23  ;;  %v1783_v37 = vmul.f32 %v6200_v55, %v1763_v32  ;;  %v5349_v22 = vld [vmem:[%s8636_s0 + $0x18] sm:$0xff]  }
 0x64c   :  { %v5042_v1 = vpop.eup %5041  ;;  %5051 = vrsqrt.f32 %v1738_v63  ;;  %v1739_v53 = vadd.f32 1e-05, %v1723_v30  ;;  %v1724_v2 = vmul.f32 0.015625, %v1708_v25  ;;  %4820 = vmatpush3.bf16.msra.mxu1 %v6195_v3 }
 0x64d   :  { %v1815_v21 = vpack.c.bf16 %v1802_v45, %v1801_v10  ;;  %v1784_v33 = vmul.f32 %v6200_v55, %v1764_v27  ;;  %v1765_v58 = vmul.f32 %v5042_v1, %v6125_v52  ;;  %4821 = vmatprep.subr.bf16.mxu1 %v5347_v18  ;;  %v1803_v51 = vadd.f32 %v6205_v12, %v1783_v37  ;;  %v5350_v45 = vld [vmem:[%s8636_s0 + $0x20] sm:$0xff]  }
 0x64e   :  { %v5044_v56 = vpop.eup %5043  ;;  %5053 = vrsqrt.f32 %v1739_v53  ;;  %v1740_v23 = vadd.f32 1e-05, %v1724_v2 }
 0x64f   :  { %4775 = vmatprep.mubr.msk.bf16.mxu1 %vm447_vm1, %v1815_v21  ;;  %v1804_v39 = vadd.f32 %v6205_v12, %v1784_v33  ;;  %v1766_v3 = vmul.f32 %v5044_v56, %v6132_v46  ;;  %v1785_v50 = vmul.f32 %v6200_v55, %v1765_v58  ;;  %v5351_v21 = vld [vmem:[%s8636_s0 + $0x28] sm:$0xff]  }
 0x650   :  { %v5046_v42 = vpop.eup %5045  ;;  %5055 = vrsqrt.f32 %v1740_v23  ;;  %4822 = vmatpush3.bf16.msra.mxu1 %v5347_v18  ;;  %v4980_v56 = vld [vmem:[%s8637_s2 + $0x88] sm:$0xff]   ;;  %v4981_v23 = vld [vmem:[%s8637_s2 + $0x90] sm:$0xff]  }
 0x651   :  { %v1816_v52 = vpack.c.bf16 %v1804_v39, %v1803_v51  ;;  %v1786_v11 = vmul.f32 %v6200_v55, %v1766_v3  ;;  %v1767_v0 = vmul.f32 %v5046_v42, %v6139_v26  ;;  %4823 = vmatprep.subr.bf16.mxu1 %v5348_v59  ;;  %v1805_v46 = vadd.f32 %v6205_v12, %v1785_v50  ;;  %v4982_v51 = vld [vmem:[%s8637_s2 + $0x98] sm:$0xff]   ;;  %v4983_v39 = vld [vmem:[%s8637_s2 + $0xa0] sm:$0xff]   ;;  %v4984_v3 = vld [vmem:[%s8637_s2 + $0xa8] sm:$0xff]  }
 0x652   :  { %v5048_v36 = vpop.eup %5047  ;;  %v4985_v50 = vld [vmem:[%s8637_s2 + $0xb0] sm:$0xff]   ;;  %v4986_v42 = vld [vmem:[%s8637_s2 + $0xb8] sm:$0xff]  }
 0x653   :  { %4776 = vmatmul.mubr.msk.bf16.gmra.mrb[52].mxu1 %vm447_vm1, %v1816_v52  ;;  %v1806_v47 = vadd.f32 %v6205_v12, %v1786_v11  ;;  %v1768_v62 = vmul.f32 %v5048_v36, %v6146_v20  ;;  %v1787_v41 = vmul.f32 %v6200_v55, %v1767_v0 }
 0x654   :  { %v5050_v5 = vpop.eup %5049  ;;  %4824 = vmatpush3.bf16.msra.mxu1 %v5348_v59 }
 0x655   :  { %v1817_v7 = vpack.c.bf16 %v1806_v47, %v1805_v46  ;;  %v1788_v26 = vmul.f32 %v6200_v55, %v1768_v62  ;;  %v1769_v28 = vmul.f32 %v5050_v5, %v6153_v57  ;;  %4825 = vmatprep.subr.bf16.mxu1 %v5349_v22  ;;  %v1807_v32 = vadd.f32 %v6205_v12, %v1787_v41 }
 0x656   :  { %v5052_v49 = vpop.eup %5051 }
 0x657   :  { %4779 = vmatprep.mubr.msk.bf16.mxu1 %vm447_vm1, %v1817_v7  ;;  %v1808_v20 = vadd.f32 %v6205_v12, %v1788_v26  ;;  %v1770_v48 = vmul.f32 %v5052_v49, %v6160_v54  ;;  %v1789_v63 = vmul.f32 %v6200_v55, %v1769_v28 }
 0x658   :  { %v5054_v30 = vpop.eup %5053  ;;  %4826 = vmatpush3.bf16.msra.mxu1 %v5349_v22 }
 0x659   :  { %v1818_v25 = vpack.c.bf16 %v1808_v20, %v1807_v32  ;;  %v1790_v57 = vmul.f32 %v6200_v55, %v1770_v48  ;;  %v1771_v10 = vmul.f32 %v5054_v30, %v6167_v4  ;;  %4827 = vmatprep.subr.bf16.mxu1 %v5350_v45  ;;  %v1809_v37 = vadd.f32 %v6205_v12, %v1789_v63 }
 0x65a   :  { %v5056_v27 = vpop.eup %5055 }
 0x65b   :  { %4780 = vmatmul.mubr.msk.bf16.gmra.mrb[56].mxu1 %vm447_vm1, %v1818_v25  ;;  %v1810_v54 = vadd.f32 %v6205_v12, %v1790_v57  ;;  %v1772_v1 = vmul.f32 %v5056_v27, %v6174_v43  ;;  %v1791_v53 = vmul.f32 %v6200_v55, %v1771_v10  ;;  %v6280_v43 = vld [vmem:[%s8637_s2 + $0x80] sm:$0xff]  }
 0x65c   :  { %4828 = vmatpush3.bf16.msra.mxu1 %v5350_v45  ;;  %v4987_v27 = vld [vmem:[%s8638_s3 + $0x20] sm:$0xff]  }
 0x65d   :  { %v1819_v2 = vpack.c.bf16 %v1810_v54, %v1809_v37  ;;  %v1792_v4 = vmul.f32 %v6200_v55, %v1772_v1  ;;  %4829 = vmatprep.subr.bf16.mxu1 %v5351_v21  ;;  %v1811_v33 = vadd.f32 %v6205_v12, %v1791_v53  ;;  %v5352_v55 = vld [vmem:[%s8636_s0 + $0x30] sm:$0xff]  }
 0x65f   :  { %4783 = vmatprep.mubr.msk.bf16.mxu1 %vm447_vm1, %v1819_v2  ;;  %v1812_v58 = vadd.f32 %v6205_v12, %v1792_v4  ;;  %v5353_v12 = vld [vmem:[%s8636_s0 + $0x38] sm:$0xff]   ;;  %v4988_v4 = vld [vmem:[%s8638_s3 + $0x28] sm:$0xff]  }
 0x660   :  { %4830 = vmatpush3.bf16.msra.mxu1 %v5351_v21 }
 0x661   :  { %v1820_v18 = vpack.c.bf16 %v1812_v58, %v1811_v33  ;;  %4831 = vmatprep.subr.bf16.mxu1 %v5352_v55  ;;  %v5354_v33 = vld [vmem:[%s8637_s2 + $0x48] sm:$0xff]   ;;  %v5355_v58 = vld [vmem:[%s8637_s2 + $0x50] sm:$0xff]  }
 0x663   :  { %4784 = vmatmul.mubr.msk.bf16.gmra.mrb[60].mxu1 %vm447_vm1, %v1820_v18 }
 0x664   :  { %4832 = vmatpush3.bf16.msra.mxu1 %v5352_v55  ;;  %4835 = vmatprep.mubr.bf16.mxu1 %v6280_v43 }
 0x665   :  { %4833 = vmatprep.subr.bf16.mxu1 %v5353_v12 }
 0x668   :  { %4834 = vmatpush3.bf16.msra.mxu1 %v5353_v12 }
 0x66b   :  { %4836 = vmatmul.mubr.bf16.vlgmr.msra.gmra.mrb[64].mxu1 %v4980_v56 }
 0x66c   :  { %4839 = vmatprep.mubr.bf16.mxu1 %v4981_v23 }
 0x673   :  { %4840 = vmatmul.mubr.bf16.gmra.mrb[68].mxu1 %v4982_v51 }
 0x674   :  { %4843 = vmatprep.mubr.bf16.mxu1 %v4983_v39  ;;  %v5356_v39 = vld [vmem:[%s8637_s2 + $0x58] sm:$0xff]  }
 0x67b   :  { %4844 = vmatmul.mubr.bf16.gmra.mrb[72].mxu1 %v4984_v3  ;;  %v5357_v3 = vld [vmem:[%s8637_s2 + $0x60] sm:$0xff]  }
 0x67c   :  { %4847 = vmatprep.mubr.bf16.mxu1 %v4985_v50 }
 0x683   :  { %4848 = vmatmul.mubr.bf16.gmra.mrb[76].mxu1 %v4986_v42 }
 0x71e   :  { %v4773_v52 = vpop.f32.mrb[48].mxu1 }
 0x71f   :  { %v1903_v11 = vpop.f32.mrb[49].mxu1 }
 0x720   :  { %v4774_v0 = vpop.f32.mrb[50].mxu1 }
 0x721   :  { %v1967_v59 = vpack.c.bf16 %v4774_v0, %v4773_v52  ;;  %v1906_v36 = vpop.f32.mrb[51].mxu1 }
 0x722   :  { %v1966_v46 = vpack.c.bf16 %v1906_v36, %v1903_v11  ;;  %v5358_v36 = vld [vmem:[%s8637_s2 + $0x68] sm:$0xff]  }
 0x724   :  { %4787 = vmatprep.subr.bf16.mxu0 %v1966_v46 }
 0x725   :  { %4788 = vmatpush3.bf16.msra.mxu0 %v1966_v46  ;;  %v5359_v46 = vld [vmem:[%s8637_s2 + $0x70] sm:$0xff]  }
 0x726   :  { %v4777_v47 = vpop.f32.mrb[52].mxu1  ;;  %4789 = vmatprep.subr.bf16.mxu0 %v1967_v59 }
 0x727   :  { %v1919_v62 = vpop.f32.mrb[53].mxu1 }
 0x728   :  { %v4778_v41 = vpop.f32.mrb[54].mxu1 }
 0x729   :  { %v1969_v5 = vpack.c.bf16 %v4778_v41, %v4777_v47  ;;  %v1922_v7 = vpop.f32.mrb[55].mxu1  ;;  %4790 = vmatpush3.bf16.msra.mxu0 %v1967_v59 }
 0x72a   :  { %v1968_v26 = vpack.c.bf16 %v1922_v7, %v1919_v62 }
 0x72c   :  { %4791 = vmatprep.subr.bf16.mxu0 %v1968_v26 }
 0x72d   :  { %4792 = vmatpush3.bf16.msra.mxu0 %v1968_v26 }
 0x72e   :  { %v4781_v28 = vpop.f32.mrb[56].mxu1  ;;  %4793 = vmatprep.subr.bf16.mxu0 %v1969_v5 }
 0x72f   :  { %v1935_v22 = vpop.f32.mrb[57].mxu1 }
 0x730   :  { %v4782_v49 = vpop.f32.mrb[58].mxu1 }
 0x731   :  { %v1971_v32 = vpack.c.bf16 %v4782_v49, %v4781_v28  ;;  %v1938_v20 = vpop.f32.mrb[59].mxu1  ;;  %4794 = vmatpush3.bf16.msra.mxu0 %v1969_v5  ;;  %v5360_v28 = vld [vmem:[%s8637_s2 + $0x78] sm:$0xff]  }
 0x732   :  { %v1970_v48 = vpack.c.bf16 %v1938_v20, %v1935_v22 }
 0x734   :  { %4795 = vmatprep.subr.bf16.mxu0 %v1970_v48 }
 0x735   :  { %4796 = vmatpush3.bf16.msra.mxu0 %v1970_v48 }
 0x736   :  { %v4785_v63 = vpop.f32.mrb[60].mxu1  ;;  %4797 = vmatprep.subr.bf16.mxu0 %v1971_v32 }
 0x737   :  { %v1951_v30 = vpop.f32.mrb[61].mxu1 }
 0x738   :  { %v4786_v25 = vpop.f32.mrb[62].mxu1 }
 0x739   :  { %v1973_v57 = vpack.c.bf16 %v4786_v25, %v4785_v63  ;;  %v1954_v10 = vpop.f32.mrb[63].mxu1  ;;  %4798 = vmatpush3.bf16.msra.mxu0 %v1971_v32 }
 0x73a   :  { %v1972_v45 = vpack.c.bf16 %v1954_v10, %v1951_v30 }
 0x73c   :  { %4799 = vmatprep.subr.bf16.mxu0 %v1972_v45 }
 0x73d   :  { %4800 = vmatpush3.bf16.msra.mxu0 %v1972_v45 }
 0x73e   :  { %4801 = vmatprep.subr.bf16.mxu0 %v1973_v57  ;;  %v4837_v37 = vpop.f32.mrb[64].mxu1 }
 0x73f   :  { %v2456_v54 = vpop.f32.mrb[65].mxu1 }
 0x740   :  { %v4838_v1 = vpop.f32.mrb[66].mxu1 }
 0x741   :  { %4802 = vmatpush3.bf16.msra.mxu0 %v1973_v57  ;;  %v2520_v53 = vpack.c.bf16 %v4838_v1, %v4837_v37  ;;  %v2459_v2 = vpop.f32.mrb[67].mxu1 }
 0x742   :  { %4851 = vmatprep.subr.bf16.mxu0 %v4987_v27  ;;  %v2519_v21 = vpack.c.bf16 %v2459_v2, %v2456_v54 }
 0x744   :  { %4804 = vmatmul.mubr.bf16.vlgmr.msra.gmra.mrb[48].mxu0 %v5354_v33 }
 0x745   :  { %4852 = vmatpush3.bf16.msra.mxu0 %v4987_v27  ;;  %4807 = vmatprep.mubr.bf16.mxu0 %v5355_v58 }
 0x746   :  { %4853 = vmatprep.subr.bf16.mxu0 %v4988_v4  ;;  %v4841_v18 = vpop.f32.mrb[68].mxu1 }
 0x747   :  { %v2472_v55 = vpop.f32.mrb[69].mxu1 }
 0x748   :  { %v4842_v12 = vpop.f32.mrb[70].mxu1 }
 0x749   :  { %4854 = vmatpush3.bf16.msra.mxu0 %v4988_v4  ;;  %v2522_v56 = vpack.c.bf16 %v4842_v12, %v4841_v18  ;;  %v2475_v23 = vpop.f32.mrb[71].mxu1 }
 0x74a   :  { %v2521_v51 = vpack.c.bf16 %v2475_v23, %v2472_v55 }
 0x74c   :  { %4808 = vmatmul.mubr.bf16.gmra.mrb[52].mxu0 %v5356_v39 }
 0x74d   :  { %4811 = vmatprep.mubr.bf16.mxu0 %v5357_v3 }
 0x74e   :  { %v4845_v50 = vpop.f32.mrb[72].mxu1 }
 0x74f   :  { %v2488_v42 = vpop.f32.mrb[73].mxu1 }
 0x750   :  { %v4846_v52 = vpop.f32.mrb[74].mxu1 }
 0x751   :  { %v2524_v11 = vpack.c.bf16 %v4846_v52, %v4845_v50  ;;  %v2491_v0 = vpop.f32.mrb[75].mxu1 }
 0x752   :  { %v2523_v59 = vpack.c.bf16 %v2491_v0, %v2488_v42 }
 0x754   :  { %4812 = vmatmul.mubr.bf16.gmra.mrb[56].mxu0 %v5358_v36 }
 0x755   :  { %4815 = vmatprep.mubr.bf16.mxu0 %v5359_v46 }
 0x756   :  { %v4849_v47 = vpop.f32.mrb[76].mxu1 }
 0x757   :  { %v2504_v62 = vpop.f32.mrb[77].mxu1 }
 0x758   :  { %v4850_v41 = vpop.f32.mrb[78].mxu1 }
 0x759   :  { %v2526_v5 = vpack.c.bf16 %v4850_v41, %v4849_v47  ;;  %v2507_v7 = vpop.f32.mrb[79].mxu1 }
 0x75a   :  { %v2525_v26 = vpack.c.bf16 %v2507_v7, %v2504_v62 }
 0x75c   :  { %4816 = vmatmul.mubr.bf16.gmra.mrb[60].mxu0 %v5360_v28 }
 0x75d   :  { %4855 = vmatprep.mubr.msk.bf16.mxu0 %vm309_vm0, %v2519_v21 }
 0x764   :  { %4856 = vmatmul.mubr.msk.bf16.vlgmr.msra.gmra.mrb[64].mxu0 %vm309_vm0, %v2520_v53  ;;  %v6382_v53 = vld [vmem:[%s8639_s5 + $0x8] sm:$0x7] }
 0x765   :  { %4859 = vmatprep.mubr.msk.bf16.mxu0 %vm309_vm0, %v2521_v51  ;;  %8774 = vst [vmem:[#allocation5_spill] sm:$0xff] %v6382_v53  ;;  %v6386_v2 = vrot.slane %v6382_v53, %v5531_v44 }
 0x76c   :  { %4860 = vmatmul.mubr.msk.bf16.gmra.mrb[68].mxu0 %vm309_vm0, %v2522_v56 }
 0x76d   :  { %4863 = vmatprep.mubr.msk.bf16.mxu0 %vm309_vm0, %v2523_v59 }
 0x774   :  { %4864 = vmatmul.mubr.msk.bf16.gmra.mrb[72].mxu0 %vm309_vm0, %v2524_v11 }
 0x775   :  { %4867 = vmatprep.mubr.msk.bf16.mxu0 %vm309_vm0, %v2525_v26 }
 0x77c   :  { %4868 = vmatmul.mubr.msk.bf16.gmra.mrb[76].mxu0 %vm309_vm0, %v2526_v5 }
 0x77d   :  { %4911 = vmatprep.mubr.bf16.mxu0 %v6280_v43 }
 0x817   :  { %v6347_v22 = vpop.f32.mrb[48].mxu0 }
 0x818   :  { %v6349_v49 = vpop.f32.mrb[49].mxu0 }
 0x819   :  { %v6351_v32 = vpop.f32.mrb[50].mxu0 }
 0x81a   :  { %v6353_v20 = vpop.f32.mrb[51].mxu0 }
 0x81f   :  { %v6355_v48 = vpop.f32.mrb[52].mxu0 }
 0x820   :  { %v6357_v63 = vpop.f32.mrb[53].mxu0 }
 0x821   :  { %v6359_v30 = vpop.f32.mrb[54].mxu0 }
 0x822   :  { %v6361_v25 = vpop.f32.mrb[55].mxu0 }
 0x827   :  { %v6363_v57 = vpop.f32.mrb[56].mxu0 }
 0x828   :  { %v6365_v10 = vpop.f32.mrb[57].mxu0 }
 0x829   :  { %v6367_v43 = vpop.f32.mrb[58].mxu0 }
 0x82a   :  { %v6369_v45 = vpop.f32.mrb[59].mxu0 }
 0x82f   :  { %v6371_v27 = vpop.f32.mrb[60].mxu0 }
 0x830   :  { %v6373_v37 = vpop.f32.mrb[61].mxu0 }
 0x831   :  { %v6375_v54 = vpop.f32.mrb[62].mxu0 }
 0x832   :  { %v6377_v1 = vpop.f32.mrb[63].mxu0 }
 0x837   :  { %v4857_v4 = vpop.f32.mrb[64].mxu0 }
 0x838   :  { %v2601_v21 = vpop.f32.mrb[65].mxu0  ;;  %v6389_v33 = vadd.f32 %v4857_v4, %v6386_v2 }
 0x839   :  { %v6392_v58 = vadd.f32 %v2601_v21, %v6386_v2  ;;  %v4858_v18 = vpop.f32.mrb[66].mxu0 }
 0x83a   :  { %v2604_v55 = vpop.f32.mrb[67].mxu0  ;;  %v6396_v56 = vadd.f32 %v4858_v18, %v6386_v2  ;;  %v8651_v51 = vmax.f32 %v6389_v33, 0.0 }
 0x83b   :  { %v2664_v12 = vmax.f32 %v6392_v58, 0.0  ;;  %v6399_v23 = vadd.f32 %v2604_v55, %v6386_v2 }
 0x83c   :  { %v8650_v50 = vmax.f32 %v6396_v56, 0.0  ;;  %v2686_v46 = vsel %vm447_vm1, %v8651_v51, 0.0 }
 0x83d   :  { %v2665_v39 = vmax.f32 %v6399_v23, 0.0  ;;  %v2680_v3 = vsel %vm447_vm1, %v2664_v12, 0.0  ;;  %v8776_v23 = vmax.f32 %v6396_v56, 0.0 }
 0x83e   :  { %2681 = vadd.xlane.f32.xlu0 %v2680_v3  ;;  %v2689_v7 = vsel %vm447_vm1, %v8650_v50, 0.0 }
 0x83f   :  { %v4861_v42 = vpop.f32.mrb[68].mxu0  ;;  %v2683_v52 = vsel %vm447_vm1, %v2665_v39, 0.0 }
 0x840   :  { %v2617_v11 = vpop.f32.mrb[69].mxu0  ;;  %2684 = vadd.xlane.f32.xlu1 %v2683_v52  ;;  %v6411_v0 = vadd.f32 %v4861_v42, %v6386_v2 }
 0x841   :  { %v6414_v59 = vadd.f32 %v2617_v11, %v6386_v2  ;;  %v4862_v36 = vpop.f32.mrb[70].mxu0 }
 0x842   :  { %v2620_v47 = vpop.f32.mrb[71].mxu0  ;;  %2687 = vadd.xlane.f32.xlu0 %v2686_v46  ;;  %v6421_v41 = vadd.f32 %v4862_v36, %v6386_v2  ;;  %v8645_v26 = vmax.f32 %v6411_v0, 0.0 }
 0x843   :  { %v8648_v62 = vmax.f32 %v6414_v59, 0.0  ;;  %v6424_v5 = vadd.f32 %v2620_v47, %v6386_v2 }
 0x844   :  { %2690 = vadd.xlane.f32.xlu1 %v2689_v7  ;;  %v8647_v21 = vmax.f32 %v6421_v41, 0.0  ;;  %v2698_v36 = vsel %vm447_vm1, %v8645_v26, 0.0 }
 0x845   :  { %v8646_v28 = vmax.f32 %v6424_v5, 0.0  ;;  %v2692_v4 = vsel %vm447_vm1, %v8648_v62, 0.0 }
 0x846   :  { %2693 = vadd.xlane.f32.xlu0 %v2692_v4 }
 0x847   :  { %v4865_v18 = vpop.f32.mrb[72].mxu0  ;;  %v2695_v55 = vsel %vm447_vm1, %v8646_v28, 0.0 }
 0x848   :  { %v2633_v3 = vpop.f32.mrb[73].mxu0  ;;  %2696 = vadd.xlane.f32.xlu1 %v2695_v55  ;;  %v6439_v42 = vadd.f32 %v4865_v18, %v6386_v2  ;;  %v2701_v18 = vsel %vm447_vm1, %v8647_v21, 0.0 }
 0x849   :  { %v6442_v52 = vadd.f32 %v2633_v3, %v6386_v2  ;;  %v4866_v11 = vpop.f32.mrb[74].mxu0 }
 0x84a   :  { %v2636_v46 = vpop.f32.mrb[75].mxu0  ;;  %2699 = vadd.xlane.f32.xlu0 %v2698_v36  ;;  %v6449_v7 = vadd.f32 %v4866_v11, %v6386_v2  ;;  %v8657_v55 = vmax.f32 %v6439_v42, 0.0 }
 0x84b   :  { %v8649_v47 = vmax.f32 %v6442_v52, 0.0  ;;  %v6452_v4 = vadd.f32 %v2636_v46, %v6386_v2 }
 0x84c   :  { %2702 = vadd.xlane.f32.xlu1 %v2701_v18  ;;  %v8654_v11 = vmax.f32 %v6449_v7, 0.0 }
 0x84d   :  { %v8652_v3 = vmax.f32 %v6452_v4, 0.0  ;;  %v2704_v36 = vsel %vm447_vm1, %v8649_v47, 0.0 }
 0x84e   :  { %2705 = vadd.xlane.f32.xlu0 %v2704_v36  ;;  %v2710_v36 = vsel %vm447_vm1, %v8657_v55, 0.0 }
 0x84f   :  { %v4869_v26 = vpop.f32.mrb[76].mxu0  ;;  %v2707_v46 = vsel %vm447_vm1, %v8652_v3, 0.0 }
 0x850   :  { %v2649_v28 = vpop.f32.mrb[77].mxu0  ;;  %2708 = vadd.xlane.f32.xlu1 %v2707_v46  ;;  %v6467_v18 = vadd.f32 %v4869_v26, %v6386_v2  ;;  %v2713_v26 = vsel %vm447_vm1, %v8654_v11, 0.0 }
 0x851   :  { %v6470_v21 = vadd.f32 %v2649_v28, %v6386_v2  ;;  %v4870_v62 = vpop.f32.mrb[78].mxu0 }
 0x852   :  { %v2652_v47 = vpop.f32.mrb[79].mxu0  ;;  %2711 = vadd.xlane.f32.xlu0 %v2710_v36  ;;  %v6477_v51 = vadd.f32 %v4870_v62, %v6386_v2  ;;  %v8656_v28 = vmax.f32 %v6467_v18, 0.0 }
 0x853   :  { %v8653_v50 = vmax.f32 %v6470_v21, 0.0  ;;  %v6480_v46 = vadd.f32 %v2652_v47, %v6386_v2 }
 0x854   :  { %2714 = vadd.xlane.f32.xlu1 %v2713_v26  ;;  %v8658_v62 = vmax.f32 %v6477_v51, 0.0  ;;  %v2722_v47 = vsel %vm447_vm1, %v8656_v28, 0.0 }
 0x855   :  { %v8655_v3 = vmax.f32 %v6480_v46, 0.0  ;;  %v2716_v36 = vsel %vm447_vm1, %v8653_v50, 0.0 }
 0x856   :  { %2717 = vadd.xlane.f32.xlu0 %v2716_v36  ;;  %v2725_v26 = vsel %vm447_vm1, %v8658_v62, 0.0  ;;  %v4989_v36 = vld [vmem:[%s8640_s4 + $0x40] sm:$0xff]  }
 0x857   :  { %v2719_v2 = vsel %vm447_vm1, %v8655_v3, 0.0  ;;  %4871 = vmatprep.subr.bf16.mxu1 %v4989_v36 }
 0x858   :  { %2720 = vadd.xlane.f32.xlu1 %v2719_v2  ;;  %4872 = vmatpush3.bf16.msra.mxu1 %v4989_v36  ;;  %v8775_v36 = vmax.f32 %v6389_v33, 0.0 }
 0x85a   :  { %2723 = vadd.xlane.f32.xlu0 %v2722_v47 }
 0x85c   :  { %2726 = vadd.xlane.f32.xlu1 %v2725_v26 }
 0x8cb   :  { %v2682_v50 = vpop.xlane.xlu0 %2681 }
 0x8cc   :  { %v2728_v11 = vmul.f32 0.015625, %v2682_v50 }
 0x8cd   :  { %v2685_v3 = vpop.xlane.xlu1 %2684 }
 0x8ce   :  { %v6505_v2 = vsub.f32 %v2664_v12, %v2728_v11  ;;  %v2729_v28 = vmul.f32 0.015625, %v2685_v3 }
 0x8cf   :  { %v2688_v47 = vpop.xlane.xlu0 %2687 }
 0x8d0   :  { %v6509_v55 = vsub.f32 %v2665_v39, %v2729_v28  ;;  %v2730_v26 = vmul.f32 0.015625, %v2688_v47  ;;  %v2760_v62 = vmul.f32 %v6505_v2, %v6505_v2 }
 0x8d1   :  { %v2691_v31 = vpop.xlane.xlu1 %2690 }
 0x8d2   :  { %v6515_v53 = vsub.f32 %v8775_v36, %v2730_v26  ;;  %v2731_v50 = vmul.f32 0.015625, %v2691_v31  ;;  %v2776_v58 = vsel %vm447_vm1, %v2760_v62, 0.0  ;;  %v2761_v12 = vmul.f32 %v6509_v55, %v6509_v55 }
 0x8d3   :  { %2777 = vadd.xlane.f32.xlu0 %v2776_v58  ;;  %v2694_v3 = vpop.xlane.xlu0 %2693  ;;  %v8777_v31 = vmax.f32 %v6414_v59, 0.0  ;;  %v8778_v58 = vmax.f32 %v6424_v5, 0.0 }
 0x8d4   :  { %v6522_v39 = vsub.f32 %v8776_v23, %v2731_v50  ;;  %v2732_v11 = vmul.f32 0.015625, %v2694_v3  ;;  %v2779_v28 = vsel %vm447_vm1, %v2761_v12, 0.0  ;;  %v2762_v33 = vmul.f32 %v6515_v53, %v6515_v53 }
 0x8d5   :  { %2780 = vadd.xlane.f32.xlu1 %v2779_v28  ;;  %v2697_v47 = vpop.xlane.xlu1 %2696  ;;  %v8779_v28 = vmax.f32 %v6411_v0, 0.0 }
 0x8d6   :  { %v6529_v62 = vsub.f32 %v8777_v31, %v2732_v11  ;;  %v2733_v26 = vmul.f32 0.015625, %v2697_v47  ;;  %v2782_v36 = vsel %vm447_vm1, %v2762_v33, 0.0  ;;  %v2763_v56 = vmul.f32 %v6522_v39, %v6522_v39 }
 0x8d7   :  { %2783 = vadd.xlane.f32.xlu0 %v2782_v36  ;;  %v2700_v50 = vpop.xlane.xlu0 %2699  ;;  %v8780_v36 = vmax.f32 %v6421_v41, 0.0 }
 0x8d8   :  { %v6536_v12 = vsub.f32 %v8778_v58, %v2733_v26  ;;  %v2734_v3 = vmul.f32 0.015625, %v2700_v50  ;;  %v2785_v23 = vsel %vm447_vm1, %v2763_v56, 0.0  ;;  %v2764_v59 = vmul.f32 %v6529_v62, %v6529_v62 }
 0x8d9   :  { %2786 = vadd.xlane.f32.xlu1 %v2785_v23  ;;  %v2703_v11 = vpop.xlane.xlu1 %2702  ;;  %v8781_v23 = vmax.f32 %v6442_v52, 0.0 }
 0x8da   :  { %v6543_v33 = vsub.f32 %v8779_v28, %v2734_v3  ;;  %v2735_v47 = vmul.f32 0.015625, %v2703_v11  ;;  %v2788_v31 = vsel %vm447_vm1, %v2764_v59, 0.0  ;;  %v2765_v5 = vmul.f32 %v6536_v12, %v6536_v12 }
 0x8db   :  { %2789 = vadd.xlane.f32.xlu0 %v2788_v31  ;;  %v2706_v26 = vpop.xlane.xlu0 %2705  ;;  %v8782_v31 = vmax.f32 %v6452_v4, 0.0 }
 0x8dc   :  { %v6550_v56 = vsub.f32 %v8780_v36, %v2735_v47  ;;  %v2736_v50 = vmul.f32 0.015625, %v2706_v26  ;;  %v2791_v58 = vsel %vm447_vm1, %v2765_v5, 0.0  ;;  %v2766_v0 = vmul.f32 %v6543_v33, %v6543_v33 }
 0x8dd   :  { %2792 = vadd.xlane.f32.xlu1 %v2791_v58  ;;  %v2709_v3 = vpop.xlane.xlu1 %2708  ;;  %v91_v58 = vld [vmem:[%s8641_s6] sm:$0x7] }
 0x8de   :  { %v6557_v59 = vsub.f32 %v8781_v23, %v2736_v50  ;;  %v2737_v11 = vmul.f32 0.015625, %v2709_v3  ;;  %v2794_v28 = vsel %vm447_vm1, %v2766_v0, 0.0  ;;  %v2767_v41 = vmul.f32 %v6550_v56, %v6550_v56 }
 0x8df   :  { %2795 = vadd.xlane.f32.xlu0 %v2794_v28  ;;  %v2712_v47 = vpop.xlane.xlu0 %2711  ;;  %v8783_v0 = vmax.f32 %v6439_v42, 0.0 }
 0x8e0   :  { %v6564_v5 = vsub.f32 %v8782_v31, %v2737_v11  ;;  %v2738_v26 = vmul.f32 0.015625, %v2712_v47  ;;  %v2797_v36 = vsel %vm447_vm1, %v2767_v41, 0.0  ;;  %v2768_v52 = vmul.f32 %v6557_v59, %v6557_v59 }
 0x8e1   :  { %2798 = vadd.xlane.f32.xlu1 %v2797_v36  ;;  %v2715_v50 = vpop.xlane.xlu1 %2714  ;;  %v8784_v41 = vmax.f32 %v6449_v7, 0.0 }
 0x8e2   :  { %v6574_v3 = vsub.f32 %v8783_v0, %v2738_v26  ;;  %v2739_v23 = vmul.f32 0.015625, %v2715_v50  ;;  %v2800_v4 = vsel %vm447_vm1, %v2768_v52, 0.0  ;;  %v2769_v11 = vmul.f32 %v6564_v5, %v6564_v5 }
 0x8e3   :  { %2801 = vadd.xlane.f32.xlu0 %v2800_v4  ;;  %v2718_v28 = vpop.xlane.xlu0 %2717  ;;  %v6587_v26 = vrot.slane %v91_v58, %v5531_v44  ;;  %v8785_v50 = vmax.f32 %v6470_v21, 0.0 }
 0x8e4   :  { %v6581_v47 = vsub.f32 %v8784_v41, %v2739_v23  ;;  %v2740_v31 = vmul.f32 0.015625, %v2718_v28  ;;  %v2803_v36 = vsel %vm447_vm1, %v2769_v11, 0.0  ;;  %v2770_v42 = vmul.f32 %v6574_v3, %v6574_v3 }
 0x8e5   :  { %2804 = vadd.xlane.f32.xlu1 %v2803_v36  ;;  %v2721_v52 = vpop.xlane.xlu1 %2720  ;;  %v8786_v28 = vmax.f32 %v6480_v46, 0.0 }
 0x8e6   :  { %v6591_v0 = vsub.f32 %v8785_v50, %v2740_v31  ;;  %v2741_v4 = vmul.f32 0.015625, %v2721_v52  ;;  %v2806_v7 = vsel %vm447_vm1, %v2770_v42, 0.0  ;;  %v2771_v23 = vmul.f32 %v6581_v47, %v6581_v47 }
 0x8e7   :  { %2807 = vadd.xlane.f32.xlu0 %v2806_v7  ;;  %v2724_v11 = vpop.xlane.xlu0 %2723  ;;  %v6605_v31 = vadd.f32 %v5917_v14, %v6587_v26  ;;  %v8787_v52 = vmax.f32 %v6467_v18, 0.0  ;;  %v8788_v14 = vmax.f32 %v6477_v51, 0.0  ;;  %v6635_v51 = vadd.f32 %v5919_v15, %v6587_v26  ;;  %v4990_v15 = vld [vmem:[%s8640_s4 + $0x48] sm:$0xff]  }
 0x8e8   :  { %v6598_v41 = vsub.f32 %v8786_v28, %v2741_v4  ;;  %v2742_v58 = vmul.f32 0.015625, %v2724_v11  ;;  %v2809_v36 = vsel %vm447_vm1, %v2771_v23, 0.0  ;;  %v2772_v21 = vmul.f32 %v6591_v0, %v6591_v0  ;;  %4873 = vmatprep.subr.bf16.mxu1 %v4990_v15 }
 0x8e9   :  { %2810 = vadd.xlane.f32.xlu1 %v2809_v36  ;;  %v2727_v42 = vpop.xlane.xlu1 %2726  ;;  %v6616_v23 = vadd.f32 %v5921_v6, %v6587_v26  ;;  %v8692_v36 = vmax.f32 %v6605_v31, 0.0  ;;  %4874 = vmatpush3.bf16.msra.mxu1 %v4990_v15  ;;  %v6680_v15 = vadd.f32 %v5933_v29, %v6587_v26 }
 0x8ea   :  { %v6609_v50 = vsub.f32 %v8787_v52, %v2742_v58  ;;  %v2743_v7 = vmul.f32 0.015625, %v2727_v42  ;;  %v2812_v46 = vsel %vm447_vm1, %v2772_v21, 0.0  ;;  %v2773_v4 = vmul.f32 %v6598_v41, %v6598_v41 }
 0x8eb   :  { %2813 = vadd.xlane.f32.xlu0 %v2812_v46  ;;  %v6627_v58 = vadd.f32 %v5915_v13, %v6587_v26  ;;  %v8690_v42 = vmax.f32 %v6616_v23, 0.0  ;;  %v975_v46 = vsel %vm309_vm0, %v8692_v36, 0.0 }
 0x8ec   :  { %v6620_v11 = vsub.f32 %v8788_v14, %v2743_v7  ;;  %v2815_v28 = vsel %vm447_vm1, %v2773_v4, 0.0  ;;  %v2774_v18 = vmul.f32 %v6609_v50, %v6609_v50  ;;  %v6642_v7 = vadd.f32 %v5925_v24, %v6587_v26 }
 0x8ed   :  { %2816 = vadd.xlane.f32.xlu1 %v2815_v28  ;;  %v8689_v13 = vmax.f32 %v6627_v58, 0.0  ;;  %v8668_v4 = vmax.f32 %v6635_v51, 0.0  ;;  %v6653_v14 = vadd.f32 %v5929_v34, %v6587_v26  ;;  %v978_v24 = vsel %vm309_vm0, %v8690_v42, 0.0  ;;  %v4991_v34 = vld [vmem:[%s8640_s4 + $0x50] sm:$0xff]  }
 0x8ee   :  { %v2818_v21 = vsel %vm447_vm1, %v2774_v18, 0.0  ;;  %v2775_v6 = vmul.f32 %v6620_v11, %v6620_v11  ;;  %v6660_v28 = vadd.f32 %v5923_v8, %v6587_v26  ;;  %v8663_v18 = vmax.f32 %v6642_v7, 0.0  ;;  %4875 = vmatprep.subr.bf16.mxu1 %v4991_v34 }
 0x8ef   :  { %2819 = vadd.xlane.f32.xlu0 %v2818_v21  ;;  %v981_v21 = vsel %vm309_vm0, %v8689_v13, 0.0  ;;  %v984_v8 = vsel %vm309_vm0, %v8668_v4, 0.0  ;;  %4876 = vmatpush3.bf16.msra.mxu1 %v4991_v34  ;;  %v6691_v34 = vadd.f32 %v5937_v40, %v6587_v26  ;;  %v6706_v40 = vadd.f32 %v5935_v16, %v6587_v26  ;;  %v4350_v16 = vld [vmem:[%s8641_s6 + $0x4] sm:$0x7] }
 0x8f0   :  { %v2821_v52 = vsel %vm447_vm1, %v2775_v6, 0.0  ;;  %v6671_v6 = vadd.f32 %v5927_v9, %v6587_v26  ;;  %v987_v9 = vsel %vm309_vm0, %v8663_v18, 0.0  ;;  %v8667_v18 = vmax.f32 %v6680_v15, 0.0 }
 0x8f1   :  { %2822 = vadd.xlane.f32.xlu1 %v2821_v52  ;;  %v8664_v52 = vmax.f32 %v6653_v14, 0.0  ;;  %v6737_v4 = vrot.slane %v4350_v16, %v5531_v44 }
 0x8f3   :  { %976 = vadd.xlane.f32.xlu0 %v975_v46  ;;  %v8665_v46 = vmax.f32 %v6660_v28, 0.0  ;;  %v990_v29 = vsel %vm309_vm0, %v8664_v52, 0.0  ;;  %v8669_v52 = vmax.f32 %v6691_v34, 0.0  ;;  %v6753_v16 = vadd.f32 %v6349_v49, %v6737_v4 }
 0x8f4   :  { %v6768_v49 = vadd.f32 %v6347_v22, %v6737_v4 }
 0x8f5   :  { %979 = vadd.xlane.f32.xlu1 %v978_v24  ;;  %v4992_v24 = vld [vmem:[%s8640_s4 + $0x58] sm:$0xff]  }
 0x8f6   :  { %4877 = vmatprep.subr.bf16.mxu1 %v4992_v24  ;;  %v8677_v22 = vmax.f32 %v6768_v49, 0.0 }
 0x8f7   :  { %982 = vadd.xlane.f32.xlu0 %v981_v21  ;;  %v8666_v21 = vmax.f32 %v6671_v6, 0.0  ;;  %4878 = vmatpush3.bf16.msra.mxu1 %v4992_v24 }
 0x8f9   :  { %985 = vadd.xlane.f32.xlu1 %v984_v8  ;;  %v6698_v8 = vadd.f32 %v5931_v60, %v6587_v26  ;;  %v996_v24 = vsel %vm309_vm0, %v8666_v21, 0.0  ;;  %v6733_v21 = vadd.f32 %v5939_v38, %v6587_v26 }
 0x8fb   :  { %988 = vadd.xlane.f32.xlu0 %v987_v9  ;;  %v993_v9 = vsel %vm309_vm0, %v8665_v46, 0.0  ;;  %v8688_v60 = vmax.f32 %v6698_v8, 0.0  ;;  %v8670_v46 = vmax.f32 %v6706_v40, 0.0 }
 0x8fd   :  { %991 = vadd.xlane.f32.xlu1 %v990_v29  ;;  %v6715_v29 = vadd.f32 %v5941_v61, %v6587_v26  ;;  %v1002_v61 = vsel %vm309_vm0, %v8669_v52, 0.0  ;;  %v1008_v38 = vsel %vm309_vm0, %v8670_v46, 0.0  ;;  %v8673_v52 = vmax.f32 %v6733_v21, 0.0 }
 0x8fe   :  { %v8675_v46 = vmax.f32 %v6753_v16, 0.0 }
 0x8ff   :  { %994 = vadd.xlane.f32.xlu0 %v993_v9  ;;  %v999_v9 = vsel %vm309_vm0, %v8667_v18, 0.0  ;;  %v8671_v18 = vmax.f32 %v6715_v29, 0.0 }
 0x901   :  { %997 = vadd.xlane.f32.xlu1 %v996_v24  ;;  %v6726_v24 = vadd.f32 %v5945_v19, %v6587_v26  ;;  %v6744_v19 = vadd.f32 %v5943_v17, %v6587_v26  ;;  %v6761_v26 = vadd.f32 %v6353_v20, %v6737_v4  ;;  %v6776_v20 = vadd.f32 %v6351_v32, %v6737_v4 }
 0x903   :  { %1000 = vadd.xlane.f32.xlu0 %v999_v9  ;;  %v1005_v9 = vsel %vm309_vm0, %v8688_v60, 0.0  ;;  %v8674_v17 = vmax.f32 %v6744_v19, 0.0  ;;  %v8678_v32 = vmax.f32 %v6776_v20, 0.0 }
 0x905   :  { %1003 = vadd.xlane.f32.xlu1 %v1002_v61  ;;  %v8672_v61 = vmax.f32 %v6726_v24, 0.0 }
 0x907   :  { %1006 = vadd.xlane.f32.xlu0 %v1005_v9  ;;  %v1011_v9 = vsel %vm309_vm0, %v8671_v18, 0.0  ;;  %v8676_v18 = vmax.f32 %v6761_v26, 0.0 }
 0x909   :  { %1009 = vadd.xlane.f32.xlu1 %v1008_v38  ;;  %v1014_v38 = vsel %vm309_vm0, %v8672_v61, 0.0  ;;  %v6785_v61 = vadd.f32 %v6357_v63, %v6737_v4  ;;  %v6800_v63 = vadd.f32 %v6355_v48, %v6737_v4 }
 0x90b   :  { %1012 = vadd.xlane.f32.xlu0 %v1011_v9  ;;  %v1017_v9 = vsel %vm309_vm0, %v8673_v52, 0.0  ;;  %v6793_v52 = vadd.f32 %v6361_v25, %v6737_v4  ;;  %v6808_v25 = vadd.f32 %v6359_v30, %v6737_v4  ;;  %v8681_v48 = vmax.f32 %v6800_v63, 0.0 }
 0x90d   :  { %1015 = vadd.xlane.f32.xlu1 %v1014_v38  ;;  %v1020_v38 = vsel %vm309_vm0, %v8674_v17, 0.0  ;;  %v8679_v17 = vmax.f32 %v6785_v61, 0.0  ;;  %v8682_v30 = vmax.f32 %v6808_v25, 0.0 }
 0x90f   :  { %1018 = vadd.xlane.f32.xlu0 %v1017_v9  ;;  %v2091_v9 = vsel %vm309_vm0, %v8675_v46, 0.0  ;;  %v8680_v46 = vmax.f32 %v6793_v52, 0.0 }
 0x911   :  { %1021 = vadd.xlane.f32.xlu1 %v1020_v38  ;;  %v2094_v38 = vsel %vm309_vm0, %v8676_v18, 0.0  ;;  %v6817_v18 = vadd.f32 %v6365_v10, %v6737_v4  ;;  %v6832_v10 = vadd.f32 %v6363_v57, %v6737_v4 }
 0x913   :  { %2092 = vadd.xlane.f32.xlu0 %v2091_v9  ;;  %v2097_v9 = vsel %vm309_vm0, %v8677_v22, 0.0  ;;  %v6825_v22 = vadd.f32 %v6369_v45, %v6737_v4  ;;  %v6840_v45 = vadd.f32 %v6367_v43, %v6737_v4  ;;  %v8687_v57 = vmax.f32 %v6832_v10, 0.0 }
 0x915   :  { %2095 = vadd.xlane.f32.xlu1 %v2094_v38  ;;  %v2100_v38 = vsel %vm309_vm0, %v8678_v32, 0.0  ;;  %v8683_v32 = vmax.f32 %v6817_v18, 0.0  ;;  %v8685_v43 = vmax.f32 %v6840_v45, 0.0 }
 0x917   :  { %2098 = vadd.xlane.f32.xlu0 %v2097_v9  ;;  %v2103_v9 = vsel %vm309_vm0, %v8679_v17, 0.0  ;;  %v8684_v17 = vmax.f32 %v6825_v22, 0.0 }
 0x919   :  { %2101 = vadd.xlane.f32.xlu1 %v2100_v38  ;;  %v2106_v38 = vsel %vm309_vm0, %v8680_v46, 0.0  ;;  %v6849_v46 = vadd.f32 %v6373_v37, %v6737_v4  ;;  %v6864_v37 = vadd.f32 %v6371_v27, %v6737_v4 }
 0x91b   :  { %2104 = vadd.xlane.f32.xlu0 %v2103_v9  ;;  %v2109_v9 = vsel %vm309_vm0, %v8681_v48, 0.0  ;;  %8789 = vst [vmem:[#allocation6_spill] sm:$0xff] %v6849_v46  ;;  %v6857_v48 = vadd.f32 %v6377_v1, %v6737_v4  ;;  %8791 = vst [vmem:[#allocation8_spill] sm:$0xff] %v6864_v37  ;;  %v6872_v1 = vadd.f32 %v6375_v54, %v6737_v4  ;;  %v8694_v27 = vmax.f32 %v6864_v37, 0.0 }
 0x91d   :  { %2107 = vadd.xlane.f32.xlu1 %v2106_v38  ;;  %v2112_v38 = vsel %vm309_vm0, %v8682_v30, 0.0  ;;  %8790 = vst [vmem:[#allocation7_spill] sm:$0xff] %v6857_v48  ;;  %v8686_v30 = vmax.f32 %v6849_v46, 0.0  ;;  %8792 = vst [vmem:[#allocation9_spill] sm:$0xff] %v6872_v1  ;;  %v2133_v4 = vsel %vm309_vm0, %v8694_v27, 0.0 }
 0x91f   :  { %2110 = vadd.xlane.f32.xlu0 %v2109_v9  ;;  %v2115_v9 = vsel %vm309_vm0, %v8683_v32, 0.0  ;;  %v8691_v32 = vmax.f32 %v6857_v48, 0.0 }
 0x921   :  { %2113 = vadd.xlane.f32.xlu1 %v2112_v38  ;;  %v2118_v38 = vsel %vm309_vm0, %v8684_v17, 0.0  ;;  %v2127_v17 = vsel %vm309_vm0, %v8686_v30, 0.0  ;;  %v2130_v54 = vsel %vm309_vm0, %v8691_v32, 0.0 }
 0x923   :  { %2116 = vadd.xlane.f32.xlu0 %v2115_v9  ;;  %v2121_v9 = vsel %vm309_vm0, %v8687_v57, 0.0 }
 0x925   :  { %2119 = vadd.xlane.f32.xlu1 %v2118_v38  ;;  %v2124_v38 = vsel %vm309_vm0, %v8685_v43, 0.0 }
 0x927   :  { %2122 = vadd.xlane.f32.xlu0 %v2121_v9  ;;  %v8697_v9 = vmax.f32 %v6872_v1, 0.0 }
 0x929   :  { %2125 = vadd.xlane.f32.xlu1 %v2124_v38  ;;  %v2136_v38 = vsel %vm309_vm0, %v8697_v9, 0.0 }
 0x92b   :  { %2128 = vadd.xlane.f32.xlu0 %v2127_v17 }
 0x92d   :  { %2131 = vadd.xlane.f32.xlu1 %v2130_v54 }
 0x92f   :  { %2134 = vadd.xlane.f32.xlu0 %v2133_v4 }
 0x931   :  { %2137 = vadd.xlane.f32.xlu1 %v2136_v38 }
 0x960   :  { %v2778_v43 = vpop.xlane.xlu0 %2777 }
 0x961   :  { %v2824_v30 = vmul.f32 0.015625, %v2778_v43 }
 0x962   :  { %v2781_v17 = vpop.xlane.xlu1 %2780 }
 0x963   :  { %v2840_v57 = vadd.f32 1e-05, %v2824_v30  ;;  %v2825_v60 = vmul.f32 0.015625, %v2781_v17 }
 0x964   :  { %v2784_v13 = vpop.xlane.xlu0 %2783 }
 0x965   :  { %5057 = vrsqrt.f32 %v2840_v57  ;;  %v2841_v42 = vadd.f32 1e-05, %v2825_v60  ;;  %v2826_v32 = vmul.f32 0.015625, %v2784_v13  ;;  %v8793_v57 = vld [vmem:[#allocation5_spill] sm:$0xff] }
 0x966   :  { %v2787_v54 = vpop.xlane.xlu1 %2786  ;;  %v6894_v60 = vrot.slane %v8793_v57, %v5780_v35 }
 0x967   :  { %5059 = vrsqrt.f32 %v2841_v42  ;;  %v2842_v36 = vadd.f32 1e-05, %v2826_v32  ;;  %v2827_v37 = vmul.f32 0.015625, %v2787_v54 }
 0x968   :  { %v2790_v27 = vpop.xlane.xlu0 %2789 }
 0x969   :  { %5061 = vrsqrt.f32 %v2842_v36  ;;  %v2843_v4 = vadd.f32 1e-05, %v2827_v37  ;;  %v2828_v1 = vmul.f32 0.015625, %v2790_v27 }
 0x96a   :  { %v2793_v48 = vpop.xlane.xlu1 %2792 }
 0x96b   :  { %5063 = vrsqrt.f32 %v2843_v4  ;;  %v2844_v38 = vadd.f32 1e-05, %v2828_v1  ;;  %v2829_v9 = vmul.f32 0.015625, %v2793_v48  ;;  %v8794_v4 = vld [vmem:[#allocation4_spill] sm:$0xff] }
 0x96c   :  { %v2796_v43 = vpop.xlane.xlu0 %2795 }
 0x96d   :  { %5065 = vrsqrt.f32 %v2844_v38  ;;  %v2845_v30 = vadd.f32 1e-05, %v2829_v9  ;;  %v2830_v17 = vmul.f32 0.015625, %v2796_v43  ;;  %v6899_v9 = vrot.slane %v8793_v57, %v8794_v4 }
 0x96e   :  { %v2799_v13 = vpop.xlane.xlu1 %2798 }
 0x96f   :  { %v5058_v42 = vpop.eup %5057  ;;  %5067 = vrsqrt.f32 %v2845_v30  ;;  %v2846_v32 = vadd.f32 1e-05, %v2830_v17  ;;  %v2831_v54 = vmul.f32 0.015625, %v2799_v13 }
 0x970   :  { %v2802_v36 = vpop.xlane.xlu0 %2801  ;;  %v2872_v37 = vmul.f32 %v5058_v42, %v6505_v2 }
 0x971   :  { %v5060_v27 = vpop.eup %5059  ;;  %5069 = vrsqrt.f32 %v2846_v32  ;;  %v2847_v1 = vadd.f32 1e-05, %v2831_v54  ;;  %v2832_v48 = vmul.f32 0.015625, %v2802_v36 }
 0x972   :  { %v2805_v38 = vpop.xlane.xlu1 %2804  ;;  %v2873_v43 = vmul.f32 %v5060_v27, %v6509_v55  ;;  %v2892_v35 = vmul.f32 %v6894_v60, %v2872_v37 }
 0x973   :  { %v5062_v46 = vpop.eup %5061  ;;  %5071 = vrsqrt.f32 %v2847_v1  ;;  %v2848_v30 = vadd.f32 1e-05, %v2832_v48  ;;  %v2833_v17 = vmul.f32 0.015625, %v2805_v38 }
 0x974   :  { %v2874_v13 = vmul.f32 %v5062_v46, %v6515_v53  ;;  %v2808_v2 = vpop.xlane.xlu0 %2807  ;;  %v2893_v42 = vmul.f32 %v6894_v60, %v2873_v43  ;;  %v2912_v37 = vadd.f32 %v6899_v9, %v2892_v35 }
 0x975   :  { %v5064_v32 = vpop.eup %5063  ;;  %5073 = vrsqrt.f32 %v2848_v30  ;;  %v2849_v54 = vadd.f32 1e-05, %v2833_v17  ;;  %v2834_v36 = vmul.f32 0.015625, %v2808_v2 }
 0x976   :  { %v2894_v57 = vmul.f32 %v6894_v60, %v2874_v13  ;;  %v2875_v4 = vmul.f32 %v5064_v32, %v6522_v39  ;;  %v2811_v55 = vpop.xlane.xlu1 %2810  ;;  %v2913_v27 = vadd.f32 %v6899_v9, %v2893_v42 }
 0x977   :  { %v5066_v1 = vpop.eup %5065  ;;  %5075 = vrsqrt.f32 %v2849_v54  ;;  %v2850_v48 = vadd.f32 1e-05, %v2834_v36  ;;  %v2835_v53 = vmul.f32 0.015625, %v2811_v55 }
 0x978   :  { %v2895_v46 = vmul.f32 %v6894_v60, %v2875_v4  ;;  %v2814_v38 = vpop.xlane.xlu0 %2813  ;;  %v2928_v43 = vpack.c.bf16 %v2913_v27, %v2912_v37  ;;  %v2876_v30 = vmul.f32 %v5066_v1, %v6529_v62  ;;  %v2914_v39 = vadd.f32 %v6899_v9, %v2894_v57 }
 0x979   :  { %v5068_v17 = vpop.eup %5067  ;;  %5077 = vrsqrt.f32 %v2850_v48  ;;  %v2851_v13 = vadd.f32 1e-05, %v2835_v53  ;;  %v2836_v2 = vmul.f32 0.015625, %v2814_v38 }
 0x97a   :  { %v2915_v35 = vadd.f32 %v6899_v9, %v2895_v46  ;;  %v2817_v32 = vpop.xlane.xlu1 %2816  ;;  %4879 = vmatprep.mubr.msk.bf16.mxu1 %vm447_vm1, %v2928_v43  ;;  %v2877_v42 = vmul.f32 %v5068_v17, %v6536_v12  ;;  %v2896_v54 = vmul.f32 %v6894_v60, %v2876_v30 }
 0x97b   :  { %v5070_v4 = vpop.eup %5069  ;;  %5079 = vrsqrt.f32 %v2851_v13  ;;  %v2852_v36 = vadd.f32 1e-05, %v2836_v2  ;;  %v2837_v55 = vmul.f32 0.015625, %v2817_v32 }
 0x97c   :  { %v2820_v62 = vpop.xlane.xlu0 %2819  ;;  %v2929_v37 = vpack.c.bf16 %v2915_v35, %v2914_v39  ;;  %v2897_v27 = vmul.f32 %v6894_v60, %v2877_v42  ;;  %v2878_v1 = vmul.f32 %v5070_v4, %v6543_v33  ;;  %v2916_v12 = vadd.f32 %v6899_v9, %v2896_v54 }
 0x97d   :  { %v5072_v57 = vpop.eup %5071  ;;  %5081 = vrsqrt.f32 %v2852_v36  ;;  %v2853_v48 = vadd.f32 1e-05, %v2837_v55  ;;  %v2838_v53 = vmul.f32 0.015625, %v2820_v62 }
 0x97e   :  { %v2823_v46 = vpop.xlane.xlu1 %2822  ;;  %4880 = vmatmul.mubr.msk.bf16.vlgmr.msra.gmra.mrb[80].mxu1 %vm447_vm1, %v2929_v37  ;;  %v2917_v38 = vadd.f32 %v6899_v9, %v2897_v27  ;;  %v2879_v43 = vmul.f32 %v5072_v57, %v6550_v56  ;;  %v2898_v30 = vmul.f32 %v6894_v60, %v2878_v1  ;;  %v8795_v1 = vmax.f32 %v6605_v31, 0.0 }
 0x97f   :  { %v5074_v17 = vpop.eup %5073  ;;  %5083 = vrsqrt.f32 %v2853_v48  ;;  %v2854_v13 = vadd.f32 1e-05, %v2838_v53  ;;  %v2839_v2 = vmul.f32 0.015625, %v2823_v46 }
 0x980   :  { %v977_v33 = vpop.xlane.xlu0 %976  ;;  %v2930_v39 = vpack.c.bf16 %v2917_v38, %v2916_v12  ;;  %v2899_v35 = vmul.f32 %v6894_v60, %v2879_v43  ;;  %v2880_v32 = vmul.f32 %v5074_v17, %v6557_v59  ;;  %v2918_v56 = vadd.f32 %v6899_v9, %v2898_v30 }
 0x981   :  { %v5076_v42 = vpop.eup %5075  ;;  %5085 = vrsqrt.f32 %v2854_v13  ;;  %v2855_v4 = vadd.f32 1e-05, %v2839_v2  ;;  %v1024_v54 = vmul.f32 0.03125, %v977_v33  ;;  %v8796_v43 = vmax.f32 %v6616_v23, 0.0 }
 0x982   :  { %4883 = vmatprep.mubr.msk.bf16.mxu1 %vm447_vm1, %v2930_v39  ;;  %v980_v36 = vpop.xlane.xlu1 %979  ;;  %v2919_v55 = vadd.f32 %v6899_v9, %v2899_v35  ;;  %v2881_v62 = vmul.f32 %v5076_v42, %v6564_v5  ;;  %v2900_v37 = vmul.f32 %v6894_v60, %v2880_v32  ;;  %v8797_v23 = vmax.f32 %v6627_v58, 0.0 }
 0x983   :  { %v5078_v27 = vpop.eup %5077  ;;  %5087 = vrsqrt.f32 %v2855_v4  ;;  %v6932_v59 = vsub.f32 %v8795_v1, %v1024_v54  ;;  %v1025_v57 = vmul.f32 0.03125, %v980_v36  ;;  %v8798_v58 = vmax.f32 %v6635_v51, 0.0 }
 0x984   :  { %v983_v48 = vpop.xlane.xlu0 %982  ;;  %v2931_v53 = vpack.c.bf16 %v2919_v55, %v2918_v56  ;;  %v2901_v46 = vmul.f32 %v6894_v60, %v2881_v62  ;;  %v2882_v12 = vmul.f32 %v5078_v27, %v6574_v3  ;;  %v2920_v13 = vadd.f32 %v6899_v9, %v2900_v37 }
 0x985   :  { %v5080_v38 = vpop.eup %5079  ;;  %v6938_v30 = vsub.f32 %v8796_v43, %v1025_v57  ;;  %v1026_v5 = vmul.f32 0.03125, %v983_v48  ;;  %v1056_v17 = vmul.f32 %v6932_v59, %v6932_v59  ;;  %v8799_v51 = vmax.f32 %v6642_v7, 0.0 }
 0x986   :  { %4884 = vmatmul.mubr.msk.bf16.gmra.mrb[84].mxu1 %vm447_vm1, %v2931_v53  ;;  %v986_v31 = vpop.xlane.xlu1 %985  ;;  %v2921_v2 = vadd.f32 %v6899_v9, %v2901_v46  ;;  %v2883_v33 = vmul.f32 %v5080_v38, %v6581_v47  ;;  %v2902_v3 = vmul.f32 %v6894_v60, %v2882_v12  ;;  %v8800_v7 = vmax.f32 %v6653_v14, 0.0 }
 0x987   :  { %v5082_v39 = vpop.eup %5081  ;;  %v6949_v35 = vsub.f32 %v8797_v23, %v1026_v5  ;;  %v1027_v32 = vmul.f32 0.03125, %v986_v31  ;;  %v1072_v42 = vsel %vm309_vm0, %v1056_v17, 0.0  ;;  %v1057_v4 = vmul.f32 %v6938_v30, %v6938_v30 }
 0x988   :  { %1073 = vadd.xlane.f32.xlu0 %v1072_v42  ;;  %v989_v54 = vpop.xlane.xlu0 %988  ;;  %v2932_v36 = vpack.c.bf16 %v2921_v2, %v2920_v13  ;;  %v2903_v56 = vmul.f32 %v6894_v60, %v2883_v33  ;;  %v2922_v47 = vadd.f32 %v6899_v9, %v2902_v3  ;;  %v2884_v55 = vmul.f32 %v5082_v39, %v6591_v0 }
 0x989   :  { %v5084_v62 = vpop.eup %5083  ;;  %v6959_v37 = vsub.f32 %v8798_v58, %v1027_v32  ;;  %v1028_v27 = vmul.f32 0.03125, %v989_v54  ;;  %v1075_v1 = vsel %vm309_vm0, %v1057_v4, 0.0  ;;  %v1058_v57 = vmul.f32 %v6949_v35, %v6949_v35 }
 0x98a   :  { %4887 = vmatprep.mubr.msk.bf16.mxu1 %vm447_vm1, %v2932_v36  ;;  %1076 = vadd.xlane.f32.xlu1 %v1075_v1  ;;  %v992_v48 = vpop.xlane.xlu1 %991  ;;  %v2923_v53 = vadd.f32 %v6899_v9, %v2903_v56  ;;  %v2885_v46 = vmul.f32 %v5084_v62, %v6598_v41  ;;  %v2904_v0 = vmul.f32 %v6894_v60, %v2884_v55  ;;  %v8801_v14 = vmax.f32 %v6660_v28, 0.0 }
 0x98b   :  { %v5086_v12 = vpop.eup %5085  ;;  %v6970_v38 = vsub.f32 %v8799_v51, %v1028_v27  ;;  %v1029_v43 = vmul.f32 0.03125, %v992_v48  ;;  %v1078_v5 = vsel %vm309_vm0, %v1058_v57, 0.0  ;;  %v1059_v17 = vmul.f32 %v6959_v37, %v6959_v37 }
 0x98c   :  { %1079 = vadd.xlane.f32.xlu0 %v1078_v5  ;;  %v995_v31 = vpop.xlane.xlu0 %994  ;;  %v2933_v13 = vpack.c.bf16 %v2923_v53, %v2922_v47  ;;  %v2905_v2 = vmul.f32 %v6894_v60, %v2885_v46  ;;  %v2924_v41 = vadd.f32 %v6899_v9, %v2904_v0  ;;  %v2886_v33 = vmul.f32 %v5086_v12, %v6609_v50  ;;  %v5361_v12 = vld [vmem:[%s8637_s2 + $0xb0] sm:$0xff]  }
 0x98d   :  { %v5088_v3 = vpop.eup %5087  ;;  %v6980_v39 = vsub.f32 %v8800_v7, %v1029_v43  ;;  %v1030_v23 = vmul.f32 0.03125, %v995_v31  ;;  %v1081_v32 = vsel %vm309_vm0, %v1059_v17, 0.0  ;;  %v1060_v42 = vmul.f32 %v6970_v38, %v6970_v38 }
 0x98e   :  { %4888 = vmatmul.mubr.msk.bf16.gmra.mrb[88].mxu1 %vm447_vm1, %v2933_v13  ;;  %1082 = vadd.xlane.f32.xlu1 %v1081_v32  ;;  %v998_v4 = vpop.xlane.xlu1 %997  ;;  %v2925_v54 = vadd.f32 %v6899_v9, %v2905_v2  ;;  %v2887_v36 = vmul.f32 %v5088_v3, %v6620_v11  ;;  %v2906_v50 = vmul.f32 %v6894_v60, %v2886_v33  ;;  %v8803_v1 = vmax.f32 %v6671_v6, 0.0 }
 0x98f   :  { %v6991_v56 = vsub.f32 %v8801_v14, %v1030_v23  ;;  %v1031_v47 = vmul.f32 0.03125, %v998_v4  ;;  %v1084_v55 = vsel %vm309_vm0, %v1060_v42, 0.0  ;;  %v1061_v62 = vmul.f32 %v6980_v39, %v6980_v39 }
 0x990   :  { %1085 = vadd.xlane.f32.xlu0 %v1084_v55  ;;  %v2934_v58 = vpack.c.bf16 %v2925_v54, %v2924_v41  ;;  %v2907_v27 = vmul.f32 %v6894_v60, %v2887_v36  ;;  %v2926_v48 = vadd.f32 %v6899_v9, %v2906_v50 }
 0x991   :  { %8802 = vst [vmem:[#allocation5_spill] sm:$0xff] %v6991_v56  ;;  %v6999_v57 = vsub.f32 %v8803_v1, %v1031_v47  ;;  %v1087_v11 = vsel %vm309_vm0, %v1061_v62, 0.0  ;;  %v1062_v28 = vmul.f32 %v6991_v56, %v6991_v56  ;;  %v5363_v1 = vld [vmem:[%s8637_s2 + $0xb8] sm:$0xff]  }
 0x992   :  { %4891 = vmatprep.mubr.msk.bf16.mxu1 %vm447_vm1, %v2934_v58  ;;  %1088 = vadd.xlane.f32.xlu1 %v1087_v11  ;;  %v2927_v53 = vadd.f32 %v6899_v9, %v2907_v27  ;;  %v5362_v27 = vld [vmem:[%s8637_s2 + $0x88] sm:$0xff]   ;;  %v5364_v11 = vld [vmem:[%s8637_s2 + $0x90] sm:$0xff]  }
 0x993   :  { %8804 = vst [vmem:[#allocation10_spill] sm:$0xff] %v6999_v57  ;;  %v1090_v46 = vsel %vm309_vm0, %v1062_v28, 0.0  ;;  %v1063_v60 = vmul.f32 %v6999_v57, %v6999_v57  ;;  %v5365_v28 = vld [vmem:[%s8637_s2 + $0x98] sm:$0xff]  }
 0x994   :  { %1091 = vadd.xlane.f32.xlu0 %v1090_v46  ;;  %v2935_v6 = vpack.c.bf16 %v2927_v53, %v2926_v48  ;;  %v5366_v48 = vld [vmem:[%s8637_s2 + $0xa0] sm:$0xff]   ;;  %v5367_v53 = vld [vmem:[%s8637_s2 + $0xa8] sm:$0xff]  }
 0x995   :  { %v1093_v0 = vsel %vm309_vm0, %v1063_v60, 0.0  ;;  %v4410_v46 = vld [vmem:[%s8641_s6 + $0x8] sm:$0x7] }
 0x996   :  { %4892 = vmatmul.mubr.msk.bf16.gmra.mrb[92].mxu1 %vm447_vm1, %v2935_v6  ;;  %1094 = vadd.xlane.f32.xlu1 %v1093_v0  ;;  %v7037_v60 = vrot.slane %v4410_v46, %v5531_v44  ;;  %v7039_v6 = vpop.xlane.xlu0 %1000  ;;  %v7041_v0 = vpop.xlane.xlu1 %1003 }
 0x997   :  { %4923 = vmatprep.mubr.bf16.mxu1 %v5361_v12 }
 0xa51   :  { %v4881_v51 = vpop.f32.mrb[80].mxu1 }
 0xa52   :  { %v3018_v43 = vpop.f32.mrb[81].mxu1 }
 0xa53   :  { %v4882_v9 = vpop.f32.mrb[82].mxu1 }
 0xa54   :  { %v3082_v5 = vpack.c.bf16 %v4882_v9, %v4881_v51  ;;  %v3021_v17 = vpop.f32.mrb[83].mxu1 }
 0xa55   :  { %v3081_v31 = vpack.c.bf16 %v3021_v17, %v3018_v43 }
 0xa57   :  { %4895 = vmatprep.subr.bf16.mxu0 %v3081_v31  ;;  %4927 = vmatprep.subr.bf16.mxu1 %v3081_v31 }
 0xa58   :  { %4896 = vmatpush3.bf16.msra.mxu0 %v3081_v31  ;;  %4935 = vmatpush3.bf16.msra.mxu1 %v3081_v31 }
 0xa59   :  { %v4885_v13 = vpop.f32.mrb[84].mxu1  ;;  %4897 = vmatprep.subr.bf16.mxu0 %v3082_v5  ;;  %4928 = vmatprep.subr.bf16.mxu1 %v3082_v5 }
 0xa5a   :  { %v3034_v2 = vpop.f32.mrb[85].mxu1 }
 0xa5b   :  { %v4886_v41 = vpop.f32.mrb[86].mxu1 }
 0xa5c   :  { %v3084_v33 = vpack.c.bf16 %v4886_v41, %v4885_v13  ;;  %v3037_v3 = vpop.f32.mrb[87].mxu1  ;;  %4898 = vmatpush3.bf16.msra.mxu0 %v3082_v5  ;;  %4936 = vmatpush3.bf16.msra.mxu1 %v3082_v5 }
 0xa5d   :  { %v3083_v7 = vpack.c.bf16 %v3037_v3, %v3034_v2 }
 0xa5f   :  { %4899 = vmatprep.subr.bf16.mxu0 %v3083_v7  ;;  %4929 = vmatprep.subr.bf16.mxu1 %v3083_v7 }
 0xa60   :  { %4900 = vmatpush3.bf16.msra.mxu0 %v3083_v7  ;;  %4937 = vmatpush3.bf16.msra.mxu1 %v3083_v7 }
 0xa61   :  { %v4889_v23 = vpop.f32.mrb[88].mxu1  ;;  %4901 = vmatprep.subr.bf16.mxu0 %v3084_v33  ;;  %4930 = vmatprep.subr.bf16.mxu1 %v3084_v33 }
 0xa62   :  { %v3050_v32 = vpop.f32.mrb[89].mxu1 }
 0xa63   :  { %v4890_v42 = vpop.f32.mrb[90].mxu1 }
 0xa64   :  { %v3086_v4 = vpack.c.bf16 %v4890_v42, %v4889_v23  ;;  %v3053_v54 = vpop.f32.mrb[91].mxu1  ;;  %4902 = vmatpush3.bf16.msra.mxu0 %v3084_v33  ;;  %4938 = vmatpush3.bf16.msra.mxu1 %v3084_v33 }
 0xa65   :  { %v3085_v36 = vpack.c.bf16 %v3053_v54, %v3050_v32  ;;  %v7064_v54 = vpop.xlane.xlu0 %1006 }
 0xa67   :  { %4903 = vmatprep.subr.bf16.mxu0 %v3085_v36  ;;  %4931 = vmatprep.subr.bf16.mxu1 %v3085_v36 }
 0xa68   :  { %4904 = vmatpush3.bf16.msra.mxu0 %v3085_v36  ;;  %4939 = vmatpush3.bf16.msra.mxu1 %v3085_v36 }
 0xa69   :  { %v4893_v50 = vpop.f32.mrb[92].mxu1  ;;  %4905 = vmatprep.subr.bf16.mxu0 %v3086_v4  ;;  %4932 = vmatprep.subr.bf16.mxu1 %v3086_v4 }
 0xa6a   :  { %v3066_v14 = vpop.f32.mrb[93].mxu1 }
 0xa6b   :  { %v4894_v47 = vpop.f32.mrb[94].mxu1 }
 0xa6c   :  { %v3088_v55 = vpack.c.bf16 %v4894_v47, %v4893_v50  ;;  %v3069_v62 = vpop.f32.mrb[95].mxu1  ;;  %4906 = vmatpush3.bf16.msra.mxu0 %v3086_v4  ;;  %4940 = vmatpush3.bf16.msra.mxu1 %v3086_v4 }
 0xa6d   :  { %v3087_v58 = vpack.c.bf16 %v3069_v62, %v3066_v14 }
 0xa6f   :  { %4907 = vmatprep.subr.bf16.mxu0 %v3087_v58  ;;  %4933 = vmatprep.subr.bf16.mxu1 %v3087_v58 }
 0xa70   :  { %4908 = vmatpush3.bf16.msra.mxu0 %v3087_v58  ;;  %4941 = vmatpush3.bf16.msra.mxu1 %v3087_v58 }
 0xa71   :  { %4909 = vmatprep.subr.bf16.mxu0 %v3088_v55  ;;  %4934 = vmatprep.subr.bf16.mxu1 %v3088_v55 }
 0xa74   :  { %4910 = vmatpush3.bf16.msra.mxu0 %v3088_v55  ;;  %4942 = vmatpush3.bf16.msra.mxu1 %v3088_v55  ;;  %v7076_v55 = vpop.xlane.xlu1 %1009 }
 0xa77   :  { %4912 = vmatmul.mubr.bf16.vlgmr.msra.gmra.mrb[80].mxu0 %v5362_v27  ;;  %4924 = vmatmul.mubr.bf16.vlgmr.msra.gmra.mrb[96].mxu1 %v5363_v1 }
 0xa78   :  { %4915 = vmatprep.mubr.bf16.mxu0 %v5364_v11 }
 0xa7f   :  { %4916 = vmatmul.mubr.bf16.gmra.mrb[84].mxu0 %v5365_v28 }
 0xa80   :  { %4919 = vmatprep.mubr.bf16.mxu0 %v5366_v48 }
 0xa87   :  { %4920 = vmatmul.mubr.bf16.gmra.mrb[88].mxu0 %v5367_v53 }
 0xb4a   :  { %v4913_v12 = vpop.f32.mrb[80].mxu0  ;;  %v4925_v51 = vpop.f32.mrb[96].mxu1 }
 0xb4b   :  { %v7044_v43 = vadd.f32 %v4913_v12, %v7037_v60  ;;  %v3127_v9 = vpop.f32.mrb[81].mxu0  ;;  %v7047_v5 = vadd.f32 %v4925_v51, %v7037_v60  ;;  %v3175_v17 = vpop.f32.mrb[97].mxu1 }
 0xb4c   :  { %v4914_v31 = vpop.f32.mrb[82].mxu0  ;;  %v4926_v13 = vpop.f32.mrb[98].mxu1  ;;  %v7058_v32 = vadd.f32 %v3127_v9, %v7037_v60  ;;  %v7080_v27 = vadd.f32 %v3175_v17, %v7037_v60 }
 0xb4d   :  { %v8708_v2 = vmax.f32 %v7044_v43, 0.0  ;;  %v7051_v41 = vadd.f32 %v4914_v31, %v7037_v60  ;;  %v8705_v33 = vmax.f32 %v7047_v5, 0.0  ;;  %v3130_v3 = vpop.f32.mrb[83].mxu0  ;;  %v7055_v7 = vadd.f32 %v4926_v13, %v7037_v60  ;;  %v3178_v23 = vpop.f32.mrb[99].mxu1 }
 0xb4e   :  { %v7067_v36 = vadd.f32 %v3130_v3, %v7037_v60  ;;  %v8701_v58 = vmax.f32 %v7058_v32, 0.0  ;;  %v7083_v11 = vadd.f32 %v3178_v23, %v7037_v60  ;;  %v1013_v51 = vpop.xlane.xlu0 %1012  ;;  %v8703_v9 = vmax.f32 %v7080_v27, 0.0  ;;  %v1016_v31 = vpop.xlane.xlu1 %1015 }
 0xb4f   :  { %v8707_v42 = vmax.f32 %v7051_v41, 0.0  ;;  %v3212_v4 = vsel %vm309_vm0, %v8708_v2, 0.0  ;;  %v8702_v50 = vmax.f32 %v7055_v7, 0.0  ;;  %v3248_v47 = vsel %vm309_vm0, %v8705_v33, 0.0 }
 0xb50   :  { %3213 = vadd.xlane.f32.xlu0 %v3212_v4  ;;  %v8704_v48 = vmax.f32 %v7067_v36, 0.0  ;;  %v3206_v17 = vsel %vm309_vm0, %v8701_v58, 0.0  ;;  %v8706_v13 = vmax.f32 %v7083_v11, 0.0 }
 0xb51   :  { %v3215_v14 = vsel %vm309_vm0, %v8707_v42, 0.0  ;;  %v3251_v53 = vsel %vm309_vm0, %v8702_v50, 0.0  ;;  %v1033_v42 = vmul.f32 0.03125, %v7041_v0  ;;  %v1034_v0 = vmul.f32 0.03125, %v7064_v54 }
 0xb52   :  { %3216 = vadd.xlane.f32.xlu1 %v3215_v14  ;;  %v4917_v62 = vpop.f32.mrb[84].mxu0  ;;  %v3209_v4 = vsel %vm309_vm0, %v8704_v48, 0.0  ;;  %v1022_v33 = vpop.xlane.xlu1 %1021  ;;  %v8810_v54 = vmax.f32 %v6698_v8, 0.0 }
 0xb53   :  { %v3143_v1 = vpop.f32.mrb[85].mxu0  ;;  %v7090_v46 = vadd.f32 %v4917_v62, %v7037_v60  ;;  %v3242_v62 = vsel %vm309_vm0, %v8703_v9, 0.0 }
 0xb54   :  { %3249 = vadd.xlane.f32.xlu0 %v3248_v47  ;;  %v4918_v28 = vpop.f32.mrb[86].mxu0  ;;  %v7105_v47 = vadd.f32 %v3143_v1, %v7037_v60 }
 0xb55   :  { %v3146_v12 = vpop.f32.mrb[87].mxu0  ;;  %v8709_v3 = vmax.f32 %v7090_v46, 0.0  ;;  %v7099_v23 = vadd.f32 %v4918_v28, %v7037_v60  ;;  %v3245_v28 = vsel %vm309_vm0, %v8706_v13, 0.0 }
 0xb56   :  { %3252 = vadd.xlane.f32.xlu1 %v3251_v53  ;;  %v2096_v13 = vpop.xlane.xlu1 %2095 }
 0xb57   :  { %v8711_v50 = vmax.f32 %v7099_v23, 0.0  ;;  %v3224_v9 = vsel %vm309_vm0, %v8709_v3, 0.0  ;;  %v1032_v3 = vmul.f32 0.03125, %v7039_v6 }
 0xb58   :  { %3207 = vadd.xlane.f32.xlu0 %v3206_v17  ;;  %v1019_v17 = vpop.xlane.xlu0 %1018 }
 0xb5a   :  { %3210 = vadd.xlane.f32.xlu1 %v3209_v4  ;;  %v4921_v14 = vpop.f32.mrb[88].mxu0  ;;  %v7115_v4 = vadd.f32 %v3146_v12, %v7037_v60 }
 0xb5b   :  { %v3159_v53 = vpop.f32.mrb[89].mxu0  ;;  %v7118_v1 = vadd.f32 %v4921_v14, %v7037_v60  ;;  %v3227_v14 = vsel %vm309_vm0, %v8711_v50, 0.0 }
 0xb5c   :  { %3243 = vadd.xlane.f32.xlu0 %v3242_v62  ;;  %v4922_v58 = vpop.f32.mrb[90].mxu0  ;;  %v8712_v62 = vmax.f32 %v7105_v47, 0.0  ;;  %v2093_v2 = vpop.xlane.xlu0 %2092 }
 0xb5d   :  { %v3162_v48 = vpop.f32.mrb[91].mxu0  ;;  %v7127_v12 = vadd.f32 %v4922_v58, %v7037_v60 }
 0xb5e   :  { %3246 = vadd.xlane.f32.xlu1 %v3245_v28  ;;  %v7134_v28 = vadd.f32 %v3159_v53, %v7037_v60  ;;  %v7142_v44 = vadd.f32 %v3162_v48, %v7037_v60  ;;  %v8806_v53 = vmax.f32 %v7118_v1, 0.0  ;;  %v8808_v60 = vmax.f32 %v6691_v34, 0.0 }
 0xb60   :  { %3225 = vadd.xlane.f32.xlu0 %v3224_v9  ;;  %v3218_v9 = vsel %vm309_vm0, %v8712_v62, 0.0  ;;  %v3236_v50 = vsel %vm309_vm0, %v8806_v53, 0.0  ;;  %v8807_v62 = vmax.f32 %v6680_v15, 0.0  ;;  %v2099_v58 = vpop.xlane.xlu0 %2098  ;;  %v7158_v48 = vsub.f32 %v8808_v60, %v1033_v42 }
 0xb61   :  { %v8715_v56 = vmax.f32 %v7142_v44, 0.0  ;;  %v1036_v53 = vmul.f32 0.03125, %v1013_v51  ;;  %v1037_v60 = vmul.f32 0.03125, %v1016_v31 }
 0xb62   :  { %3228 = vadd.xlane.f32.xlu1 %v3227_v14  ;;  %v8805_v14 = vmax.f32 %v7115_v4, 0.0  ;;  %v7152_v57 = vsub.f32 %v8807_v62, %v1032_v3  ;;  %v2102_v3 = vpop.xlane.xlu1 %2101  ;;  %v7167_v62 = vsub.f32 %v8810_v54, %v1034_v0  ;;  %v1065_v51 = vmul.f32 %v7158_v48, %v7158_v48 }
 0xb63   :  { %v3233_v8 = vsel %vm309_vm0, %v8715_v56, 0.0  ;;  %v1038_v54 = vmul.f32 0.03125, %v1019_v17  ;;  %v1039_v56 = vmul.f32 0.03125, %v1022_v33  ;;  %v8814_v17 = vmax.f32 %v6733_v21, 0.0 }
 0xb64   :  { %3219 = vadd.xlane.f32.xlu0 %v3218_v9  ;;  %v3221_v6 = vsel %vm309_vm0, %v8805_v14, 0.0  ;;  %v8716_v9 = vmax.f32 %v7134_v28, 0.0  ;;  %v1035_v14 = vmul.f32 0.03125, %v7076_v55  ;;  %v1064_v42 = vmul.f32 %v7152_v57, %v7152_v57  ;;  %v2105_v0 = vpop.xlane.xlu0 %2104 }
 0xb65   :  { %v8815_v33 = vmax.f32 %v6744_v19, 0.0 }
 0xb66   :  { %3222 = vadd.xlane.f32.xlu1 %v3221_v6  ;;  %v8809_v6 = vmax.f32 %v7127_v12, 0.0  ;;  %v3230_v34 = vsel %vm309_vm0, %v8716_v9, 0.0  ;;  %v2108_v31 = vpop.xlane.xlu1 %2107  ;;  %v1099_v9 = vsel %vm309_vm0, %v1065_v51, 0.0  ;;  %v2140_v51 = vmul.f32 0.03125, %v2096_v13 }
 0xb68   :  { %3237 = vadd.xlane.f32.xlu0 %v3236_v50  ;;  %v3239_v15 = vsel %vm309_vm0, %v8809_v6, 0.0  ;;  %v8811_v50 = vmax.f32 %v6706_v40, 0.0  ;;  %v8812_v6 = vmax.f32 %v6715_v29, 0.0  ;;  %v1066_v40 = vmul.f32 %v7167_v62, %v7167_v62 }
 0xb6a   :  { %3240 = vadd.xlane.f32.xlu1 %v3239_v15  ;;  %v7176_v55 = vsub.f32 %v8811_v50, %v1035_v14  ;;  %v7185_v15 = vsub.f32 %v8812_v6, %v1036_v53  ;;  %v8813_v14 = vmax.f32 %v6726_v24, 0.0  ;;  %v7199_v53 = vsub.f32 %v8814_v17, %v1038_v54  ;;  %v2111_v24 = vpop.xlane.xlu0 %2110 }
 0xb6c   :  { %3231 = vadd.xlane.f32.xlu0 %v3230_v34  ;;  %v1096_v34 = vsel %vm309_vm0, %v1064_v42, 0.0  ;;  %v7192_v50 = vsub.f32 %v8813_v14, %v1037_v60  ;;  %v1067_v29 = vmul.f32 %v7176_v55, %v7176_v55  ;;  %v2139_v42 = vmul.f32 0.03125, %v2093_v2 }
 0xb6d   :  { %v1068_v6 = vmul.f32 %v7185_v15, %v7185_v15  ;;  %v7206_v60 = vsub.f32 %v8815_v33, %v1039_v56  ;;  %v8816_v2 = vmax.f32 %v6753_v16, 0.0  ;;  %v1070_v19 = vmul.f32 %v7199_v53, %v7199_v53 }
 0xb6e   :  { %3234 = vadd.xlane.f32.xlu1 %v3233_v8  ;;  %v1102_v8 = vsel %vm309_vm0, %v1066_v40, 0.0  ;;  %v1069_v21 = vmul.f32 %v7192_v50, %v7192_v50  ;;  %v2141_v40 = vmul.f32 0.03125, %v2099_v58  ;;  %v8817_v56 = vmax.f32 %v6761_v26, 0.0  ;;  %v2117_v16 = vpop.xlane.xlu0 %2116 }
 0xb6f   :  { %v7213_v54 = vsub.f32 %v8816_v2, %v2139_v42  ;;  %v1108_v14 = vsel %vm309_vm0, %v1068_v6, 0.0  ;;  %v8818_v58 = vmax.f32 %v6768_v49, 0.0  ;;  %v2143_v6 = vmul.f32 0.03125, %v2105_v0 }
 0xb70   :  { %1097 = vadd.xlane.f32.xlu0 %v1096_v34  ;;  %v1105_v34 = vsel %vm309_vm0, %v1067_v29, 0.0  ;;  %v7220_v13 = vsub.f32 %v8817_v56, %v2140_v51  ;;  %v2142_v29 = vmul.f32 0.03125, %v2102_v3  ;;  %v1111_v17 = vsel %vm309_vm0, %v1069_v21, 0.0 }
 0xb71   :  { %v7227_v42 = vsub.f32 %v8818_v58, %v2141_v40  ;;  %v1114_v33 = vsel %vm309_vm0, %v1070_v19, 0.0  ;;  %v2171_v26 = vmul.f32 %v7213_v54, %v7213_v54  ;;  %v8819_v3 = vmax.f32 %v6776_v20, 0.0 }
 0xb72   :  { %1100 = vadd.xlane.f32.xlu1 %v1099_v9  ;;  %v2114_v9 = vpop.xlane.xlu1 %2113  ;;  %v2144_v21 = vmul.f32 0.03125, %v2108_v31  ;;  %v2172_v49 = vmul.f32 %v7220_v13, %v7220_v13  ;;  %v8820_v0 = vmax.f32 %v6785_v61, 0.0  ;;  %v2123_v20 = vpop.xlane.xlu0 %2122  ;;  %v8821_v31 = vmax.f32 %v6793_v52, 0.0 }
 0xb73   :  { %v2187_v19 = vsel %vm309_vm0, %v2171_v26, 0.0  ;;  %v2173_v56 = vmul.f32 %v7227_v42, %v7227_v42 }
 0xb74   :  { %1103 = vadd.xlane.f32.xlu0 %v1102_v8  ;;  %v1071_v8 = vmul.f32 %v7206_v60, %v7206_v60  ;;  %v7241_v40 = vsub.f32 %v8820_v0, %v2143_v6 }
 0xb75   :  { %v2193_v26 = vsel %vm309_vm0, %v2173_v56, 0.0 }
 0xb76   :  { %1106 = vadd.xlane.f32.xlu1 %v1105_v34  ;;  %v2120_v51 = vpop.xlane.xlu1 %2119  ;;  %v7234_v34 = vsub.f32 %v8819_v3, %v2142_v29  ;;  %v1117_v2 = vsel %vm309_vm0, %v1071_v8, 0.0  ;;  %v7248_v29 = vsub.f32 %v8821_v31, %v2144_v21  ;;  %v2190_v8 = vsel %vm309_vm0, %v2172_v49, 0.0 }
 0xb77   :  { %v2175_v52 = vmul.f32 %v7241_v40, %v7241_v40  ;;  %v2148_v21 = vmul.f32 0.03125, %v2120_v51  ;;  %v8825_v51 = vmax.f32 %v6825_v22, 0.0 }
 0xb78   :  { %1109 = vadd.xlane.f32.xlu0 %v1108_v14  ;;  %v2145_v14 = vmul.f32 0.03125, %v2111_v24  ;;  %v2174_v61 = vmul.f32 %v7234_v34, %v7234_v34  ;;  %v8822_v24 = vmax.f32 %v6800_v63, 0.0  ;;  %v2176_v49 = vmul.f32 %v7248_v29, %v7248_v29  ;;  %v2129_v63 = vpop.xlane.xlu0 %2128 }
 0xb79   :  { %v7276_v31 = vsub.f32 %v8825_v51, %v2148_v21 }
 0xb7a   :  { %1112 = vadd.xlane.f32.xlu1 %v1111_v17  ;;  %v2146_v17 = vmul.f32 0.03125, %v2114_v9  ;;  %v2126_v58 = vpop.xlane.xlu1 %2125  ;;  %v7255_v6 = vsub.f32 %v8822_v24, %v2145_v14  ;;  %v8823_v9 = vmax.f32 %v6808_v25, 0.0  ;;  %v2149_v14 = vmul.f32 0.03125, %v2123_v20 }
 0xb7b   :  { %v8826_v20 = vmax.f32 %v6832_v10, 0.0  ;;  %v2151_v24 = vmul.f32 0.03125, %v2129_v63  ;;  %v2180_v10 = vmul.f32 %v7276_v31, %v7276_v31 }
 0xb7c   :  { %1115 = vadd.xlane.f32.xlu0 %v1114_v33  ;;  %v2147_v33 = vmul.f32 0.03125, %v2117_v16  ;;  %v7262_v3 = vsub.f32 %v8823_v9, %v2146_v17  ;;  %v8824_v16 = vmax.f32 %v6817_v18, 0.0  ;;  %v2177_v25 = vmul.f32 %v7255_v6, %v7255_v6  ;;  %v2135_v22 = vpop.xlane.xlu0 %2134 }
 0xb7d   :  { %v2150_v17 = vmul.f32 0.03125, %v2126_v58  ;;  %v8828_v58 = vmax.f32 %v6840_v45, 0.0 }
 0xb7e   :  { %1118 = vadd.xlane.f32.xlu1 %v1117_v2  ;;  %v2196_v2 = vsel %vm309_vm0, %v2174_v61, 0.0  ;;  %v7269_v0 = vsub.f32 %v8824_v16, %v2147_v33  ;;  %v2132_v56 = vpop.xlane.xlu1 %2131  ;;  %v2178_v18 = vmul.f32 %v7262_v3, %v7262_v3  ;;  %v7283_v61 = vsub.f32 %v8826_v20, %v2149_v14  ;;  %v8836_v20 = vld [vmem:[#allocation8_spill] sm:$0xff] }
 0xb7f   :  { %v2205_v33 = vsel %vm309_vm0, %v2177_v25, 0.0  ;;  %v2152_v9 = vmul.f32 0.03125, %v2132_v56  ;;  %v2153_v14 = vmul.f32 0.03125, %v2135_v22  ;;  %v8833_v25 = vld [vmem:[#allocation7_spill] sm:$0xff] }
 0xb80   :  { %2188 = vadd.xlane.f32.xlu0 %v2187_v19  ;;  %v2199_v19 = vsel %vm309_vm0, %v2175_v52, 0.0  ;;  %8827 = vst [vmem:[#allocation11_spill] sm:$0xff] %v7283_v61  ;;  %v7290_v52 = vsub.f32 %v8828_v58, %v2150_v17  ;;  %v2208_v21 = vsel %vm309_vm0, %v2178_v18, 0.0  ;;  %v2181_v45 = vmul.f32 %v7283_v61, %v7283_v61  ;;  %v8839_v58 = vld [vmem:[#allocation9_spill] sm:$0xff] }
 0xb81   :  { %v8834_v56 = vmax.f32 %v8833_v25, 0.0  ;;  %v8844_v61 = vmax.f32 %v7047_v5, 0.0 }
 0xb82   :  { %2191 = vadd.xlane.f32.xlu1 %v2190_v8  ;;  %v2202_v8 = vsel %vm309_vm0, %v2176_v49, 0.0  ;;  %8829 = vst [vmem:[#allocation12_spill] sm:$0xff] %v7290_v52  ;;  %v8830_v49 = vld [vmem:[#allocation6_spill] sm:$0xff]  ;;  %v2182_v18 = vmul.f32 %v7290_v52, %v7290_v52 }
 0xb83   :  { %v8831_v63 = vmax.f32 %v8830_v49, 0.0  ;;  %v7304_v51 = vsub.f32 %v8834_v56, %v2152_v9  ;;  %v8840_v9 = vmax.f32 %v8839_v58, 0.0  ;;  %v1074_v56 = vpop.xlane.xlu0 %1073 }
 0xb84   :  { %2194 = vadd.xlane.f32.xlu0 %v2193_v26  ;;  %v2179_v26 = vmul.f32 %v7269_v0, %v7269_v0  ;;  %v1120_v58 = vmul.f32 0.03125, %v1074_v56 }
 0xb85   :  { %v7297_v16 = vsub.f32 %v8831_v63, %v2151_v24  ;;  %8835 = vst [vmem:[#allocation7_spill] sm:$0xff] %v7304_v51  ;;  %v8837_v24 = vmax.f32 %v8836_v20, 0.0 }
 0xb86   :  { %2197 = vadd.xlane.f32.xlu1 %v2196_v2  ;;  %v2138_v2 = vpop.xlane.xlu1 %2137 }
 0xb87   :  { %8832 = vst [vmem:[#allocation6_spill] sm:$0xff] %v7297_v16  ;;  %v2154_v17 = vmul.f32 0.03125, %v2138_v2  ;;  %v2183_v22 = vmul.f32 %v7297_v16, %v7297_v16  ;;  %v2184_v2 = vmul.f32 %v7304_v51, %v7304_v51 }
 0xb88   :  { %2200 = vadd.xlane.f32.xlu0 %v2199_v19  ;;  %v2211_v19 = vsel %vm309_vm0, %v2179_v26, 0.0  ;;  %v2217_v26 = vsel %vm309_vm0, %v2181_v45, 0.0 }
 0xb89   :  { %v2223_v49 = vsel %vm309_vm0, %v2183_v22, 0.0 }
 0xb8a   :  { %2203 = vadd.xlane.f32.xlu1 %v2202_v8  ;;  %v2214_v8 = vsel %vm309_vm0, %v2180_v10, 0.0  ;;  %v2220_v10 = vsel %vm309_vm0, %v2182_v18, 0.0 }
 0xb8c   :  { %2206 = vadd.xlane.f32.xlu0 %v2205_v33  ;;  %v7311_v33 = vsub.f32 %v8837_v24, %v2153_v14  ;;  %v2226_v14 = vsel %vm309_vm0, %v2184_v2, 0.0 }
 0xb8e   :  { %2209 = vadd.xlane.f32.xlu1 %v2208_v21  ;;  %8838 = vst [vmem:[#allocation8_spill] sm:$0xff] %v7311_v33  ;;  %v7318_v21 = vsub.f32 %v8840_v9, %v2154_v17  ;;  %v2185_v63 = vmul.f32 %v7311_v33, %v7311_v33  ;;  %v1077_v17 = vpop.xlane.xlu1 %1076  ;;  %v8843_v33 = vmax.f32 %v7051_v41, 0.0 }
 0xb8f   :  { %v1121_v2 = vmul.f32 0.03125, %v1077_v17 }
 0xb90   :  { %2212 = vadd.xlane.f32.xlu0 %v2211_v19  ;;  %8841 = vst [vmem:[#allocation9_spill] sm:$0xff] %v7318_v21  ;;  %v2186_v19 = vmul.f32 %v7318_v21, %v7318_v21  ;;  %v2229_v45 = vsel %vm309_vm0, %v2185_v63, 0.0 }
 0xb91   :  { %v1137_v52 = vadd.f32 1e-05, %v1121_v2 }
 0xb92   :  { %2215 = vadd.xlane.f32.xlu1 %v2214_v8  ;;  %v2232_v25 = vsel %vm309_vm0, %v2186_v19, 0.0  ;;  %v1080_v8 = vpop.xlane.xlu0 %1079  ;;  %v1083_v18 = vpop.xlane.xlu1 %1082  ;;  %v1136_v19 = vadd.f32 1e-05, %v1120_v58 }
 0xb94   :  { %2218 = vadd.xlane.f32.xlu0 %v2217_v26  ;;  %5089 = vrsqrt.f32 %v1136_v19  ;;  %v8846_v19 = vmax.f32 %v7058_v32, 0.0 }
 0xb95   :  { %5091 = vrsqrt.f32 %v1137_v52  ;;  %v8847_v52 = vmax.f32 %v7067_v36, 0.0 }
 0xb96   :  { %2221 = vadd.xlane.f32.xlu1 %v2220_v10  ;;  %v1086_v20 = vpop.xlane.xlu0 %1085  ;;  %v1089_v24 = vpop.xlane.xlu1 %1088 }
 0xb98   :  { %2224 = vadd.xlane.f32.xlu0 %v2223_v49 }
 0xb9a   :  { %2227 = vadd.xlane.f32.xlu1 %v2226_v14  ;;  %v1092_v26 = vpop.xlane.xlu0 %1091  ;;  %v1095_v22 = vpop.xlane.xlu1 %1094  ;;  %v8842_v14 = vmax.f32 %v7044_v43, 0.0 }
 0xb9c   :  { %2230 = vadd.xlane.f32.xlu0 %v2229_v45 }
 0xb9e   :  { %2233 = vadd.xlane.f32.xlu1 %v2232_v25  ;;  %v1122_v25 = vmul.f32 0.03125, %v1080_v8 }
 0xba0   :  { %v1138_v41 = vadd.f32 1e-05, %v1122_v25 }
 0xba2   :  { %5093 = vrsqrt.f32 %v1138_v41  ;;  %v8848_v41 = vmax.f32 %v7080_v27, 0.0 }
 0xbdd   :  { %v3214_v9 = vpop.xlane.xlu0 %3213 }
 0xbde   :  { %v3256_v10 = vmul.f32 0.03125, %v3214_v9  ;;  %v1123_v9 = vmul.f32 0.03125, %v1083_v18 }
 0xbdf   :  { %v3217_v49 = vpop.xlane.xlu1 %3216 }
 0xbe0   :  { %v7333_v63 = vsub.f32 %v8842_v14, %v3256_v10  ;;  %v3257_v45 = vmul.f32 0.03125, %v3217_v49  ;;  %v8845_v49 = vmax.f32 %v7055_v7, 0.0  ;;  %v1125_v14 = vmul.f32 0.03125, %v1089_v24 }
 0xbe1   :  { %v3250_v21 = vpop.xlane.xlu0 %3249 }
 0xbe2   :  { %v7337_v51 = vsub.f32 %v8843_v33, %v3257_v45  ;;  %v3268_v16 = vmul.f32 0.03125, %v3250_v21  ;;  %v3288_v56 = vmul.f32 %v7333_v63, %v7333_v63  ;;  %v1124_v33 = vmul.f32 0.03125, %v1086_v20 }
 0xbe3   :  { %v3253_v17 = vpop.xlane.xlu1 %3252 }
 0xbe4   :  { %v7343_v43 = vsub.f32 %v8844_v61, %v3268_v16  ;;  %v3269_v10 = vmul.f32 0.03125, %v3253_v17  ;;  %v3308_v58 = vsel %vm309_vm0, %v3288_v56, 0.0  ;;  %v3289_v8 = vmul.f32 %v7337_v51, %v7337_v51 }
 0xbe5   :  { %3309 = vadd.xlane.f32.xlu0 %v3308_v58  ;;  %v3208_v21 = vpop.xlane.xlu0 %3207  ;;  %v1139_v16 = vadd.f32 1e-05, %v1123_v9  ;;  %v1140_v17 = vadd.f32 1e-05, %v1124_v33 }
 0xbe6   :  { %v7350_v2 = vsub.f32 %v8845_v49, %v3269_v10  ;;  %v3254_v18 = vmul.f32 0.03125, %v3208_v21  ;;  %v3311_v5 = vsel %vm309_vm0, %v3289_v8, 0.0  ;;  %v3300_v61 = vmul.f32 %v7343_v43, %v7343_v43 }
 0xbe7   :  { %3312 = vadd.xlane.f32.xlu1 %v3311_v5  ;;  %v3211_v45 = vpop.xlane.xlu1 %3210  ;;  %v1126_v10 = vmul.f32 0.03125, %v1092_v26  ;;  %5095 = vrsqrt.f32 %v1139_v16  ;;  %v1141_v21 = vadd.f32 1e-05, %v1125_v14  ;;  %v1127_v49 = vmul.f32 0.03125, %v1095_v22 }
 0xbe8   :  { %v7357_v20 = vsub.f32 %v8846_v19, %v3254_v18  ;;  %v3255_v25 = vmul.f32 0.03125, %v3211_v45  ;;  %v3344_v7 = vsel %vm309_vm0, %v3300_v61, 0.0  ;;  %v3301_v56 = vmul.f32 %v7350_v2, %v7350_v2 }
 0xbe9   :  { %3345 = vadd.xlane.f32.xlu0 %v3344_v7  ;;  %v3244_v58 = vpop.xlane.xlu0 %3243  ;;  %5097 = vrsqrt.f32 %v1140_v17  ;;  %v1142_v61 = vadd.f32 1e-05, %v1126_v10  ;;  %v8849_v16 = vmax.f32 %v7083_v11, 0.0  ;;  %v1143_v7 = vadd.f32 1e-05, %v1127_v49 }
 0xbea   :  { %v7364_v24 = vsub.f32 %v8847_v52, %v3255_v25  ;;  %v3266_v9 = vmul.f32 0.03125, %v3244_v58  ;;  %v3347_v32 = vsel %vm309_vm0, %v3301_v56, 0.0  ;;  %v3286_v8 = vmul.f32 %v7357_v20, %v7357_v20  ;;  %v5090_v25 = vpop.eup %5089 }
 0xbeb   :  { %3348 = vadd.xlane.f32.xlu1 %v3347_v32  ;;  %v3247_v18 = vpop.xlane.xlu1 %3246  ;;  %5099 = vrsqrt.f32 %v1141_v21  ;;  %v8850_v17 = vmax.f32 %v7090_v46, 0.0 }
 0xbec   :  { %v7371_v26 = vsub.f32 %v8848_v41, %v3266_v9  ;;  %v3267_v33 = vmul.f32 0.03125, %v3247_v18  ;;  %v3302_v36 = vsel %vm309_vm0, %v3286_v8, 0.0  ;;  %v3287_v5 = vmul.f32 %v7364_v24, %v7364_v24  ;;  %v5092_v9 = vpop.eup %5091 }
 0xbed   :  { %3303 = vadd.xlane.f32.xlu0 %v3302_v36  ;;  %v3226_v45 = vpop.xlane.xlu0 %3225  ;;  %5101 = vrsqrt.f32 %v1142_v61  ;;  %v8851_v8 = vmax.f32 %v7099_v23, 0.0  ;;  %v5094_v41 = vpop.eup %5093  ;;  %v8852_v36 = vld [vmem:[#allocation3_spill] sm:$0xff]  ;;  %v1168_v23 = vmul.f32 %v5090_v25, %v6932_v59 }
 0xbee   :  { %v7378_v14 = vsub.f32 %v8849_v16, %v3267_v33  ;;  %v3260_v22 = vmul.f32 0.03125, %v3226_v45  ;;  %v3305_v19 = vsel %vm309_vm0, %v3287_v5, 0.0  ;;  %v3298_v27 = vmul.f32 %v7371_v26, %v7371_v26  ;;  %v5368_v33 = vld [vmem:[%s8641_s6] sm:$0x7] }
 0xbef   :  { %3306 = vadd.xlane.f32.xlu1 %v3305_v19  ;;  %v3229_v56 = vpop.xlane.xlu1 %3228  ;;  %v7401_v5 = vrot.slane %v5368_v33, %v8852_v36  ;;  %5103 = vrsqrt.f32 %v1143_v7  ;;  %v8853_v45 = vmax.f32 %v7105_v47, 0.0  ;;  %v8854_v7 = vmax.f32 %v7115_v4, 0.0 }
 0xbf0   :  { %v7385_v10 = vsub.f32 %v8850_v17, %v3260_v22  ;;  %v3261_v58 = vmul.f32 0.03125, %v3229_v56  ;;  %v3338_v11 = vsel %vm309_vm0, %v3298_v27, 0.0  ;;  %v3299_v52 = vmul.f32 %v7378_v14, %v7378_v14 }
 0xbf1   :  { %3339 = vadd.xlane.f32.xlu0 %v3338_v11  ;;  %v3220_v32 = vpop.xlane.xlu0 %3219  ;;  %v5096_v56 = vpop.eup %5095  ;;  %v8856_v4 = vmax.f32 %v7118_v1, 0.0 }
 0xbf2   :  { %v7392_v21 = vsub.f32 %v8851_v8, %v3261_v58  ;;  %v3258_v49 = vmul.f32 0.03125, %v3220_v32  ;;  %v3341_v18 = vsel %vm309_vm0, %v3299_v52, 0.0  ;;  %v3292_v46 = vmul.f32 %v7385_v10, %v7385_v10  ;;  %v8855_v32 = vld [vmem:[#allocation4_spill] sm:$0xff] }
 0xbf3   :  { %3342 = vadd.xlane.f32.xlu1 %v3341_v18  ;;  %v3223_v61 = vpop.xlane.xlu1 %3222  ;;  %v1169_v58 = vmul.f32 %v5092_v9, %v6938_v30  ;;  %v5098_v52 = vpop.eup %5097  ;;  %v7420_v8 = vrot.slane %v5368_v33, %v8855_v32  ;;  %v1188_v18 = vmul.f32 %v7401_v5, %v1168_v23  ;;  %v1170_v30 = vmul.f32 %v5094_v41, %v6949_v35 }
 0xbf4   :  { %v7406_v16 = vsub.f32 %v8853_v45, %v3258_v49  ;;  %v3259_v22 = vmul.f32 0.03125, %v3223_v61  ;;  %v3320_v19 = vsel %vm309_vm0, %v3292_v46, 0.0  ;;  %v3293_v27 = vmul.f32 %v7392_v21, %v7392_v21 }
 0xbf5   :  { %3321 = vadd.xlane.f32.xlu0 %v3320_v19  ;;  %v3238_v17 = vpop.xlane.xlu0 %3237  ;;  %v1189_v19 = vmul.f32 %v7401_v5, %v1169_v58  ;;  %v8857_v23 = vmax.f32 %v7127_v12, 0.0  ;;  %v1190_v58 = vmul.f32 %v7401_v5, %v1170_v30  ;;  %v8859_v12 = vmax.f32 %v7134_v28, 0.0 }
 0xbf6   :  { %v7414_v11 = vsub.f32 %v8854_v7, %v3259_v22  ;;  %v3264_v59 = vmul.f32 0.03125, %v3238_v17  ;;  %v3323_v47 = vsel %vm309_vm0, %v3293_v27, 0.0  ;;  %v3290_v25 = vmul.f32 %v7406_v16, %v7406_v16  ;;  %v5100_v22 = vpop.eup %5099 }
 0xbf7   :  { %3324 = vadd.xlane.f32.xlu1 %v3323_v47  ;;  %v3241_v49 = vpop.xlane.xlu1 %3240  ;;  %v1171_v27 = vmul.f32 %v5096_v56, %v6959_v37  ;;  %v5102_v7 = vpop.eup %5101  ;;  %v7441_v47 = vadd.f32 %v7420_v8, %v1188_v18  ;;  %v1172_v37 = vmul.f32 %v5098_v52, %v6970_v38  ;;  %v7458_v38 = vadd.f32 %v7420_v8, %v1189_v19 }
 0xbf8   :  { %v7426_v9 = vsub.f32 %v8856_v4, %v3264_v59  ;;  %v3265_v46 = vmul.f32 0.03125, %v3241_v49  ;;  %v3314_v61 = vsel %vm309_vm0, %v3290_v25, 0.0  ;;  %v3291_v45 = vmul.f32 %v7414_v11, %v7414_v11 }
 0xbf9   :  { %3315 = vadd.xlane.f32.xlu0 %v3314_v61  ;;  %v3232_v33 = vpop.xlane.xlu0 %3231  ;;  %8858 = vst [vmem:[#allocation4_spill] sm:$0xff] %v7441_v47  ;;  %v5104_v18 = vpop.eup %5103  ;;  %8861 = vst [vmem:[#allocation14_spill] sm:$0xff] %v7458_v38  ;;  %v1191_v28 = vmul.f32 %v7401_v5, %v1171_v27  ;;  %v1173_v52 = vmul.f32 %v5100_v22, %v6980_v39  ;;  %v8862_v61 = vmax.f32 %v7142_v44, 0.0  ;;  %v8865_v27 = vld [vmem:[#allocation5_spill] sm:$0xff] }
 0xbfa   :  { %v7435_v35 = vsub.f32 %v8857_v23, %v3265_v46  ;;  %v3262_v1 = vmul.f32 0.03125, %v3232_v33  ;;  %v3317_v41 = vsel %vm309_vm0, %v3291_v45, 0.0  ;;  %v3296_v17 = vmul.f32 %v7426_v9, %v7426_v9  ;;  %v7455_v46 = vld [vmem:[%s8642_s1] sm:$0xff] }
 0xbfb   :  { %3318 = vadd.xlane.f32.xlu1 %v3317_v41  ;;  %v3235_v59 = vpop.xlane.xlu1 %3234  ;;  %v7472_v41 = vld [vmem:[%s8642_s1 + $0x8] sm:$0xff]  ;;  %v3455_v39 = vmul.f32 %v7441_v47, %v7455_v46  ;;  %v7477_v44 = vadd.f32 %v7420_v8, %v1190_v58  ;;  %v1192_v22 = vmul.f32 %v7401_v5, %v1172_v37  ;;  %v7492_v37 = vadd.f32 %v7420_v8, %v1191_v28 }
 0xbfc   :  { %v7447_v56 = vsub.f32 %v8859_v12, %v3262_v1  ;;  %v3263_v25 = vmul.f32 0.03125, %v3235_v59  ;;  %v3332_v49 = vsel %vm309_vm0, %v3296_v17, 0.0  ;;  %v3297_v4 = vmul.f32 %v7435_v35, %v7435_v35 }
 0xbfd   :  { %3333 = vadd.xlane.f32.xlu0 %v3332_v49  ;;  %v1098_v30 = vpop.xlane.xlu0 %1097  ;;  %8864 = vst [vmem:[#allocation16_spill] sm:$0xff] %v7477_v44  ;;  %v1174_v17 = vmul.f32 %v5102_v7, %v8865_v27  ;;  %v3456_v58 = vmul.f32 %v7458_v38, %v7472_v41  ;;  %8866 = vst [vmem:[#allocation5_spill] sm:$0xff] %v7492_v37  ;;  %v1193_v7 = vmul.f32 %v7401_v5, %v1173_v52  ;;  %v7500_v27 = vld [vmem:[%s8642_s1 + $0x18] sm:$0xff] }
 0xbfe   :  { %8860 = vst [vmem:[#allocation13_spill] sm:$0xff] %v7447_v56  ;;  %v7464_v45 = vsub.f32 %v8862_v61, %v3263_v25  ;;  %v1128_v33 = vmul.f32 0.03125, %v1098_v30  ;;  %v3335_v23 = vsel %vm309_vm0, %v3297_v4, 0.0  ;;  %v3294_v1 = vmul.f32 %v7447_v56, %v7447_v56  ;;  %v7487_v4 = vld [vmem:[%s8642_s1 + $0x10] sm:$0xff]  ;;  %v8867_v61 = vld [vmem:[#allocation10_spill] sm:$0xff] }
 0xbff   :  { %3336 = vadd.xlane.f32.xlu1 %v3335_v23  ;;  %v1101_v19 = vpop.xlane.xlu1 %1100  ;;  %v3471_v38 = vsel %vm309_vm0, %v3455_v39, 0.0  ;;  %v3457_v28 = vmul.f32 %v7477_v44, %v7487_v4  ;;  %v7506_v52 = vadd.f32 %v7420_v8, %v1192_v22  ;;  %v3474_v39 = vsel %vm309_vm0, %v3456_v58, 0.0 }
 0xc00   :  { %8863 = vst [vmem:[#allocation15_spill] sm:$0xff] %v7464_v45  ;;  %v1144_v59 = vadd.f32 1e-05, %v1128_v33  ;;  %v1129_v12 = vmul.f32 0.03125, %v1101_v19  ;;  %v3326_v25 = vsel %vm309_vm0, %v3294_v1, 0.0  ;;  %v3295_v49 = vmul.f32 %v7464_v45, %v7464_v45 }
 0xc01   :  { %3327 = vadd.xlane.f32.xlu0 %v3326_v25  ;;  %v1104_v30 = vpop.xlane.xlu0 %1103  ;;  %v1175_v33 = vmul.f32 %v5104_v18, %v8867_v61  ;;  %8868 = vst [vmem:[#allocation10_spill] sm:$0xff] %v7506_v52  ;;  %v3458_v61 = vmul.f32 %v7492_v37, %v7500_v27  ;;  %v7518_v22 = vadd.f32 %v7420_v8, %v1193_v7  ;;  %v3477_v58 = vsel %vm309_vm0, %v3457_v28, 0.0  ;;  %v7538_v28 = vld [vmem:[%s8642_s1 + $0x30] sm:$0xff] }
 0xc02   :  { %5105 = vrsqrt.f32 %v1144_v59  ;;  %v1145_v23 = vadd.f32 1e-05, %v1129_v12  ;;  %v1130_v1 = vmul.f32 0.03125, %v1104_v30  ;;  %v3329_v19 = vsel %vm309_vm0, %v3295_v49, 0.0  ;;  %v7511_v12 = vld [vmem:[%s8642_s1 + $0x20] sm:$0xff] }
 0xc03   :  { %3330 = vadd.xlane.f32.xlu1 %v3329_v19  ;;  %v1107_v25 = vpop.xlane.xlu1 %1106  ;;  %v1194_v49 = vmul.f32 %v7401_v5, %v1174_v17  ;;  %8869 = vst [vmem:[#allocation17_spill] sm:$0xff] %v7518_v22  ;;  %v7523_v19 = vld [vmem:[%s8642_s1 + $0x28] sm:$0xff]  ;;  %v1195_v17 = vmul.f32 %v7401_v5, %v1175_v33 }
 0xc04   :  { %5107 = vrsqrt.f32 %v1145_v23  ;;  %v1146_v18 = vadd.f32 1e-05, %v1130_v1  ;;  %v1131_v59 = vmul.f32 0.03125, %v1107_v25  ;;  %v3459_v25 = vmul.f32 %v7506_v52, %v7511_v12 }
 0xc05   :  { %3472 = vadd.xlane.f32.xlu0 %v3471_v38  ;;  %v1110_v30 = vpop.xlane.xlu0 %1109  ;;  %v3460_v33 = vmul.f32 %v7518_v22, %v7523_v19 }
 0xc06   :  { %5109 = vrsqrt.f32 %v1146_v18  ;;  %v1147_v23 = vadd.f32 1e-05, %v1131_v59  ;;  %v1132_v1 = vmul.f32 0.03125, %v1110_v30  ;;  %v7530_v18 = vadd.f32 %v7420_v8, %v1194_v49 }
 0xc07   :  { %3475 = vadd.xlane.f32.xlu1 %v3474_v39  ;;  %v1113_v38 = vpop.xlane.xlu1 %1112  ;;  %v3480_v30 = vsel %vm309_vm0, %v3458_v61, 0.0  ;;  %v7547_v61 = vld [vmem:[%s8642_s1 + $0x38] sm:$0xff] }
 0xc08   :  { %5111 = vrsqrt.f32 %v1147_v23  ;;  %v1148_v7 = vadd.f32 1e-05, %v1132_v1  ;;  %v1133_v47 = vmul.f32 0.03125, %v1113_v38  ;;  %8870 = vst [vmem:[#allocation18_spill] sm:$0xff] %v7530_v18  ;;  %v7541_v1 = vadd.f32 %v7420_v8, %v1195_v17 }
 0xc09   :  { %3478 = vadd.xlane.f32.xlu0 %v3477_v58  ;;  %v1116_v59 = vpop.xlane.xlu0 %1115  ;;  %v3483_v38 = vsel %vm309_vm0, %v3459_v25, 0.0  ;;  %v3486_v17 = vsel %vm309_vm0, %v3460_v33, 0.0 }
 0xc0a   :  { %5113 = vrsqrt.f32 %v1148_v7  ;;  %v1149_v39 = vadd.f32 1e-05, %v1133_v47  ;;  %v1134_v23 = vmul.f32 0.03125, %v1116_v59  ;;  %8871 = vst [vmem:[#allocation19_spill] sm:$0xff] %v7541_v1  ;;  %v3461_v47 = vmul.f32 %v7530_v18, %v7538_v28 }
 0xc0b   :  { %3481 = vadd.xlane.f32.xlu1 %v3480_v30  ;;  %v1119_v49 = vpop.xlane.xlu1 %1118  ;;  %v3462_v44 = vmul.f32 %v7541_v1, %v7547_v61 }
 0xc0c   :  { %v5106_v58 = vpop.eup %5105  ;;  %5115 = vrsqrt.f32 %v1149_v39  ;;  %v1150_v22 = vadd.f32 1e-05, %v1134_v23  ;;  %v1135_v52 = vmul.f32 0.03125, %v1119_v49  ;;  %v3489_v33 = vsel %vm309_vm0, %v3461_v47, 0.0 }
 0xc0d   :  { %3484 = vadd.xlane.f32.xlu0 %v3483_v38  ;;  %v2189_v7 = vpop.xlane.xlu0 %2188  ;;  %v1176_v59 = vmul.f32 %v5106_v58, %v7152_v57  ;;  %v7561_v57 = vld [vmem:[%s8642_s1 + $0x40] sm:$0xff] }
 0xc0e   :  { %v5108_v30 = vpop.eup %5107  ;;  %5117 = vrsqrt.f32 %v1150_v22  ;;  %v1151_v25 = vadd.f32 1e-05, %v1135_v52  ;;  %v2235_v37 = vmul.f32 0.03125, %v2189_v7  ;;  %v5369_v52 = vld [vmem:[%s8641_s6 + $0x4] sm:$0x7] }
 0xc0f   :  { %3487 = vadd.xlane.f32.xlu1 %v3486_v17  ;;  %v2192_v39 = vpop.xlane.xlu1 %2191  ;;  %v1196_v23 = vmul.f32 %v7401_v5, %v1176_v59  ;;  %v1177_v49 = vmul.f32 %v5108_v30, %v7158_v48  ;;  %v7567_v22 = vrot.slane %v5369_v52, %v8852_v36  ;;  %v3492_v30 = vsel %vm309_vm0, %v3462_v44, 0.0 }
 0xc10   :  { %v5110_v18 = vpop.eup %5109  ;;  %5119 = vrsqrt.f32 %v1151_v25  ;;  %v2251_v38 = vadd.f32 1e-05, %v2235_v37  ;;  %v2236_v45 = vmul.f32 0.03125, %v2192_v39  ;;  %v7578_v25 = vld [vmem:[%s8642_s1 + $0x48] sm:$0xff]  ;;  %v7588_v44 = vrot.slane %v5369_v52, %v8855_v32 }
 0xc11   :  { %3490 = vadd.xlane.f32.xlu0 %v3489_v33  ;;  %v2195_v48 = vpop.xlane.xlu0 %2194  ;;  %v7570_v58 = vadd.f32 %v7420_v8, %v1196_v23  ;;  %v1197_v37 = vmul.f32 %v7401_v5, %v1177_v49  ;;  %v1178_v47 = vmul.f32 %v5110_v18, %v7167_v62 }
 0xc12   :  { %v5112_v7 = vpop.eup %5111  ;;  %5121 = vrsqrt.f32 %v2251_v38  ;;  %v2252_v17 = vadd.f32 1e-05, %v2236_v45  ;;  %v2237_v59 = vmul.f32 0.03125, %v2195_v48  ;;  %v7593_v48 = vld [vmem:[%s8642_s1 + $0x50] sm:$0xff] }
 0xc13   :  { %8872 = vst [vmem:[#allocation20_spill] sm:$0xff] %v7570_v58  ;;  %3493 = vadd.xlane.f32.xlu1 %v3492_v30  ;;  %v2198_v39 = vpop.xlane.xlu1 %2197  ;;  %v3463_v23 = vmul.f32 %v7570_v58, %v7561_v57  ;;  %v7583_v49 = vadd.f32 %v7420_v8, %v1197_v37  ;;  %v1198_v62 = vmul.f32 %v7401_v5, %v1178_v47 }
 0xc14   :  { %v1179_v45 = vmul.f32 %v5112_v7, %v7176_v55  ;;  %v5114_v18 = vpop.eup %5113  ;;  %5123 = vrsqrt.f32 %v2252_v17  ;;  %v2253_v38 = vadd.f32 1e-05, %v2237_v59  ;;  %v2238_v33 = vmul.f32 0.03125, %v2198_v39  ;;  %v7605_v39 = vld [vmem:[%s8642_s1 + $0x58] sm:$0xff] }
 0xc15   :  { %8873 = vst [vmem:[#allocation21_spill] sm:$0xff] %v7583_v49  ;;  %v2201_v30 = vpop.xlane.xlu0 %2200  ;;  %v3495_v37 = vsel %vm309_vm0, %v3463_v23, 0.0  ;;  %v3464_v47 = vmul.f32 %v7583_v49, %v7578_v25  ;;  %v7599_v55 = vadd.f32 %v7420_v8, %v1198_v62  ;;  %v1180_v23 = vmul.f32 %v5114_v18, %v7185_v15 }
 0xc16   :  { %v1199_v52 = vmul.f32 %v7401_v5, %v1179_v45  ;;  %v5116_v7 = vpop.eup %5115  ;;  %5125 = vrsqrt.f32 %v2253_v38  ;;  %v2254_v17 = vadd.f32 1e-05, %v2238_v33  ;;  %v2239_v59 = vmul.f32 0.03125, %v2201_v30  ;;  %3496 = vadd.xlane.f32.xlu0 %v3495_v37 }
 0xc17   :  { %8874 = vst [vmem:[#allocation22_spill] sm:$0xff] %v7599_v55  ;;  %v2204_v58 = vpop.xlane.xlu1 %2203  ;;  %v3498_v49 = vsel %vm309_vm0, %v3464_v47, 0.0  ;;  %v3465_v62 = vmul.f32 %v7599_v55, %v7593_v48  ;;  %v1181_v38 = vmul.f32 %v5116_v7, %v7192_v50  ;;  %v1200_v1 = vmul.f32 %v7401_v5, %v1180_v23  ;;  %v7622_v47 = vld [vmem:[%s8642_s1 + $0x60] sm:$0xff] }
 0xc18   :  { %v7612_v45 = vadd.f32 %v7420_v8, %v1199_v52  ;;  %v5118_v33 = vpop.eup %5117  ;;  %5127 = vrsqrt.f32 %v2254_v17  ;;  %v2255_v30 = vadd.f32 1e-05, %v2239_v59  ;;  %v2240_v37 = vmul.f32 0.03125, %v2204_v58  ;;  %3499 = vadd.xlane.f32.xlu1 %v3498_v49  ;;  %v7632_v59 = vld [vmem:[%s8642_s1 + $0x68] sm:$0xff] }
 0xc19   :  { %v2207_v56 = vpop.xlane.xlu0 %2206  ;;  %v3501_v15 = vsel %vm309_vm0, %v3465_v62, 0.0  ;;  %v1201_v50 = vmul.f32 %v7401_v5, %v1181_v38  ;;  %v1182_v52 = vmul.f32 %v5118_v33, %v7199_v53  ;;  %v7627_v17 = vadd.f32 %v7420_v8, %v1200_v1 }
 0xc1a   :  { %8875 = vst [vmem:[#allocation23_spill] sm:$0xff] %v7612_v45  ;;  %v3466_v18 = vmul.f32 %v7612_v45, %v7605_v39  ;;  %v5120_v7 = vpop.eup %5119  ;;  %5129 = vrsqrt.f32 %v2255_v30  ;;  %v2256_v58 = vadd.f32 1e-05, %v2240_v37  ;;  %v2241_v49 = vmul.f32 0.03125, %v2207_v56  ;;  %3502 = vadd.xlane.f32.xlu0 %v3501_v15  ;;  %v7645_v15 = vld [vmem:[%s8642_s1 + $0x70] sm:$0xff]  ;;  %v7658_v45 = vld [vmem:[%s8642_s1 + $0x78] sm:$0xff] }
 0xc1b   :  { %v2210_v23 = vpop.xlane.xlu1 %2209  ;;  %v7636_v38 = vadd.f32 %v7420_v8, %v1201_v50  ;;  %v1202_v53 = vmul.f32 %v7401_v5, %v1182_v52  ;;  %v1183_v33 = vmul.f32 %v5120_v7, %v7206_v60  ;;  %v3467_v37 = vmul.f32 %v7627_v17, %v7622_v47 }
 0xc1c   :  { %v3504_v62 = vsel %vm309_vm0, %v3466_v18, 0.0  ;;  %v5122_v56 = vpop.eup %5121  ;;  %5131 = vrsqrt.f32 %v2256_v58  ;;  %v2257_v30 = vadd.f32 1e-05, %v2241_v49  ;;  %v2242_v1 = vmul.f32 0.03125, %v2210_v23 }
 0xc1d   :  { %3505 = vadd.xlane.f32.xlu1 %v3504_v62  ;;  %v2213_v18 = vpop.xlane.xlu0 %2212  ;;  %v3468_v50 = vmul.f32 %v7636_v38, %v7632_v59  ;;  %v7650_v52 = vadd.f32 %v7420_v8, %v1202_v53  ;;  %v1203_v60 = vmul.f32 %v7401_v5, %v1183_v33  ;;  %v2283_v7 = vmul.f32 %v5122_v56, %v7213_v54 }
 0xc1e   :  { %v5124_v58 = vpop.eup %5123  ;;  %5133 = vrsqrt.f32 %v2257_v30  ;;  %v2258_v49 = vadd.f32 1e-05, %v2242_v1  ;;  %v2243_v23 = vmul.f32 0.03125, %v2213_v18  ;;  %v3507_v62 = vsel %vm309_vm0, %v3467_v37, 0.0 }
 0xc1f   :  { %8876 = vst [vmem:[#allocation24_spill] sm:$0xff] %v7650_v52  ;;  %3508 = vadd.xlane.f32.xlu0 %v3507_v62  ;;  %v2216_v55 = vpop.xlane.xlu1 %2215  ;;  %v3510_v53 = vsel %vm309_vm0, %v3468_v50, 0.0  ;;  %v3469_v5 = vmul.f32 %v7650_v52, %v7645_v15  ;;  %v7664_v54 = vadd.f32 %v7420_v8, %v1203_v60  ;;  %v2303_v33 = vmul.f32 %v7567_v22, %v2283_v7 }
 0xc20   :  { %v5126_v56 = vpop.eup %5125  ;;  %5135 = vrsqrt.f32 %v2258_v49  ;;  %v2259_v30 = vadd.f32 1e-05, %v2243_v23  ;;  %v2244_v1 = vmul.f32 0.03125, %v2216_v55  ;;  %v2284_v37 = vmul.f32 %v5124_v58, %v7220_v13 }
 0xc21   :  { %8877 = vst [vmem:[#allocation25_spill] sm:$0xff] %v7664_v54  ;;  %3511 = vadd.xlane.f32.xlu1 %v3510_v53  ;;  %v2219_v18 = vpop.xlane.xlu0 %2218  ;;  %v3513_v62 = vsel %vm309_vm0, %v3469_v5, 0.0  ;;  %v3470_v50 = vmul.f32 %v7664_v54, %v7658_v45  ;;  %v7672_v52 = vadd.f32 %v7588_v44, %v2303_v33  ;;  %v2285_v8 = vmul.f32 %v5126_v56, %v7227_v42 }
 0xc22   :  { %v5128_v60 = vpop.eup %5127  ;;  %5137 = vrsqrt.f32 %v2259_v30  ;;  %v2260_v7 = vadd.f32 1e-05, %v2244_v1  ;;  %v2245_v49 = vmul.f32 0.03125, %v2219_v18  ;;  %v2304_v55 = vmul.f32 %v7567_v22, %v2284_v37 }
 0xc23   :  { %3514 = vadd.xlane.f32.xlu0 %v3513_v62  ;;  %v2222_v23 = vpop.xlane.xlu1 %2221  ;;  %v3516_v13 = vsel %vm309_vm0, %v3470_v50, 0.0  ;;  %v3535_v58 = vmul.f32 %v7672_v52, %v7455_v46  ;;  %v2305_v53 = vmul.f32 %v7567_v22, %v2285_v8  ;;  %v2286_v5 = vmul.f32 %v5128_v60, %v7234_v34 }
 0xc24   :  { %v5130_v33 = vpop.eup %5129  ;;  %5139 = vrsqrt.f32 %v2260_v7  ;;  %v2261_v42 = vadd.f32 1e-05, %v2245_v49  ;;  %v2246_v56 = vmul.f32 0.03125, %v2222_v23  ;;  %v7682_v30 = vadd.f32 %v7588_v44, %v2304_v55 }
 0xc25   :  { %3517 = vadd.xlane.f32.xlu1 %v3516_v13  ;;  %v2225_v1 = vpop.xlane.xlu0 %2224  ;;  %v3551_v37 = vsel %vm309_vm0, %v3535_v58, 0.0  ;;  %v7686_v18 = vadd.f32 %v7588_v44, %v2305_v53  ;;  %v2306_v62 = vmul.f32 %v7567_v22, %v2286_v5  ;;  %v2287_v50 = vmul.f32 %v5130_v33, %v7241_v40 }
 0xc26   :  { %v5132_v8 = vpop.eup %5131  ;;  %5141 = vrsqrt.f32 %v2261_v42  ;;  %v2262_v34 = vadd.f32 1e-05, %v2246_v56  ;;  %v2247_v60 = vmul.f32 0.03125, %v2225_v1  ;;  %v3536_v7 = vmul.f32 %v7682_v30, %v7472_v41 }
 0xc27   :  { %3552 = vadd.xlane.f32.xlu0 %v3551_v37  ;;  %v2228_v49 = vpop.xlane.xlu1 %2227  ;;  %v3537_v55 = vmul.f32 %v7686_v18, %v7487_v4  ;;  %v7695_v23 = vadd.f32 %v7588_v44, %v2306_v62  ;;  %v2307_v13 = vmul.f32 %v7567_v22, %v2287_v50  ;;  %v2288_v58 = vmul.f32 %v5132_v8, %v7248_v29 }
 0xc28   :  { %v5134_v40 = vpop.eup %5133  ;;  %5143 = vrsqrt.f32 %v2262_v34  ;;  %v2263_v53 = vadd.f32 1e-05, %v2247_v60  ;;  %v2248_v5 = vmul.f32 0.03125, %v2228_v49  ;;  %v3554_v33 = vsel %vm309_vm0, %v3536_v7, 0.0 }
 0xc29   :  { %3555 = vadd.xlane.f32.xlu1 %v3554_v33  ;;  %v2231_v42 = vpop.xlane.xlu0 %2230  ;;  %v3557_v56 = vsel %vm309_vm0, %v3537_v55, 0.0  ;;  %v3538_v1 = vmul.f32 %v7695_v23, %v7500_v27  ;;  %v7704_v37 = vadd.f32 %v7588_v44, %v2307_v13  ;;  %v2308_v62 = vmul.f32 %v7567_v22, %v2288_v58 }
 0xc2a   :  { %v5136_v50 = vpop.eup %5135  ;;  %5145 = vrsqrt.f32 %v2263_v53  ;;  %v2264_v29 = vadd.f32 1e-05, %v2248_v5  ;;  %v2249_v8 = vmul.f32 0.03125, %v2231_v42  ;;  %v2289_v34 = vmul.f32 %v5134_v40, %v7255_v6 }
 0xc2b   :  { %8878 = vst [vmem:[#allocation26_spill] sm:$0xff] %v7704_v37  ;;  %3558 = vadd.xlane.f32.xlu0 %v3557_v56  ;;  %v2234_v60 = vpop.xlane.xlu1 %2233  ;;  %v3560_v7 = vsel %vm309_vm0, %v3538_v1, 0.0  ;;  %v3539_v49 = vmul.f32 %v7704_v37, %v7511_v12  ;;  %v7712_v55 = vadd.f32 %v7588_v44, %v2308_v62  ;;  %v2290_v13 = vmul.f32 %v5136_v50, %v7262_v3 }
 0xc2c   :  { %v5138_v33 = vpop.eup %5137  ;;  %5147 = vrsqrt.f32 %v2264_v29  ;;  %v2265_v58 = vadd.f32 1e-05, %v2249_v8  ;;  %v2250_v53 = vmul.f32 0.03125, %v2234_v60  ;;  %v2309_v5 = vmul.f32 %v7567_v22, %v2289_v34 }
 0xc2d   :  { %8879 = vst [vmem:[#allocation27_spill] sm:$0xff] %v7712_v55  ;;  %3561 = vadd.xlane.f32.xlu1 %v3560_v7  ;;  %v3563_v6 = vsel %vm309_vm0, %v3539_v49, 0.0  ;;  %v3540_v40 = vmul.f32 %v7712_v55, %v7523_v19  ;;  %v2310_v42 = vmul.f32 %v7567_v22, %v2290_v13  ;;  %v2291_v56 = vmul.f32 %v5138_v33, %v7269_v0  ;;  %v8883_v33 = vld [vmem:[#allocation11_spill] sm:$0xff] }
 0xc2e   :  { %v5140_v1 = vpop.eup %5139  ;;  %5149 = vrsqrt.f32 %v2265_v58  ;;  %v2266_v62 = vadd.f32 1e-05, %v2250_v53  ;;  %v7722_v3 = vadd.f32 %v7588_v44, %v2309_v5 }
 0xc2f   :  { %3564 = vadd.xlane.f32.xlu0 %v3563_v6  ;;  %v3566_v50 = vsel %vm309_vm0, %v3540_v40, 0.0  ;;  %v7726_v29 = vadd.f32 %v7588_v44, %v2310_v42  ;;  %v2311_v8 = vmul.f32 %v7567_v22, %v2291_v56  ;;  %v2292_v34 = vmul.f32 %v5140_v1, %v7276_v31  ;;  %v8885_v1 = vld [vmem:[#allocation12_spill] sm:$0xff] }
 0xc30   :  { %8880 = vst [vmem:[#allocation28_spill] sm:$0xff] %v7722_v3  ;;  %v5142_v60 = vpop.eup %5141  ;;  %5151 = vrsqrt.f32 %v2266_v62  ;;  %v3541_v0 = vmul.f32 %v7722_v3, %v7538_v28 }
 0xc31   :  { %8881 = vst [vmem:[#allocation29_spill] sm:$0xff] %v7726_v29  ;;  %3567 = vadd.xlane.f32.xlu1 %v3566_v50  ;;  %v3542_v7 = vmul.f32 %v7726_v29, %v7547_v61  ;;  %v7735_v49 = vadd.f32 %v7588_v44, %v2311_v8  ;;  %v2312_v13 = vmul.f32 %v7567_v22, %v2292_v34 }
 0xc32   :  { %v2293_v58 = vmul.f32 %v5142_v60, %v8883_v33  ;;  %v5144_v53 = vpop.eup %5143  ;;  %v3569_v5 = vsel %vm309_vm0, %v3541_v0, 0.0  ;;  %v8887_v60 = vld [vmem:[#allocation6_spill] sm:$0xff] }
 0xc33   :  { %8882 = vst [vmem:[#allocation30_spill] sm:$0xff] %v7735_v49  ;;  %3570 = vadd.xlane.f32.xlu0 %v3569_v5  ;;  %v3572_v31 = vsel %vm309_vm0, %v3542_v7, 0.0  ;;  %v3543_v6 = vmul.f32 %v7735_v49, %v7561_v57  ;;  %v7744_v40 = vadd.f32 %v7588_v44, %v2312_v13  ;;  %v2294_v62 = vmul.f32 %v5144_v53, %v8885_v1  ;;  %v8888_v5 = vld [vmem:[#allocation7_spill] sm:$0xff] }
 0xc34   :  { %v2313_v42 = vmul.f32 %v7567_v22, %v2293_v58  ;;  %v5146_v56 = vpop.eup %5145 }
 0xc35   :  { %8884 = vst [vmem:[#allocation11_spill] sm:$0xff] %v7744_v40  ;;  %3573 = vadd.xlane.f32.xlu1 %v3572_v31  ;;  %v3575_v50 = vsel %vm309_vm0, %v3543_v6, 0.0  ;;  %v3544_v8 = vmul.f32 %v7744_v40, %v7578_v25  ;;  %v2295_v0 = vmul.f32 %v5146_v56, %v8887_v60  ;;  %v2314_v13 = vmul.f32 %v7567_v22, %v2294_v62 }
 0xc36   :  { %v7752_v34 = vadd.f32 %v7588_v44, %v2313_v42  ;;  %v5148_v7 = vpop.eup %5147 }
 0xc37   :  { %3576 = vadd.xlane.f32.xlu0 %v3575_v50  ;;  %v3578_v33 = vsel %vm309_vm0, %v3544_v8, 0.0  ;;  %v2315_v53 = vmul.f32 %v7567_v22, %v2295_v0  ;;  %v2296_v31 = vmul.f32 %v5148_v7, %v8888_v5  ;;  %v7762_v1 = vadd.f32 %v7588_v44, %v2314_v13  ;;  %v8890_v50 = vld [vmem:[#allocation8_spill] sm:$0xff] }
 0xc38   :  { %8886 = vst [vmem:[#allocation12_spill] sm:$0xff] %v7752_v34  ;;  %v3545_v58 = vmul.f32 %v7752_v34, %v7593_v48  ;;  %v5150_v6 = vpop.eup %5149 }
 0xc39   :  { %8889 = vst [vmem:[#allocation6_spill] sm:$0xff] %v7762_v1  ;;  %3579 = vadd.xlane.f32.xlu1 %v3578_v33  ;;  %v7766_v56 = vadd.f32 %v7588_v44, %v2315_v53  ;;  %v2316_v62 = vmul.f32 %v7567_v22, %v2296_v31  ;;  %v2297_v8 = vmul.f32 %v5150_v6, %v8890_v50 }
 0xc3a   :  { %v3581_v42 = vsel %vm309_vm0, %v3545_v58, 0.0  ;;  %v5152_v60 = vpop.eup %5151  ;;  %v3546_v0 = vmul.f32 %v7762_v1, %v7605_v39  ;;  %v8892_v58 = vld [vmem:[#allocation9_spill] sm:$0xff] }
 0xc3b   :  { %3582 = vadd.xlane.f32.xlu0 %v3581_v42  ;;  %v3547_v7 = vmul.f32 %v7766_v56, %v7622_v47  ;;  %v7775_v13 = vadd.f32 %v7588_v44, %v2316_v62  ;;  %v2317_v33 = vmul.f32 %v7567_v22, %v2297_v8  ;;  %v2298_v53 = vmul.f32 %v5152_v60, %v8892_v58 }
 0xc3c   :  { %v3584_v5 = vsel %vm309_vm0, %v3546_v0, 0.0 }
 0xc3d   :  { %8891 = vst [vmem:[#allocation7_spill] sm:$0xff] %v7775_v13  ;;  %3585 = vadd.xlane.f32.xlu1 %v3584_v5  ;;  %v3587_v31 = vsel %vm309_vm0, %v3547_v7, 0.0  ;;  %v3548_v6 = vmul.f32 %v7775_v13, %v7632_v59  ;;  %v7784_v42 = vadd.f32 %v7588_v44, %v2317_v33  ;;  %v2318_v50 = vmul.f32 %v7567_v22, %v2298_v53 }
 0xc3f   :  { %8893 = vst [vmem:[#allocation8_spill] sm:$0xff] %v7784_v42  ;;  %3588 = vadd.xlane.f32.xlu0 %v3587_v31  ;;  %v3590_v62 = vsel %vm309_vm0, %v3548_v6, 0.0  ;;  %v3549_v8 = vmul.f32 %v7784_v42, %v7645_v15  ;;  %v7791_v60 = vadd.f32 %v7588_v44, %v2318_v50 }
 0xc41   :  { %8894 = vst [vmem:[#allocation9_spill] sm:$0xff] %v7791_v60  ;;  %3591 = vadd.xlane.f32.xlu1 %v3590_v62  ;;  %v3593_v0 = vsel %vm309_vm0, %v3549_v8, 0.0  ;;  %v3550_v7 = vmul.f32 %v7791_v60, %v7658_v45 }
 0xc43   :  { %3594 = vadd.xlane.f32.xlu0 %v3593_v0  ;;  %v3596_v33 = vsel %vm309_vm0, %v3550_v7, 0.0 }
 0xc45   :  { %3597 = vadd.xlane.f32.xlu1 %v3596_v33  ;;  %v5370_v33 = vld [vmem:[%s8641_s6 + $0x8] sm:$0x7] }
 0xc72   :  { %v3310_v22 = vpop.xlane.xlu0 %3309 }
 0xc73   :  { %v3352_v58 = vmul.f32 0.03125, %v3310_v22  ;;  %v7801_v22 = vrot.slane %v5370_v33, %v8852_v36 }
 0xc74   :  { %v3313_v53 = vpop.xlane.xlu1 %3312 }
 0xc75   :  { %v3368_v5 = vadd.f32 1e-05, %v3352_v58  ;;  %v3353_v31 = vmul.f32 0.03125, %v3313_v53 }
 0xc76   :  { %v3346_v6 = vpop.xlane.xlu0 %3345 }
 0xc77   :  { %5153 = vrsqrt.f32 %v3368_v5  ;;  %v3369_v54 = vadd.f32 1e-05, %v3353_v31  ;;  %v7804_v31 = vrot.slane %v5370_v33, %v8855_v32 }
 0xc78   :  { %v3349_v44 = vpop.xlane.xlu1 %3348 }
 0xc79   :  { %5155 = vrsqrt.f32 %v3369_v54 }
 0xc7a   :  { %v3304_v50 = vpop.xlane.xlu0 %3303 }
 0xc7b   :  { %v3350_v62 = vmul.f32 0.03125, %v3304_v50 }
 0xc7c   :  { %v3307_v8 = vpop.xlane.xlu1 %3306 }
 0xc7d   :  { %v3366_v42 = vadd.f32 1e-05, %v3350_v62  ;;  %v3351_v40 = vmul.f32 0.03125, %v3307_v8  ;;  %v3364_v8 = vmul.f32 0.03125, %v3346_v6 }
 0xc7e   :  { %v3340_v60 = vpop.xlane.xlu0 %3339 }
 0xc7f   :  { %5157 = vrsqrt.f32 %v3366_v42  ;;  %v3367_v0 = vadd.f32 1e-05, %v3351_v40  ;;  %v3362_v7 = vmul.f32 0.03125, %v3340_v60 }
 0xc80   :  { %v3343_v58 = vpop.xlane.xlu1 %3342 }
 0xc81   :  { %v5154_v53 = vpop.eup %5153  ;;  %5159 = vrsqrt.f32 %v3367_v0  ;;  %v3378_v54 = vadd.f32 1e-05, %v3362_v7  ;;  %v3363_v5 = vmul.f32 0.03125, %v3343_v58  ;;  %v3365_v58 = vmul.f32 0.03125, %v3349_v44 }
 0xc82   :  { %v3322_v50 = vpop.xlane.xlu0 %3321  ;;  %v3400_v42 = vmul.f32 %v5154_v53, %v7333_v63 }
 0xc83   :  { %v5156_v40 = vpop.eup %5155  ;;  %5161 = vrsqrt.f32 %v3378_v54  ;;  %v3379_v60 = vadd.f32 1e-05, %v3363_v5  ;;  %v3356_v62 = vmul.f32 0.03125, %v3322_v50  ;;  %v3380_v54 = vadd.f32 1e-05, %v3364_v8 }
 0xc84   :  { %v3325_v49 = vpop.xlane.xlu1 %3324  ;;  %v3420_v36 = vmul.f32 %v7801_v22, %v3400_v42  ;;  %v3401_v1 = vmul.f32 %v5156_v40, %v7337_v51  ;;  %v3381_v42 = vadd.f32 1e-05, %v3365_v58 }
 0xc85   :  { %5163 = vrsqrt.f32 %v3379_v60  ;;  %v3372_v0 = vadd.f32 1e-05, %v3356_v62  ;;  %v3357_v7 = vmul.f32 0.03125, %v3325_v49 }
 0xc86   :  { %v3316_v34 = vpop.xlane.xlu0 %3315  ;;  %v7810_v32 = vadd.f32 %v7804_v31, %v3420_v36  ;;  %v3421_v63 = vmul.f32 %v7801_v22, %v3401_v1 }
 0xc87   :  { %5165 = vrsqrt.f32 %v3372_v0  ;;  %v3373_v33 = vadd.f32 1e-05, %v3357_v7  ;;  %v3354_v53 = vmul.f32 0.03125, %v3316_v34 }
 0xc88   :  { %v3319_v6 = vpop.xlane.xlu1 %3318  ;;  %v3617_v5 = vmul.f32 %v7810_v32, %v7487_v4  ;;  %v7816_v51 = vadd.f32 %v7804_v31, %v3421_v63 }
 0xc89   :  { %v5158_v50 = vpop.eup %5157  ;;  %5167 = vrsqrt.f32 %v3373_v33  ;;  %v3370_v49 = vadd.f32 1e-05, %v3354_v53  ;;  %v3355_v44 = vmul.f32 0.03125, %v3319_v6 }
 0xc8a   :  { %v3334_v36 = vpop.xlane.xlu0 %3333  ;;  %v3637_v40 = vsel %vm309_vm0, %v3617_v5, 0.0  ;;  %v3618_v1 = vmul.f32 %v7816_v51, %v7500_v27  ;;  %v3398_v34 = vmul.f32 %v5158_v50, %v7357_v20 }
 0xc8b   :  { %v5160_v60 = vpop.eup %5159  ;;  %5169 = vrsqrt.f32 %v3370_v49  ;;  %v3371_v62 = vadd.f32 1e-05, %v3355_v44  ;;  %v3360_v4 = vmul.f32 0.03125, %v3334_v36  ;;  %3638 = vadd.xlane.f32.xlu0 %v3637_v40 }
 0xc8c   :  { %5171 = vrsqrt.f32 %v3380_v54  ;;  %v3337_v8 = vpop.xlane.xlu1 %3336  ;;  %v3640_v0 = vsel %vm309_vm0, %v3618_v1, 0.0  ;;  %v3418_v7 = vmul.f32 %v7801_v22, %v3398_v34  ;;  %v3399_v58 = vmul.f32 %v5160_v60, %v7364_v24 }
 0xc8d   :  { %v5162_v63 = vpop.eup %5161  ;;  %5173 = vrsqrt.f32 %v3371_v62  ;;  %v3376_v33 = vadd.f32 1e-05, %v3360_v4  ;;  %v3361_v53 = vmul.f32 0.03125, %v3337_v8  ;;  %3641 = vadd.xlane.f32.xlu1 %v3640_v0 }
 0xc8e   :  { %5175 = vrsqrt.f32 %v3381_v42  ;;  %v3328_v20 = vpop.xlane.xlu0 %3327  ;;  %v7826_v27 = vadd.f32 %v7804_v31, %v3418_v7  ;;  %v3419_v6 = vmul.f32 %v7801_v22, %v3399_v58  ;;  %v3410_v54 = vmul.f32 %v5162_v63, %v7371_v26 }
 0xc8f   :  { %v5164_v5 = vpop.eup %5163  ;;  %5177 = vrsqrt.f32 %v3376_v33  ;;  %v3377_v50 = vadd.f32 1e-05, %v3361_v53  ;;  %v3358_v49 = vmul.f32 0.03125, %v3328_v20 }
 0xc90   :  { %8895 = vst [vmem:[#allocation31_spill] sm:$0xff] %v7826_v27  ;;  %v3331_v44 = vpop.xlane.xlu1 %3330  ;;  %v3615_v24 = vmul.f32 %v7826_v27, %v7455_v46  ;;  %v7833_v36 = vadd.f32 %v7804_v31, %v3419_v6  ;;  %v3430_v42 = vmul.f32 %v7801_v22, %v3410_v54  ;;  %v3411_v40 = vmul.f32 %v5164_v5, %v7378_v14 }
 0xc91   :  { %v5166_v1 = vpop.eup %5165  ;;  %5179 = vrsqrt.f32 %v3377_v50  ;;  %v3374_v34 = vadd.f32 1e-05, %v3358_v49  ;;  %v3359_v60 = vmul.f32 0.03125, %v3331_v44 }
 0xc92   :  { %8896 = vst [vmem:[#allocation32_spill] sm:$0xff] %v7833_v36  ;;  %v3631_v26 = vsel %vm309_vm0, %v3615_v24, 0.0  ;;  %v3616_v62 = vmul.f32 %v7833_v36, %v7472_v41  ;;  %v7841_v4 = vadd.f32 %v7804_v31, %v3430_v42  ;;  %v3431_v46 = vmul.f32 %v7801_v22, %v3411_v40 }
 0xc93   :  { %v5168_v8 = vpop.eup %5167  ;;  %5181 = vrsqrt.f32 %v3374_v34  ;;  %v3375_v0 = vadd.f32 1e-05, %v3359_v60  ;;  %3632 = vadd.xlane.f32.xlu0 %v3631_v26  ;;  %v3404_v14 = vmul.f32 %v5166_v1, %v7385_v10 }
 0xc94   :  { %8897 = vst [vmem:[#allocation33_spill] sm:$0xff] %v7841_v4  ;;  %v3634_v7 = vsel %vm309_vm0, %v3616_v62, 0.0  ;;  %v3627_v58 = vmul.f32 %v7841_v4, %v7622_v47  ;;  %v7849_v63 = vadd.f32 %v7804_v31, %v3431_v46  ;;  %v3405_v41 = vmul.f32 %v5168_v8, %v7392_v21 }
 0xc95   :  { %v5170_v33 = vpop.eup %5169  ;;  %5183 = vrsqrt.f32 %v3375_v0  ;;  %3635 = vadd.xlane.f32.xlu1 %v3634_v7  ;;  %v3424_v53 = vmul.f32 %v7801_v22, %v3404_v14 }
 0xc96   :  { %8898 = vst [vmem:[#allocation34_spill] sm:$0xff] %v7849_v63  ;;  %v5172_v20 = vpop.eup %5171  ;;  %v3667_v6 = vsel %vm309_vm0, %v3627_v58, 0.0  ;;  %v3628_v10 = vmul.f32 %v7849_v63, %v7632_v59  ;;  %v3425_v54 = vmul.f32 %v7801_v22, %v3405_v41  ;;  %v3402_v47 = vmul.f32 %v5170_v33, %v7406_v16 }
 0xc97   :  { %v5174_v5 = vpop.eup %5173  ;;  %3668 = vadd.xlane.f32.xlu0 %v3667_v6  ;;  %v7859_v50 = vadd.f32 %v7804_v31, %v3424_v53 }
 0xc98   :  { %v5176_v21 = vpop.eup %5175  ;;  %v3670_v49 = vsel %vm309_vm0, %v3628_v10, 0.0  ;;  %v7863_v44 = vadd.f32 %v7804_v31, %v3425_v54  ;;  %v3422_v24 = vmul.f32 %v7801_v22, %v3402_v47  ;;  %v3403_v42 = vmul.f32 %v5174_v5, %v7414_v11  ;;  %v8905_v10 = vld [vmem:[#allocation15_spill] sm:$0xff] }
 0xc99   :  { %8899 = vst [vmem:[#allocation35_spill] sm:$0xff] %v7859_v50  ;;  %v5178_v59 = vpop.eup %5177  ;;  %3671 = vadd.xlane.f32.xlu1 %v3670_v49  ;;  %v3621_v16 = vmul.f32 %v7859_v50, %v7538_v28  ;;  %v3412_v11 = vmul.f32 %v5172_v20, %v7343_v43  ;;  %v3413_v14 = vmul.f32 %v5176_v21, %v7350_v2 }
 0xc9a   :  { %8900 = vst [vmem:[#allocation36_spill] sm:$0xff] %v7863_v44  ;;  %v3622_v40 = vmul.f32 %v7863_v44, %v7547_v61  ;;  %v7872_v1 = vadd.f32 %v7804_v31, %v3422_v24  ;;  %v3423_v34 = vmul.f32 %v7801_v22, %v3403_v42  ;;  %v3408_v60 = vmul.f32 %v5178_v59, %v7426_v9 }
 0xc9b   :  { %v5180_v26 = vpop.eup %5179  ;;  %v3649_v62 = vsel %vm309_vm0, %v3621_v16, 0.0  ;;  %v3432_v20 = vmul.f32 %v7801_v22, %v3412_v11  ;;  %v3433_v47 = vmul.f32 %v7801_v22, %v3413_v14  ;;  %v3476_v11 = vpop.xlane.xlu1 %3475 }
 0xc9c   :  { %8901 = vst [vmem:[#allocation37_spill] sm:$0xff] %v7872_v1  ;;  %3650 = vadd.xlane.f32.xlu0 %v3649_v62  ;;  %v3652_v46 = vsel %vm309_vm0, %v3622_v40, 0.0  ;;  %v3619_v28 = vmul.f32 %v7872_v1, %v7511_v12  ;;  %v7882_v61 = vadd.f32 %v7804_v31, %v3423_v34  ;;  %v3428_v8 = vmul.f32 %v7801_v22, %v3408_v60  ;;  %v8904_v12 = vld [vmem:[#allocation13_spill] sm:$0xff]  ;;  %v3473_v62 = vpop.xlane.xlu0 %3472 }
 0xc9d   :  { %v5182_v0 = vpop.eup %5181  ;;  %3653 = vadd.xlane.f32.xlu1 %v3652_v46  ;;  %v3409_v9 = vmul.f32 %v5180_v26, %v7435_v35  ;;  %v7913_v24 = vadd.f32 %v7804_v31, %v3432_v20  ;;  %v7922_v40 = vadd.f32 %v7804_v31, %v3433_v47 }
 0xc9e   :  { %8902 = vst [vmem:[#allocation38_spill] sm:$0xff] %v7882_v61  ;;  %v3643_v7 = vsel %vm309_vm0, %v3619_v28, 0.0  ;;  %v3620_v43 = vmul.f32 %v7882_v61, %v7523_v19  ;;  %v7891_v58 = vadd.f32 %v7804_v31, %v3428_v8  ;;  %v3406_v41 = vmul.f32 %v5182_v0, %v8904_v12 }
 0xc9f   :  { %v5184_v33 = vpop.eup %5183  ;;  %v3429_v53 = vmul.f32 %v7801_v22, %v3409_v9  ;;  %8908 = vst [vmem:[#allocation40_spill] sm:$0xff] %v7913_v24  ;;  %8910 = vst [vmem:[#allocation42_spill] sm:$0xff] %v7922_v40  ;;  %v3629_v34 = vmul.f32 %v7913_v24, %v7645_v15  ;;  %v3630_v60 = vmul.f32 %v7922_v40, %v7658_v45 }
 0xca0   :  { %8903 = vst [vmem:[#allocation39_spill] sm:$0xff] %v7891_v58  ;;  %3644 = vadd.xlane.f32.xlu0 %v3643_v7  ;;  %v3646_v35 = vsel %vm309_vm0, %v3620_v43, 0.0  ;;  %v3625_v2 = vmul.f32 %v7891_v58, %v7593_v48  ;;  %v3426_v6 = vmul.f32 %v7801_v22, %v3406_v41  ;;  %v3407_v19 = vmul.f32 %v5184_v33, %v8905_v10  ;;  %v3479_v46 = vpop.xlane.xlu0 %3478 }
 0xca1   :  { %3647 = vadd.xlane.f32.xlu1 %v3646_v35  ;;  %v7902_v54 = vadd.f32 %v7804_v31, %v3429_v53  ;;  %v3673_v26 = vsel %vm309_vm0, %v3629_v34, 0.0 }
 0xca2   :  { %v3661_v5 = vsel %vm309_vm0, %v3625_v2, 0.0  ;;  %v7907_v21 = vadd.f32 %v7804_v31, %v3426_v6  ;;  %v3427_v49 = vmul.f32 %v7801_v22, %v3407_v19 }
 0xca3   :  { %8906 = vst [vmem:[#allocation13_spill] sm:$0xff] %v7902_v54  ;;  %v3626_v48 = vmul.f32 %v7902_v54, %v7605_v39 }
 0xca4   :  { %8907 = vst [vmem:[#allocation15_spill] sm:$0xff] %v7907_v21  ;;  %3662 = vadd.xlane.f32.xlu0 %v3661_v5  ;;  %v3623_v42 = vmul.f32 %v7907_v21, %v7561_v57  ;;  %v7918_v59 = vadd.f32 %v7804_v31, %v3427_v49  ;;  %v3676_v31 = vsel %vm309_vm0, %v3630_v60, 0.0  ;;  %v3485_v28 = vpop.xlane.xlu0 %3484  ;;  %v3521_v60 = vmul.f32 0.17677669, %v3479_v46 }
 0xca5   :  { %v3664_v16 = vsel %vm309_vm0, %v3626_v48, 0.0  ;;  %v7948_v40 = vmul.f32 0.17677669, %v3485_v28 }
 0xca6   :  { %8909 = vst [vmem:[#allocation41_spill] sm:$0xff] %v7918_v59  ;;  %3665 = vadd.xlane.f32.xlu1 %v3664_v16  ;;  %v3655_v22 = vsel %vm309_vm0, %v3623_v42, 0.0  ;;  %v3624_v39 = vmul.f32 %v7918_v59, %v7578_v25  ;;  %v3482_v25 = vpop.xlane.xlu1 %3481 }
 0xca8   :  { %3656 = vadd.xlane.f32.xlu0 %v3655_v22  ;;  %v3658_v57 = vsel %vm309_vm0, %v3624_v39, 0.0  ;;  %v3491_v15 = vpop.xlane.xlu0 %3490  ;;  %v7942_v39 = vmul.f32 0.17677669, %v3473_v62 }
 0xca9   :  { %v7954_v21 = vmul.f32 0.17677669, %v3491_v15 }
 0xcaa   :  { %3659 = vadd.xlane.f32.xlu1 %v3658_v57  ;;  %v3488_v8 = vpop.xlane.xlu1 %3487  ;;  %v7946_v57 = vmul.f32 0.17677669, %v3476_v11 }
 0xcab   :  { %v7950_v24 = vmul.f32 0.17677669, %v3488_v8 }
 0xcac   :  { %3674 = vadd.xlane.f32.xlu0 %v3673_v26  ;;  %v3497_v9 = vpop.xlane.xlu0 %3496 }
 0xcad   :  { %v7958_v62 = vmul.f32 0.17677669, %v3497_v9 }
 0xcae   :  { %3677 = vadd.xlane.f32.xlu1 %v3676_v31  ;;  %v3494_v0 = vpop.xlane.xlu1 %3493  ;;  %v3522_v31 = vmul.f32 0.17677669, %v3482_v25 }
 0xcaf   :  { %v7956_v54 = vmul.f32 0.17677669, %v3494_v0 }
 0xcb0   :  { %v3503_v7 = vpop.xlane.xlu0 %3502 }
 0xcb1   :  { %v7962_v11 = vmul.f32 0.17677669, %v3503_v7 }
 0xcb2   :  { %v3500_v14 = vpop.xlane.xlu1 %3499 }
 0xcb3   :  { %v7960_v61 = vmul.f32 0.17677669, %v3500_v14 }
 0xcb4   :  { %v3509_v45 = vpop.xlane.xlu0 %3508 }
 0xcb5   :  { %v7966_v25 = vmul.f32 0.17677669, %v3509_v45 }
 0xcb6   :  { %v3506_v43 = vpop.xlane.xlu1 %3505 }
 0xcb8   :  { %v3515_v41 = vpop.xlane.xlu0 %3514 }
 0xcba   :  { %v3512_v12 = vpop.xlane.xlu1 %3511 }
 0xcbb   :  { %v7968_v1 = vmul.f32 0.17677669, %v3512_v12 }
 0xcbc   :  { %v3553_v53 = vpop.xlane.xlu0 %3552 }
 0xcbd   :  { %v3599_v15 = vmul.f32 0.17677669, %v3553_v53 }
 0xcbe   :  { %v3518_v33 = vpop.xlane.xlu1 %3517 }
 0xcbf   :  { %v7974_v7 = vmul.f32 0.17677669, %v3518_v33  ;;  %v3695_v53 = vmax.f32 %v7942_v39, %v3599_v15 }
 0xcc0   :  { %v3559_v35 = vpop.xlane.xlu0 %3558 }
 0xcc1   :  { %v3601_v26 = vmul.f32 0.17677669, %v3559_v35  ;;  %v7964_v35 = vmul.f32 0.17677669, %v3506_v43 }
 0xcc2   :  { %v3556_v20 = vpop.xlane.xlu1 %3555 }
 0xcc3   :  { %v3697_v28 = vmax.f32 %v3521_v60, %v3601_v26  ;;  %v7970_v44 = vmul.f32 0.17677669, %v3556_v20 }
 0xcc4   :  { %v3565_v6 = vpop.xlane.xlu0 %3564 }
 0xcc5   :  { %v7976_v37 = vmul.f32 0.17677669, %v3565_v6  ;;  %v3696_v20 = vmax.f32 %v7946_v57, %v7970_v44 }
 0xcc6   :  { %v3562_v2 = vpop.xlane.xlu1 %3561 }
 0xcc7   :  { %v3602_v58 = vmul.f32 0.17677669, %v3562_v2  ;;  %v7972_v2 = vmul.f32 0.17677669, %v3515_v41 }
 0xcc8   :  { %v3571_v19 = vpop.xlane.xlu0 %3570 }
 0xcc9   :  { %v3698_v9 = vmax.f32 %v3522_v31, %v3602_v58  ;;  %v7983_v41 = vmul.f32 0.17677669, %v3571_v19 }
 0xcca   :  { %v3568_v10 = vpop.xlane.xlu1 %3567 }
 0xccb   :  { %v7978_v43 = vmul.f32 0.17677669, %v3568_v10 }
 0xccc   :  { %v3577_v5 = vpop.xlane.xlu0 %3576 }
 0xcce   :  { %v3574_v47 = vpop.xlane.xlu1 %3573 }
 0xccf   :  { %v7985_v63 = vmul.f32 0.17677669, %v3574_v47  ;;  %v3701_v47 = vmax.f32 %v7954_v21, %v7983_v41 }
 0xcd0   :  { %v7936_v48 = vpop.xlane.xlu0 %3582 }
 0xcd2   :  { %v7934_v49 = vpop.xlane.xlu1 %3579 }
 0xcd4   :  { %v3589_v16 = vpop.xlane.xlu0 %3588 }
 0xcd5   :  { %v3611_v10 = vmul.f32 0.17677669, %v3589_v16 }
 0xcd6   :  { %v7938_v42 = vpop.xlane.xlu1 %3585 }
 0xcd8   :  { %v7944_v34 = vpop.xlane.xlu0 %3594 }
 0xcda   :  { %v7940_v22 = vpop.xlane.xlu1 %3591 }
 0xcde   :  { %v7952_v59 = vpop.xlane.xlu1 %3597 }
 0xd18   :  { %v3639_v46 = vpop.xlane.xlu0 %3638 }
 0xd19   :  { %v3681_v8 = vmul.f32 0.17677669, %v3639_v46 }
 0xd1a   :  { %v3642_v0 = vpop.xlane.xlu1 %3641 }
 0xd1b   :  { %v3713_v14 = vmax.f32 %v3697_v28, %v3681_v8  ;;  %v3682_v55 = vmul.f32 0.17677669, %v3642_v0  ;;  %v7987_v28 = vmul.f32 0.17677669, %v3577_v5 }
 0xd1d   :  { %v3729_v45 = vsub.f32 %v3521_v60, %v3713_v14  ;;  %v3777_v50 = vsub.f32 %v3601_v26, %v3713_v14  ;;  %v3825_v46 = vsub.f32 %v3681_v8, %v3713_v14  ;;  %v3714_v12 = vmax.f32 %v3698_v9, %v3682_v55 }
 0xd1f   :  { %v3747_v33 = vmul.f32 1.442695, %v3729_v45  ;;  %v3795_v6 = vmul.f32 1.442695, %v3777_v50  ;;  %v3730_v0 = vsub.f32 %v3522_v31, %v3714_v12  ;;  %v3843_v29 = vmul.f32 1.442695, %v3825_v46 }
 0xd20   :  { %v3778_v60 = vsub.f32 %v3602_v58, %v3714_v12  ;;  %v3826_v26 = vsub.f32 %v3682_v55, %v3714_v12  ;;  %v3633_v8 = vpop.xlane.xlu0 %3632  ;;  %v8000_v46 = vmul.f32 0.17677669, %v7934_v49  ;;  %v3707_v12 = vmax.f32 %v7966_v25, %v3611_v10 }
 0xd21   :  { %v3749_v19 = vmul.f32 1.442695, %v3730_v0  ;;  %v3679_v3 = vmul.f32 0.17677669, %v3633_v8  ;;  %5185 = vpow2.f32 %v3747_v33 }
 0xd22   :  { %v3797_v5 = vmul.f32 1.442695, %v3778_v60  ;;  %v3636_v16 = vpop.xlane.xlu1 %3635  ;;  %5187 = vpow2.f32 %v3795_v6  ;;  %v3845_v55 = vmul.f32 1.442695, %v3826_v26  ;;  %v3612_v6 = vmul.f32 0.17677669, %v7940_v22 }
 0xd23   :  { %v3711_v58 = vmax.f32 %v3695_v53, %v3679_v3  ;;  %v3680_v31 = vmul.f32 0.17677669, %v3636_v16  ;;  %5189 = vpow2.f32 %v3843_v29 }
 0xd24   :  { %v3669_v0 = vpop.xlane.xlu0 %3668  ;;  %5191 = vpow2.f32 %v3749_v19 }
 0xd25   :  { %v3727_v8 = vsub.f32 %v7942_v39, %v3711_v58  ;;  %v3775_v33 = vsub.f32 %v3599_v15, %v3711_v58  ;;  %v3823_v60 = vsub.f32 %v3679_v3, %v3711_v58  ;;  %5193 = vpow2.f32 %v3797_v5 }
 0xd26   :  { %v3712_v53 = vmax.f32 %v3696_v20, %v3680_v31  ;;  %v3691_v26 = vmul.f32 0.17677669, %v3669_v0  ;;  %v3672_v16 = vpop.xlane.xlu1 %3671  ;;  %5195 = vpow2.f32 %v3845_v55  ;;  %v8010_v3 = vmul.f32 0.17677669, %v7936_v48 }
 0xd27   :  { %v3743_v45 = vmul.f32 1.442695, %v3727_v8  ;;  %v3791_v14 = vmul.f32 1.442695, %v3775_v33  ;;  %v3839_v49 = vmul.f32 1.442695, %v3823_v60  ;;  %v3708_v20 = vmax.f32 %v7968_v1, %v3612_v6 }
 0xd28   :  { %v3728_v9 = vsub.f32 %v7946_v57, %v3712_v53  ;;  %v3776_v29 = vsub.f32 %v7970_v44, %v3712_v53  ;;  %v3824_v50 = vsub.f32 %v3680_v31, %v3712_v53  ;;  %v3723_v19 = vmax.f32 %v3707_v12, %v3691_v26 }
 0xd29   :  { %5197 = vpow2.f32 %v3743_v45  ;;  %v3692_v22 = vmul.f32 0.17677669, %v3672_v16  ;;  %v3651_v15 = vpop.xlane.xlu0 %3650  ;;  %v8017_v8 = vmul.f32 0.17677669, %v7938_v42  ;;  %v3705_v42 = vmax.f32 %v7962_v11, %v8010_v3 }
 0xd2a   :  { %5199 = vpow2.f32 %v3791_v14  ;;  %v3745_v5 = vmul.f32 1.442695, %v3728_v9  ;;  %v3793_v55 = vmul.f32 1.442695, %v3776_v29  ;;  %v3654_v58 = vpop.xlane.xlu1 %3653  ;;  %v3841_v57 = vmul.f32 1.442695, %v3824_v50 }
 0xd2b   :  { %v3739_v44 = vsub.f32 %v7966_v25, %v3723_v19  ;;  %v3787_v31 = vsub.f32 %v3611_v10, %v3723_v19  ;;  %v3835_v12 = vsub.f32 %v3691_v26, %v3723_v19  ;;  %v8014_v0 = vpop.eup %5185  ;;  %5201 = vpow2.f32 %v3839_v49 }
 0xd2c   :  { %v3724_v48 = vmax.f32 %v3708_v20, %v3692_v22  ;;  %v3685_v45 = vmul.f32 0.17677669, %v3651_v15  ;;  %v8019_v33 = vpop.eup %5187  ;;  %5203 = vpow2.f32 %v3745_v5  ;;  %v3686_v60 = vmul.f32 0.17677669, %v3654_v58 }
 0xd2d   :  { %v3767_v14 = vmul.f32 1.442695, %v3739_v44  ;;  %v3815_v9 = vmul.f32 1.442695, %v3787_v31  ;;  %v8021_v53 = vpop.eup %5189  ;;  %5205 = vpow2.f32 %v3793_v55  ;;  %v3863_v25 = vmul.f32 1.442695, %v3835_v12 }
 0xd2e   :  { %v3740_v10 = vsub.f32 %v7968_v1, %v3724_v48  ;;  %v3788_v50 = vsub.f32 %v3612_v6, %v3724_v48  ;;  %v8024_v26 = vpop.eup %5191  ;;  %5207 = vpow2.f32 %v3841_v57  ;;  %v3836_v16 = vsub.f32 %v3692_v22, %v3724_v48  ;;  %v3645_v6 = vpop.xlane.xlu0 %3644 }
 0xd2f   :  { %v3717_v49 = vmax.f32 %v3701_v47, %v3685_v45  ;;  %v8031_v29 = vpop.eup %5193  ;;  %v3706_v19 = vmax.f32 %v7964_v35, %v8017_v8  ;;  %5209 = vpow2.f32 %v3767_v14  ;;  %v8040_v58 = vmul.f32 0.17677669, %v7944_v34 }
 0xd30   :  { %v3769_v15 = vmul.f32 1.442695, %v3740_v10  ;;  %v3817_v1 = vmul.f32 1.442695, %v3788_v50  ;;  %v8035_v20 = vpop.eup %5195  ;;  %5211 = vpow2.f32 %v3815_v9  ;;  %v3865_v5 = vmul.f32 1.442695, %v3836_v16  ;;  %v3648_v9 = vpop.xlane.xlu1 %3647 }
 0xd31   :  { %v3733_v55 = vsub.f32 %v7954_v21, %v3717_v49  ;;  %v3781_v22 = vsub.f32 %v7983_v41, %v3717_v49  ;;  %5213 = vpow2.f32 %v3863_v25  ;;  %v3829_v47 = vsub.f32 %v3685_v45, %v3717_v49 }
 0xd32   :  { %v8911_v57 = vmax.f32 %v7956_v54, %v7985_v63  ;;  %5215 = vpow2.f32 %v3769_v15  ;;  %v3683_v14 = vmul.f32 0.17677669, %v3645_v6  ;;  %v8052_v45 = vmul.f32 0.17677669, %v7952_v59 }
 0xd33   :  { %v8045_v31 = vpop.eup %5197  ;;  %v3755_v12 = vmul.f32 1.442695, %v3733_v55  ;;  %v3803_v48 = vmul.f32 1.442695, %v3781_v22  ;;  %5217 = vpow2.f32 %v3817_v1  ;;  %v3851_v21 = vmul.f32 1.442695, %v3829_v47  ;;  %v3663_v55 = vpop.xlane.xlu0 %3662 }
 0xd34   :  { %v3718_v44 = vmax.f32 %v8911_v57, %v3686_v60  ;;  %v8047_v10 = vpop.eup %5199  ;;  %5219 = vpow2.f32 %v3865_v5  ;;  %v8912_v50 = vmax.f32 %v7948_v40, %v7976_v37  ;;  %v3684_v1 = vmul.f32 0.17677669, %v3648_v9 }
 0xd35   :  { %v8057_v49 = vpop.eup %5201  ;;  %5221 = vpow2.f32 %v3755_v12  ;;  %v3873_v5 = vadd.f32 %v8019_v33, %v8014_v0  ;;  %v8915_v9 = vmax.f32 %v7950_v24, %v7978_v43 }
 0xd36   :  { %v3734_v34 = vsub.f32 %v7956_v54, %v3718_v44  ;;  %v3782_v41 = vsub.f32 %v7985_v63, %v3718_v44  ;;  %v3830_v25 = vsub.f32 %v3686_v60, %v3718_v44  ;;  %v3715_v16 = vmax.f32 %v8912_v50, %v3683_v14  ;;  %8913 = vst [vmem:[#allocation43_spill] sm:$0xff] %v8057_v49  ;;  %v8059_v22 = vpop.eup %5203 }
 0xd37   :  { %5223 = vpow2.f32 %v3803_v48  ;;  %v8064_v60 = vpop.eup %5205  ;;  %v3716_v48 = vmax.f32 %v8915_v9, %v3684_v1 }
 0xd38   :  { %v3757_v15 = vmul.f32 1.442695, %v3734_v34  ;;  %v3805_v6 = vmul.f32 1.442695, %v3782_v41  ;;  %v3853_v54 = vmul.f32 1.442695, %v3830_v25  ;;  %v3731_v59 = vsub.f32 %v7948_v40, %v3715_v16  ;;  %v8069_v44 = vpop.eup %5207  ;;  %v3666_v41 = vpop.xlane.xlu1 %3665 }
 0xd39   :  { %5225 = vpow2.f32 %v3851_v21  ;;  %v3779_v47 = vsub.f32 %v7976_v37, %v3715_v16  ;;  %v3827_v57 = vsub.f32 %v3683_v14, %v3715_v16  ;;  %8914 = vst [vmem:[#allocation44_spill] sm:$0xff] %v8069_v44  ;;  %v3689_v34 = vmul.f32 0.17677669, %v3663_v55  ;;  %v8074_v40 = vpop.eup %5209 }
 0xd3a   :  { %5227 = vpow2.f32 %v3757_v15  ;;  %v3751_v12 = vmul.f32 1.442695, %v3731_v59  ;;  %v8078_v37 = vpop.eup %5211  ;;  %v3874_v14 = vadd.f32 %v8031_v29, %v8024_v26  ;;  %v3732_v16 = vsub.f32 %v7950_v24, %v3716_v48 }
 0xd3b   :  { %5229 = vpow2.f32 %v3805_v6  ;;  %v3799_v21 = vmul.f32 1.442695, %v3779_v47  ;;  %v3847_v50 = vmul.f32 1.442695, %v3827_v57  ;;  %v3780_v15 = vsub.f32 %v7978_v43, %v3716_v48  ;;  %v8084_v55 = vpop.eup %5213  ;;  %v3657_v57 = vpop.xlane.xlu0 %3656 }
 0xd3c   :  { %5231 = vpow2.f32 %v3853_v54  ;;  %v3828_v59 = vsub.f32 %v3684_v1, %v3716_v48  ;;  %v3721_v6 = vmax.f32 %v3705_v42, %v3689_v34  ;;  %v3690_v47 = vmul.f32 0.17677669, %v3666_v41  ;;  %v8089_v9 = vpop.eup %5215 }
 0xd3d   :  { %5233 = vpow2.f32 %v3751_v12  ;;  %v8092_v25 = vadd.f32 %v8021_v53, %v3873_v5  ;;  %v3753_v54 = vmul.f32 1.442695, %v3732_v16  ;;  %v3801_v24 = vmul.f32 1.442695, %v3780_v15  ;;  %v8094_v63 = vpop.eup %5217 }
 0xd3e   :  { %5235 = vpow2.f32 %v3799_v21  ;;  %v3849_v43 = vmul.f32 1.442695, %v3828_v59  ;;  %v3737_v1 = vsub.f32 %v7962_v11, %v3721_v6  ;;  %v3785_v12 = vsub.f32 %v8010_v3, %v3721_v6  ;;  %v8098_v48 = vpop.eup %5219  ;;  %v3660_v11 = vpop.xlane.xlu1 %3659 }
 0xd3f   :  { %5237 = vpow2.f32 %v3847_v50  ;;  %v3833_v42 = vsub.f32 %v3689_v34, %v3721_v6  ;;  %v3722_v5 = vmax.f32 %v3706_v19, %v3690_v47  ;;  %v3687_v41 = vmul.f32 0.17677669, %v3657_v57  ;;  %v8103_v21 = vpop.eup %5221  ;;  %v3675_v39 = vpop.xlane.xlu0 %3674 }
 0xd40   :  { %5239 = vpow2.f32 %v3753_v54  ;;  %v8106_v16 = vadd.f32 %v8035_v20, %v3874_v14  ;;  %v3763_v50 = vmul.f32 1.442695, %v3737_v1  ;;  %v3811_v15 = vmul.f32 1.442695, %v3785_v12 }
 0xd41   :  { %5241 = vpow2.f32 %v3801_v24  ;;  %v8108_v59 = vpop.eup %5223  ;;  %v3871_v3 = vadd.f32 %v8047_v10, %v8045_v31  ;;  %v3859_v34 = vmul.f32 1.442695, %v3833_v42  ;;  %v3738_v6 = vsub.f32 %v7964_v35, %v3722_v5 }
 0xd42   :  { %5243 = vpow2.f32 %v3849_v43  ;;  %v3786_v57 = vsub.f32 %v8017_v8, %v3722_v5  ;;  %v3834_v14 = vsub.f32 %v3690_v47, %v3722_v5  ;;  %v8916_v54 = vmax.f32 %v7958_v62, %v7987_v28 }
 0xd43   :  { %v8113_v19 = vpop.eup %5225  ;;  %5245 = vpow2.f32 %v3763_v50  ;;  %v3872_v12 = vadd.f32 %v8064_v60, %v8059_v22  ;;  %v3765_v43 = vmul.f32 1.442695, %v3738_v6  ;;  %v3688_v42 = vmul.f32 0.17677669, %v3660_v11 }
 0xd44   :  { %v3719_v24 = vmax.f32 %v8916_v54, %v3687_v41  ;;  %v8119_v1 = vpop.eup %5227  ;;  %5247 = vpow2.f32 %v3811_v15  ;;  %v3883_v50 = vadd.f32 %v8078_v37, %v8074_v40  ;;  %v3813_v8 = vmul.f32 1.442695, %v3786_v57 }
 0xd45   :  { %8917 = vst [vmem:[#allocation45_spill] sm:$0xff] %v8119_v1  ;;  %v8123_v35 = vpop.eup %5229  ;;  %5249 = vpow2.f32 %v3859_v34  ;;  %v3861_v47 = vmul.f32 1.442695, %v3834_v14  ;;  %v8134_v11 = vadd.f32 %v8057_v49, %v3871_v3  ;;  %v8920_v6 = vmax.f32 %v7960_v61, %v8000_v46  ;;  %v3678_v14 = vpop.xlane.xlu1 %3677 }
 0xd46   :  { %8918 = vst [vmem:[#allocation46_spill] sm:$0xff] %v8123_v35  ;;  %v8127_v5 = vpop.eup %5231  ;;  %5251 = vpow2.f32 %v3765_v43  ;;  %v3735_v54 = vsub.f32 %v7958_v62, %v3719_v24  ;;  %v3783_v4 = vsub.f32 %v7987_v28, %v3719_v24  ;;  %v3831_v36 = vsub.f32 %v3687_v41, %v3719_v24 }
 0xd47   :  { %v8131_v15 = vpop.eup %5233  ;;  %5253 = vpow2.f32 %v3813_v8  ;;  %v3720_v34 = vmax.f32 %v8920_v6, %v3688_v42  ;;  %v3693_v57 = vmul.f32 0.17677669, %v3675_v39  ;;  %v8142_v43 = vadd.f32 %v8069_v44, %v3872_v12 }
 0xd48   :  { %8919 = vst [vmem:[#allocation47_spill] sm:$0xff] %v8131_v15  ;;  %v8139_v13 = vpop.eup %5235  ;;  %5255 = vpow2.f32 %v3861_v47  ;;  %v3759_v62 = vmul.f32 1.442695, %v3735_v54  ;;  %v3807_v28 = vmul.f32 1.442695, %v3783_v4  ;;  %v8151_v39 = vadd.f32 %v8084_v55, %v3883_v50 }
 0xd49   :  { %8921 = vst [vmem:[#allocation48_spill] sm:$0xff] %v8139_v13  ;;  %v8144_v41 = vpop.eup %5237  ;;  %v3855_v24 = vmul.f32 1.442695, %v3831_v36  ;;  %v3736_v3 = vsub.f32 %v7960_v61, %v3720_v34  ;;  %v3784_v8 = vsub.f32 %v8000_v46, %v3720_v34  ;;  %v3832_v49 = vsub.f32 %v3688_v42, %v3720_v34 }
 0xd4a   :  { %v8148_v27 = vpop.eup %5239  ;;  %5257 = vpow2.f32 %v3759_v62  ;;  %v8922_v12 = vmax.f32 %v7972_v2, %v8040_v58  ;;  %v3694_v54 = vmul.f32 0.17677669, %v3678_v14  ;;  %v3884_v46 = vadd.f32 %v8094_v63, %v8089_v9 }
 0xd4b   :  { %v8156_v4 = vpop.eup %5241  ;;  %5259 = vpow2.f32 %v3807_v28  ;;  %v3761_v36 = vmul.f32 1.442695, %v3736_v3  ;;  %v3809_v6 = vmul.f32 1.442695, %v3784_v8  ;;  %v3857_v61 = vmul.f32 1.442695, %v3832_v49 }
 0xd4c   :  { %v3725_v47 = vmax.f32 %v8922_v12, %v3693_v57  ;;  %v8158_v44 = vpop.eup %5243  ;;  %5261 = vpow2.f32 %v3855_v24  ;;  %v3877_v14 = vadd.f32 %v8108_v59, %v8103_v21  ;;  %v8923_v49 = vmax.f32 %v7974_v7, %v8052_v45 }
 0xd4d   :  { %v8164_v34 = vpop.eup %5245  ;;  %5263 = vpow2.f32 %v3761_v36  ;;  %v3878_v24 = vadd.f32 %v8123_v35, %v8119_v1  ;;  %v3875_v12 = vadd.f32 %v8139_v13, %v8131_v15 }
 0xd4e   :  { %v3741_v42 = vsub.f32 %v7972_v2, %v3725_v47  ;;  %v3789_v50 = vsub.f32 %v8040_v58, %v3725_v47  ;;  %v3837_v62 = vsub.f32 %v3693_v57, %v3725_v47  ;;  %v3726_v28 = vmax.f32 %v8923_v49, %v3694_v54  ;;  %v8171_v3 = vpop.eup %5247 }
 0xd4f   :  { %5265 = vpow2.f32 %v3809_v6  ;;  %v8175_v58 = vpop.eup %5249  ;;  %v3876_v49 = vadd.f32 %v8156_v4, %v8148_v27 }
 0xd50   :  { %v3771_v2 = vmul.f32 1.442695, %v3741_v42  ;;  %v3819_v8 = vmul.f32 1.442695, %v3789_v50  ;;  %5267 = vpow2.f32 %v3857_v61  ;;  %v3867_v36 = vmul.f32 1.442695, %v3837_v62  ;;  %v8180_v47 = vpop.eup %5251 }
 0xd51   :  { %v3742_v57 = vsub.f32 %v7974_v7, %v3726_v28  ;;  %v3790_v35 = vsub.f32 %v8052_v45, %v3726_v28  ;;  %v3838_v6 = vsub.f32 %v3694_v54, %v3726_v28  ;;  %v8185_v42 = vpop.eup %5253  ;;  %v3881_v50 = vadd.f32 %v8171_v3, %v8164_v34  ;;  %v8924_v61 = vld [vmem:[#allocation16_spill] sm:$0xff]  ;;  %v8925_v54 = vld [vmem:[#allocation5_spill] sm:$0xff] }
 0xd52   :  { %5269 = vpow2.f32 %v3771_v2  ;;  %v3921_v62 = vmul.f32 %v8014_v0, %v8924_v61  ;;  %v8191_v7 = vpop.eup %5255  ;;  %v3937_v2 = vmul.f32 %v8019_v33, %v7686_v18  ;;  %v3882_v45 = vadd.f32 %v8185_v42, %v8180_v47 }
 0xd53   :  { %5271 = vpow2.f32 %v3819_v8  ;;  %v3773_v13 = vmul.f32 1.442695, %v3742_v57  ;;  %v3821_v15 = vmul.f32 1.442695, %v3790_v35  ;;  %v3869_v1 = vmul.f32 1.442695, %v3838_v6 }
 0xd54   :  { %5273 = vpow2.f32 %v3867_v36  ;;  %v3922_v28 = vmul.f32 %v8024_v26, %v8925_v54  ;;  %v3938_v8 = vmul.f32 %v8031_v29, %v7695_v23  ;;  %v8201_v57 = vpop.eup %5257  ;;  %v3900_v0 = vadd.f32 %v8098_v48, %v3884_v46  ;;  %v8931_v54 = vld [vmem:[#allocation32_spill] sm:$0xff] }
 0xd55   :  { %5275 = vpow2.f32 %v3773_v13  ;;  %v3893_v35 = vadd.f32 %v8113_v19, %v3877_v14  ;;  %v3894_v36 = vadd.f32 %v8127_v5, %v3878_v24  ;;  %v8206_v18 = vpop.eup %5259  ;;  %v3891_v33 = vadd.f32 %v8144_v41, %v3875_v12  ;;  %v8926_v13 = vld [vmem:[#allocation4_spill] sm:$0xff] }
 0xd56   :  { %5277 = vpow2.f32 %v3821_v15  ;;  %v3919_v26 = vmul.f32 %v8045_v31, %v8926_v13  ;;  %v3935_v23 = vmul.f32 %v8047_v10, %v7672_v52  ;;  %v8213_v29 = vpop.eup %5261  ;;  %v8216_v46 = vadd.f32 %v8158_v44, %v3876_v49 }
 0xd57   :  { %5279 = vpow2.f32 %v3869_v1  ;;  %v8219_v14 = vadd.f32 %v8175_v58, %v3881_v50  ;;  %v3969_v15 = vmul.f32 %v8021_v53, %v7810_v32  ;;  %v8224_v1 = vpop.eup %5263  ;;  %v8227_v31 = vadd.f32 %v8191_v7, %v3882_v45 }
 0xd58   :  { %5281 = vrcp.f32 %v8092_v25  ;;  %v3953_v24 = vadd.f32 %v3937_v2, %v3921_v62  ;;  %v3954_v52 = vadd.f32 %v3938_v8, %v3922_v28  ;;  %v3879_v12 = vadd.f32 %v8206_v18, %v8201_v57  ;;  %v8927_v25 = vld [vmem:[#allocation14_spill] sm:$0xff]  ;;  %v8932_v28 = vld [vmem:[#allocation44_spill] sm:$0xff] }
 0xd59   :  { %5283 = vrcp.f32 %v8106_v16  ;;  %v8230_v10 = vpop.eup %5265  ;;  %v3920_v49 = vmul.f32 %v8059_v22, %v8927_v25  ;;  %v3936_v32 = vmul.f32 %v8064_v60, %v7682_v30  ;;  %v3970_v6 = vmul.f32 %v8035_v20, %v7816_v51  ;;  %v8928_v60 = vld [vmem:[#allocation31_spill] sm:$0xff] }
 0xd5a   :  { %5285 = vrcp.f32 %v8134_v11  ;;  %v8239_v53 = vpop.eup %5267  ;;  %v3951_v16 = vadd.f32 %v3935_v23, %v3919_v26  ;;  %v3931_v50 = vmul.f32 %v8074_v40, %v7627_v17  ;;  %v3880_v11 = vadd.f32 %v8230_v10, %v8224_v1  ;;  %v8930_v17 = vld [vmem:[#allocation7_spill] sm:$0xff] }
 0xd5b   :  { %5287 = vrcp.f32 %v8142_v43  ;;  %v3947_v30 = vmul.f32 %v8078_v37, %v7766_v56  ;;  %v3932_v22 = vmul.f32 %v8089_v9, %v7636_v38  ;;  %v3985_v20 = vadd.f32 %v3969_v15, %v3953_v24  ;;  %v8929_v43 = vld [vmem:[#allocation43_spill] sm:$0xff]  ;;  %v8934_v24 = vld [vmem:[#allocation18_spill] sm:$0xff] }
 0xd5c   :  { %v8246_v61 = vpop.eup %5269  ;;  %5289 = vrcp.f32 %v8151_v39  ;;  %v3967_v62 = vmul.f32 %v8929_v43, %v8928_v60  ;;  %v3948_v40 = vmul.f32 %v8094_v63, %v8930_v17  ;;  %v8264_v39 = vadd.f32 %v8213_v29, %v3879_v12  ;;  %v8935_v12 = vld [vmem:[#allocation28_spill] sm:$0xff]  ;;  %v8942_v17 = vld [vmem:[#allocation10_spill] sm:$0xff] }
 0xd5d   :  { %v8255_v51 = vpop.eup %5271  ;;  %5291 = vrcp.f32 %v3900_v0  ;;  %v3986_v45 = vadd.f32 %v3970_v6, %v3954_v52  ;;  %v3952_v56 = vadd.f32 %v3936_v32, %v3920_v49  ;;  %v3968_v8 = vmul.f32 %v8932_v28, %v8931_v54  ;;  %v8933_v0 = vld [vmem:[#allocation33_spill] sm:$0xff]  ;;  %v8936_v49 = vld [vmem:[#allocation19_spill] sm:$0xff]  ;;  %v8944_v28 = vld [vmem:[#allocation26_spill] sm:$0xff] }
 0xd5e   :  { %v8261_v2 = vpop.eup %5273  ;;  %5293 = vrcp.f32 %v3893_v35  ;;  %v3885_v38 = vadd.f32 %v8255_v51, %v8246_v61  ;;  %v3983_v9 = vadd.f32 %v3967_v62, %v3951_v16  ;;  %v3979_v63 = vmul.f32 %v8084_v55, %v8933_v0  ;;  %v8937_v32 = vld [vmem:[#allocation45_spill] sm:$0xff]  ;;  %v8939_v16 = vld [vmem:[#allocation46_spill] sm:$0xff]  ;;  %v8945_v0 = vld [vmem:[#allocation48_spill] sm:$0xff] }
 0xd5f   :  { %v8266_v37 = vpop.eup %5275  ;;  %v8277_v26 = vadd.f32 %v8239_v53, %v3880_v11  ;;  %v3963_v23 = vadd.f32 %v3947_v30, %v3931_v50  ;;  %v3964_v15 = vadd.f32 %v3948_v40, %v3932_v22  ;;  %5295 = vrcp.f32 %v3894_v36  ;;  %v8938_v55 = vld [vmem:[#allocation29_spill] sm:$0xff]  ;;  %v8940_v62 = vld [vmem:[#allocation34_spill] sm:$0xff]  ;;  %v8941_v36 = vld [vmem:[#allocation35_spill] sm:$0xff] }
 0xd60   :  { %v8274_v13 = vpop.eup %5277  ;;  %v3925_v52 = vmul.f32 %v8103_v21, %v8934_v24  ;;  %v3941_v25 = vmul.f32 %v8108_v59, %v8935_v12  ;;  %v3926_v6 = vmul.f32 %v8937_v32, %v8936_v49  ;;  %v3942_v60 = vmul.f32 %v8939_v16, %v8938_v55  ;;  %v8943_v40 = vld [vmem:[#allocation47_spill] sm:$0xff] }
 0xd61   :  { %v8279_v35 = vpop.eup %5279  ;;  %v3984_v11 = vadd.f32 %v3968_v8, %v3952_v56  ;;  %v3980_v50 = vmul.f32 %v8098_v48, %v8940_v62  ;;  %v3973_v30 = vmul.f32 %v8113_v19, %v8941_v36  ;;  %5297 = vrcp.f32 %v3891_v33 }
 0xd62   :  { %v5282_v43 = vpop.eup %5281  ;;  %v8294_v21 = vadd.f32 %v8261_v2, %v3885_v38  ;;  %v3923_v54 = vmul.f32 %v8943_v40, %v8942_v17  ;;  %v3939_v24 = vmul.f32 %v8945_v0, %v8944_v28  ;;  %v3995_v48 = vadd.f32 %v3979_v63, %v3963_v23  ;;  %v8947_v23 = vld [vmem:[#allocation27_spill] sm:$0xff] }
 0xd63   :  { %v5284_v22 = vpop.eup %5283  ;;  %v8296_v59 = vmul.f32 %v5282_v43, %v3985_v20  ;;  %v3996_v12 = vadd.f32 %v3980_v50, %v3964_v15  ;;  %5299 = vrcp.f32 %v8216_v46  ;;  %v3957_v20 = vadd.f32 %v3941_v25, %v3925_v52  ;;  %v8949_v50 = vld [vmem:[#allocation37_spill] sm:$0xff] }
 0xd64   :  { %v5286_v56 = vpop.eup %5285  ;;  %v8302_v8 = vmul.f32 %v5284_v22, %v3986_v45  ;;  %v3958_v49 = vadd.f32 %v3942_v60, %v3926_v6  ;;  %v8946_v45 = vld [vmem:[#allocation17_spill] sm:$0xff]  ;;  %v3940_v46 = vmul.f32 %v8156_v4, %v8947_v23  ;;  %v3955_v25 = vadd.f32 %v3939_v24, %v3923_v54  ;;  %v8948_v4 = vld [vmem:[#allocation36_spill] sm:$0xff]  ;;  %v8950_v22 = vld [vmem:[#allocation22_spill] sm:$0xff] }
 0xd65   :  { %v5288_v19 = vpop.eup %5287  ;;  %v4021_v33 = vsel %vm309_vm0, %v8296_v59, 0.0  ;;  %v8307_v38 = vmul.f32 %v5286_v56, %v3983_v9  ;;  %v3924_v63 = vmul.f32 %v8148_v27, %v8946_v45  ;;  %5301 = vrcp.f32 %v8219_v14  ;;  %v8951_v14 = vld [vmem:[#allocation12_spill] sm:$0xff]  ;;  %v8952_v24 = vld [vmem:[#allocation23_spill] sm:$0xff] }
 0xd66   :  { %v5290_v32 = vpop.eup %5289  ;;  %4022 = vadd.xlane.f32.xlu0 %v4021_v33  ;;  %v4024_v55 = vsel %vm309_vm0, %v8302_v8, 0.0  ;;  %v8311_v16 = vmul.f32 %v5288_v19, %v3984_v11  ;;  %v3886_v60 = vadd.f32 %v8274_v13, %v8266_v37  ;;  %v3974_v11 = vmul.f32 %v8127_v5, %v8948_v4 }
 0xd67   :  { %v5292_v15 = vpop.eup %5291  ;;  %4025 = vadd.xlane.f32.xlu1 %v4024_v55  ;;  %v4015_v9 = vsel %vm309_vm0, %v8307_v38, 0.0  ;;  %v8319_v52 = vmul.f32 %v5290_v32, %v3995_v48  ;;  %v3989_v62 = vadd.f32 %v3973_v30, %v3957_v20  ;;  %v3971_v36 = vmul.f32 %v8144_v41, %v8949_v50  ;;  %v8956_v55 = vld [vmem:[#allocation30_spill] sm:$0xff] }
 0xd68   :  { %v5294_v6 = vpop.eup %5293  ;;  %v4018_v27 = vsel %vm309_vm0, %v8311_v16, 0.0  ;;  %v8326_v43 = vmul.f32 %v5292_v15, %v3996_v12  ;;  %v3929_v17 = vmul.f32 %v8164_v34, %v8950_v22  ;;  %v3945_v40 = vmul.f32 %v8171_v3, %v8951_v14  ;;  %v8953_v34 = vld [vmem:[#allocation6_spill] sm:$0xff] }
 0xd69   :  { %v5296_v54 = vpop.eup %5295  ;;  %v3990_v28 = vadd.f32 %v3974_v11, %v3958_v49  ;;  %v3956_v0 = vadd.f32 %v3940_v46, %v3924_v63  ;;  %5303 = vrcp.f32 %v8227_v31  ;;  %v3930_v56 = vmul.f32 %v8180_v47, %v8952_v24  ;;  %v8954_v31 = vld [vmem:[#allocation38_spill] sm:$0xff]  ;;  %v8955_v49 = vld [vmem:[#allocation20_spill] sm:$0xff] }
 0xd6a   :  { %4016 = vadd.xlane.f32.xlu0 %v4015_v9  ;;  %v4051_v5 = vsel %vm309_vm0, %v8319_v52, 0.0  ;;  %v8341_v41 = vmul.f32 %v5294_v6, %v3989_v62  ;;  %v3987_v30 = vadd.f32 %v3971_v36, %v3955_v25  ;;  %v3946_v48 = vmul.f32 %v8185_v42, %v8953_v34  ;;  %v8958_v9 = vld [vmem:[#allocation21_spill] sm:$0xff]  ;;  %v8959_v25 = vld [vmem:[#allocation11_spill] sm:$0xff] }
 0xd6b   :  { %4019 = vadd.xlane.f32.xlu1 %v4018_v27  ;;  %v5298_v3 = vpop.eup %5297  ;;  %v4054_v12 = vsel %vm309_vm0, %v8326_v43, 0.0  ;;  %v8347_v19 = vmul.f32 %v5296_v54, %v3990_v28  ;;  %v3972_v33 = vmul.f32 %v8158_v44, %v8954_v31  ;;  %5305 = vrcp.f32 %v8264_v39  ;;  %v8957_v39 = vld [vmem:[#allocation39_spill] sm:$0xff]  ;;  %v8960_v27 = vld [vmem:[#allocation13_spill] sm:$0xff] }
 0xd6c   :  { %v3902_v47 = vadd.f32 %v8279_v35, %v3886_v60  ;;  %v3961_v20 = vadd.f32 %v3945_v40, %v3929_v17  ;;  %v3927_v32 = vmul.f32 %v8201_v57, %v8955_v49  ;;  %v3943_v42 = vmul.f32 %v8206_v18, %v8956_v55  ;;  %v8963_v17 = vld [vmem:[#allocation15_spill] sm:$0xff]  ;;  %v8964_v40 = vld [vmem:[#allocation25_spill] sm:$0xff]  ;;  %v8968_v49 = vld [vmem:[#allocation42_spill] sm:$0xff] }
 0xd6d   :  { %v5300_v45 = vpop.eup %5299  ;;  %v8357_v63 = vmul.f32 %v5298_v3, %v3987_v30  ;;  %v3988_v23 = vadd.f32 %v3972_v33, %v3956_v0  ;;  %v3962_v46 = vadd.f32 %v3946_v48, %v3930_v56  ;;  %5307 = vrcp.f32 %v8277_v26  ;;  %v8967_v48 = vld [vmem:[#allocation40_spill] sm:$0xff] }
 0xd6e   :  { %4052 = vadd.xlane.f32.xlu0 %v4051_v5  ;;  %v4033_v44 = vsel %vm309_vm0, %v8341_v41, 0.0  ;;  %v3977_v15 = vmul.f32 %v8175_v58, %v8957_v39  ;;  %v3928_v57 = vmul.f32 %v8224_v1, %v8958_v9  ;;  %v3944_v18 = vmul.f32 %v8230_v10, %v8959_v25  ;;  %v8961_v58 = vld [vmem:[#allocation24_spill] sm:$0xff]  ;;  %v8966_v5 = vld [vmem:[#allocation41_spill] sm:$0xff] }
 0xd6f   :  { %4055 = vadd.xlane.f32.xlu1 %v4054_v12  ;;  %v4036_v6 = vsel %vm309_vm0, %v8347_v19, 0.0  ;;  %v8370_v60 = vmul.f32 %v5300_v45, %v3988_v23  ;;  %v3978_v26 = vmul.f32 %v8191_v7, %v8960_v27  ;;  %5309 = vrcp.f32 %v8294_v21  ;;  %v5302_v4 = vpop.eup %5301  ;;  %v8962_v1 = vld [vmem:[#allocation8_spill] sm:$0xff] }
 0xd70   :  { %v3993_v11 = vadd.f32 %v3977_v15, %v3961_v20  ;;  %v3959_v62 = vadd.f32 %v3943_v42, %v3927_v32  ;;  %v3933_v50 = vmul.f32 %v8246_v61, %v8961_v58  ;;  %v3949_v36 = vmul.f32 %v8255_v51, %v8962_v1  ;;  %v8965_v61 = vld [vmem:[#allocation9_spill] sm:$0xff] }
 0xd71   :  { %v4027_v10 = vsel %vm309_vm0, %v8357_v63, 0.0  ;;  %v3994_v22 = vadd.f32 %v3978_v26, %v3962_v46  ;;  %v3975_v14 = vmul.f32 %v8213_v29, %v8963_v17  ;;  %5311 = vrcp.f32 %v3902_v47 }
 0xd72   :  { %4034 = vadd.xlane.f32.xlu0 %v4033_v44  ;;  %v8383_v7 = vmul.f32 %v5302_v4, %v3993_v11  ;;  %v3960_v21 = vadd.f32 %v3944_v18, %v3928_v57  ;;  %v3934_v54 = vmul.f32 %v8266_v37, %v8964_v40  ;;  %v3950_v28 = vmul.f32 %v8274_v13, %v8965_v61 }
 0xd73   :  { %4037 = vadd.xlane.f32.xlu1 %v4036_v6  ;;  %v5304_v51 = vpop.eup %5303  ;;  %v4030_v0 = vsel %vm309_vm0, %v8370_v60, 0.0  ;;  %v3991_v56 = vadd.f32 %v3975_v14, %v3959_v62  ;;  %v3976_v29 = vmul.f32 %v8239_v53, %v8966_v5  ;;  %v3965_v30 = vadd.f32 %v3949_v36, %v3933_v50 }
 0xd74   :  { %v8391_v24 = vmul.f32 %v5304_v51, %v3994_v22  ;;  %v3981_v3 = vmul.f32 %v8261_v2, %v8967_v48  ;;  %v4045_v37 = vsel %vm309_vm0, %v8383_v7, 0.0  ;;  %v3966_v31 = vadd.f32 %v3950_v28, %v3934_v54 }
 0xd75   :  { %v5306_v34 = vpop.eup %5305  ;;  %v3992_v12 = vadd.f32 %v3976_v29, %v3960_v21  ;;  %v3982_v32 = vmul.f32 %v8279_v35, %v8968_v49 }
 0xd76   :  { %4028 = vadd.xlane.f32.xlu0 %v4027_v10  ;;  %v8399_v13 = vmul.f32 %v5306_v34, %v3991_v56  ;;  %v4048_v47 = vsel %vm309_vm0, %v8391_v24, 0.0  ;;  %v3997_v53 = vadd.f32 %v3981_v3, %v3965_v30 }
 0xd77   :  { %4031 = vadd.xlane.f32.xlu1 %v4030_v0  ;;  %v5308_v33 = vpop.eup %5307  ;;  %v3998_v45 = vadd.f32 %v3982_v32, %v3966_v31 }
 0xd78   :  { %v8403_v20 = vmul.f32 %v5308_v33, %v3992_v12  ;;  %v4039_v2 = vsel %vm309_vm0, %v8399_v13, 0.0 }
 0xd79   :  { %v5310_v55 = vpop.eup %5309 }
 0xd7a   :  { %4046 = vadd.xlane.f32.xlu0 %v4045_v37  ;;  %v8409_v42 = vmul.f32 %v5310_v55, %v3997_v53  ;;  %v4042_v46 = vsel %vm309_vm0, %v8403_v20, 0.0 }
 0xd7b   :  { %4049 = vadd.xlane.f32.xlu1 %v4048_v47  ;;  %v5312_v23 = vpop.eup %5311 }
 0xd7c   :  { %v8413_v44 = vmul.f32 %v5312_v23, %v3998_v45  ;;  %v4057_v35 = vsel %vm309_vm0, %v8409_v42, 0.0 }
 0xd7e   :  { %4040 = vadd.xlane.f32.xlu0 %v4039_v2  ;;  %v4060_v39 = vsel %vm309_vm0, %v8413_v44, 0.0 }
 0xd7f   :  { %4043 = vadd.xlane.f32.xlu1 %v4042_v46 }
 0xd82   :  { %4058 = vadd.xlane.f32.xlu0 %v4057_v35 }
 0xd83   :  { %4061 = vadd.xlane.f32.xlu1 %v4060_v39 }
 0xdf3   :  { %v4023_v15 = vpop.xlane.xlu0 %4022 }
 0xdf4   :  { %v4065_v9 = vmul.f32 0.03125, %v4023_v15  ;;  %v4026_v57 = vpop.xlane.xlu1 %4025 }
 0xdf5   :  { %v4066_v25 = vmul.f32 0.03125, %v4026_v57 }
 0xdf6   :  { %v8420_v18 = vsub.f32 %v8296_v59, %v4065_v9 }
 0xdf7   :  { %v8423_v6 = vsub.f32 %v8302_v8, %v4066_v25  ;;  %v4017_v27 = vpop.xlane.xlu0 %4016 }
 0xdf8   :  { %v4097_v26 = vmul.f32 %v8420_v18, %v8420_v18  ;;  %v4063_v4 = vmul.f32 0.03125, %v4017_v27  ;;  %v4020_v11 = vpop.xlane.xlu1 %4019 }
 0xdf9   :  { %v4098_v62 = vmul.f32 %v8423_v6, %v8423_v6  ;;  %v4064_v58 = vmul.f32 0.03125, %v4020_v11 }
 0xdfa   :  { %v4117_v50 = vsel %vm309_vm0, %v4097_v26, 0.0  ;;  %v8431_v1 = vsub.f32 %v8307_v38, %v4063_v4 }
 0xdfb   :  { %4118 = vadd.xlane.f32.xlu0 %v4117_v50  ;;  %v4120_v59 = vsel %vm309_vm0, %v4098_v62, 0.0  ;;  %v8435_v8 = vsub.f32 %v8311_v16, %v4064_v58  ;;  %v4053_v36 = vpop.xlane.xlu0 %4052 }
 0xdfc   :  { %4121 = vadd.xlane.f32.xlu1 %v4120_v59  ;;  %v4075_v10 = vmul.f32 0.03125, %v4053_v36  ;;  %v4056_v22 = vpop.xlane.xlu1 %4055  ;;  %v4095_v17 = vmul.f32 %v8431_v1, %v8431_v1 }
 0xdfd   :  { %v4076_v14 = vmul.f32 0.03125, %v4056_v22  ;;  %v4096_v21 = vmul.f32 %v8435_v8, %v8435_v8 }
 0xdfe   :  { %v8442_v38 = vsub.f32 %v8319_v52, %v4075_v10  ;;  %v4111_v40 = vsel %vm309_vm0, %v4095_v17, 0.0 }
 0xdff   :  { %v8446_v54 = vsub.f32 %v8326_v43, %v4076_v14  ;;  %4112 = vadd.xlane.f32.xlu0 %v4111_v40  ;;  %v4035_v16 = vpop.xlane.xlu0 %4034  ;;  %v4114_v61 = vsel %vm309_vm0, %v4096_v21, 0.0 }
 0xe00   :  { %v4069_v28 = vmul.f32 0.03125, %v4035_v16  ;;  %4115 = vadd.xlane.f32.xlu1 %v4114_v61  ;;  %v4038_v51 = vpop.xlane.xlu1 %4037  ;;  %v4107_v0 = vmul.f32 %v8442_v38, %v8442_v38 }
 0xe01   :  { %v4070_v56 = vmul.f32 0.03125, %v4038_v51  ;;  %v4108_v52 = vmul.f32 %v8446_v54, %v8446_v54 }
 0xe02   :  { %v8454_v5 = vsub.f32 %v8341_v41, %v4069_v28  ;;  %v4147_v43 = vsel %vm309_vm0, %v4107_v0, 0.0 }
 0xe03   :  { %v8458_v29 = vsub.f32 %v8347_v19, %v4070_v56  ;;  %4148 = vadd.xlane.f32.xlu0 %v4147_v43  ;;  %v4029_v30 = vpop.xlane.xlu0 %4028  ;;  %v4150_v34 = vsel %vm309_vm0, %v4108_v52, 0.0 }
 0xe04   :  { %v4067_v48 = vmul.f32 0.03125, %v4029_v30  ;;  %4151 = vadd.xlane.f32.xlu1 %v4150_v34  ;;  %v4032_v3 = vpop.xlane.xlu1 %4031  ;;  %v4101_v37 = vmul.f32 %v8454_v5, %v8454_v5 }
 0xe05   :  { %v4068_v12 = vmul.f32 0.03125, %v4032_v3  ;;  %v4102_v41 = vmul.f32 %v8458_v29, %v8458_v29 }
 0xe06   :  { %v8466_v31 = vsub.f32 %v8357_v63, %v4067_v48  ;;  %v4129_v19 = vsel %vm309_vm0, %v4101_v37, 0.0 }
 0xe07   :  { %v8470_v33 = vsub.f32 %v8370_v60, %v4068_v12  ;;  %4130 = vadd.xlane.f32.xlu0 %v4129_v19  ;;  %v4047_v47 = vpop.xlane.xlu0 %4046  ;;  %v4132_v53 = vsel %vm309_vm0, %v4102_v41, 0.0  ;;  %v3454_v12 = vld [vmem:[%s8643_s7] sm:$0x3] }
 0xe08   :  { %v4073_v49 = vmul.f32 0.03125, %v4047_v47  ;;  %4133 = vadd.xlane.f32.xlu1 %v4132_v53  ;;  %v4050_v32 = vpop.xlane.xlu1 %4049  ;;  %v4099_v55 = vmul.f32 %v8466_v31, %v8466_v31 }
 0xe09   :  { %v4074_v2 = vmul.f32 0.03125, %v4050_v32  ;;  %v4100_v63 = vmul.f32 %v8470_v33, %v8470_v33  ;;  %v8969_v32 = vld [vmem:[#allocation2_spill] sm:$0xff] }
 0xe0a   :  { %v8478_v45 = vsub.f32 %v8383_v7, %v4073_v49  ;;  %v4123_v60 = vsel %vm309_vm0, %v4099_v55, 0.0  ;;  %v8519_v55 = vrot.slane %v3454_v12, %v8969_v32 }
 0xe0b   :  { %v8482_v23 = vsub.f32 %v8391_v24, %v4074_v2  ;;  %4124 = vadd.xlane.f32.xlu0 %v4123_v60  ;;  %v4041_v46 = vpop.xlane.xlu0 %4040  ;;  %v4126_v35 = vsel %vm309_vm0, %v4100_v63, 0.0 }
 0xe0c   :  { %v4071_v39 = vmul.f32 0.03125, %v4041_v46  ;;  %4127 = vadd.xlane.f32.xlu1 %v4126_v35  ;;  %v4044_v15 = vpop.xlane.xlu1 %4043  ;;  %v4105_v9 = vmul.f32 %v8478_v45, %v8478_v45  ;;  %v8970_v35 = vld [vmem:[#allocation3_spill] sm:$0xff] }
 0xe0d   :  { %v4072_v57 = vmul.f32 0.03125, %v4044_v15  ;;  %v4106_v7 = vmul.f32 %v8482_v23, %v8482_v23 }
 0xe0e   :  { %v8490_v25 = vsub.f32 %v8399_v13, %v4071_v39  ;;  %v4141_v24 = vsel %vm309_vm0, %v4105_v9, 0.0  ;;  %v8522_v39 = vrot.slane %v3454_v12, %v8970_v35 }
 0xe0f   :  { %v8494_v27 = vsub.f32 %v8403_v20, %v4072_v57  ;;  %4142 = vadd.xlane.f32.xlu0 %v4141_v24  ;;  %v4059_v26 = vpop.xlane.xlu0 %4058  ;;  %v4144_v4 = vsel %vm309_vm0, %v4106_v7, 0.0 }
 0xe10   :  { %v4077_v11 = vmul.f32 0.03125, %v4059_v26  ;;  %4145 = vadd.xlane.f32.xlu1 %v4144_v4  ;;  %v4062_v62 = vpop.xlane.xlu1 %4061  ;;  %v4103_v58 = vmul.f32 %v8490_v25, %v8490_v25 }
 0xe11   :  { %v4078_v50 = vmul.f32 0.03125, %v4062_v62  ;;  %v4104_v13 = vmul.f32 %v8494_v27, %v8494_v27 }
 0xe12   :  { %v8502_v59 = vsub.f32 %v8409_v42, %v4077_v11  ;;  %v4135_v20 = vsel %vm309_vm0, %v4103_v58, 0.0 }
 0xe13   :  { %v8506_v36 = vsub.f32 %v8413_v44, %v4078_v50  ;;  %4136 = vadd.xlane.f32.xlu0 %v4135_v20  ;;  %v4138_v10 = vsel %vm309_vm0, %v4104_v13, 0.0 }
 0xe14   :  { %4139 = vadd.xlane.f32.xlu1 %v4138_v10  ;;  %v4109_v22 = vmul.f32 %v8502_v59, %v8502_v59 }
 0xe15   :  { %v4110_v17 = vmul.f32 %v8506_v36, %v8506_v36 }
 0xe16   :  { %v4153_v14 = vsel %vm309_vm0, %v4109_v22, 0.0 }
 0xe17   :  { %4154 = vadd.xlane.f32.xlu0 %v4153_v14  ;;  %v4156_v42 = vsel %vm309_vm0, %v4110_v17, 0.0 }
 0xe18   :  { %4157 = vadd.xlane.f32.xlu1 %v4156_v42 }
 0xe88   :  { %v4119_v21 = vpop.xlane.xlu0 %4118 }
 0xe89   :  { %v4161_v40 = vmul.f32 0.03125, %v4119_v21  ;;  %v4122_v44 = vpop.xlane.xlu1 %4121 }
 0xe8a   :  { %v4162_v16 = vmul.f32 0.03125, %v4122_v44 }
 0xe8b   :  { %v4177_v61 = vadd.f32 1e-05, %v4161_v40 }
 0xe8c   :  { %v4178_v28 = vadd.f32 1e-05, %v4162_v16  ;;  %v4113_v51 = vpop.xlane.xlu0 %4112 }
 0xe8d   :  { %5313 = vrsqrt.f32 %v4177_v61  ;;  %v4159_v0 = vmul.f32 0.03125, %v4113_v51  ;;  %v4116_v56 = vpop.xlane.xlu1 %4115 }
 0xe8e   :  { %5315 = vrsqrt.f32 %v4178_v28  ;;  %v4160_v52 = vmul.f32 0.03125, %v4116_v56 }
 0xe8f   :  { %v4175_v43 = vadd.f32 1e-05, %v4159_v0 }
 0xe90   :  { %v4176_v30 = vadd.f32 1e-05, %v4160_v52  ;;  %v4149_v34 = vpop.xlane.xlu0 %4148 }
 0xe91   :  { %5317 = vrsqrt.f32 %v4175_v43  ;;  %v4171_v48 = vmul.f32 0.03125, %v4149_v34  ;;  %v4152_v3 = vpop.xlane.xlu1 %4151 }
 0xe92   :  { %5319 = vrsqrt.f32 %v4176_v30  ;;  %v4172_v37 = vmul.f32 0.03125, %v4152_v3 }
 0xe93   :  { %v4187_v41 = vadd.f32 1e-05, %v4171_v48 }
 0xe94   :  { %v4188_v19 = vadd.f32 1e-05, %v4172_v37  ;;  %v4131_v47 = vpop.xlane.xlu0 %4130 }
 0xe95   :  { %5321 = vrsqrt.f32 %v4187_v41  ;;  %v4165_v53 = vmul.f32 0.03125, %v4131_v47  ;;  %v4134_v49 = vpop.xlane.xlu1 %4133 }
 0xe96   :  { %5323 = vrsqrt.f32 %v4188_v19  ;;  %v4166_v2 = vmul.f32 0.03125, %v4134_v49 }
 0xe97   :  { %v5314_v63 = vpop.eup %5313  ;;  %v4181_v60 = vadd.f32 1e-05, %v4165_v53 }
 0xe98   :  { %v5316_v46 = vpop.eup %5315  ;;  %v4209_v15 = vmul.f32 %v5314_v63, %v8420_v18  ;;  %v4182_v9 = vadd.f32 1e-05, %v4166_v2  ;;  %v4125_v57 = vpop.xlane.xlu0 %4124 }
 0xe99   :  { %v4210_v7 = vmul.f32 %v5316_v46, %v8423_v6  ;;  %5325 = vrsqrt.f32 %v4181_v60  ;;  %v4163_v24 = vmul.f32 0.03125, %v4125_v57  ;;  %v4128_v26 = vpop.xlane.xlu1 %4127 }
 0xe9a   :  { %v4229_v4 = vmul.f32 %v8519_v55, %v4209_v15  ;;  %5327 = vrsqrt.f32 %v4182_v9  ;;  %v4164_v11 = vmul.f32 0.03125, %v4128_v26 }
 0xe9b   :  { %v5318_v62 = vpop.eup %5317  ;;  %v4230_v58 = vmul.f32 %v8519_v55, %v4210_v7  ;;  %v4179_v50 = vadd.f32 1e-05, %v4163_v24 }
 0xe9c   :  { %v5320_v13 = vpop.eup %5319  ;;  %v4249_v20 = vadd.f32 %v8522_v39, %v4229_v4  ;;  %v4207_v18 = vmul.f32 %v5318_v62, %v8431_v1  ;;  %v4180_v10 = vadd.f32 1e-05, %v4164_v11  ;;  %v4143_v22 = vpop.xlane.xlu0 %4142 }
 0xe9d   :  { %v4250_v6 = vadd.f32 %v8522_v39, %v4230_v58  ;;  %v4208_v17 = vmul.f32 %v5320_v13, %v8435_v8  ;;  %5329 = vrsqrt.f32 %v4179_v50  ;;  %v4169_v14 = vmul.f32 0.03125, %v4143_v22  ;;  %v4146_v42 = vpop.xlane.xlu1 %4145 }
 0xe9e   :  { %4265 = vst.msk [vmem:[%s8644_s8 + $0x10] sm:$0xff] %vm309_vm0, %v4249_v20  ;;  %v4227_v21 = vmul.f32 %v8519_v55, %v4207_v18  ;;  %5331 = vrsqrt.f32 %v4180_v10  ;;  %v4170_v40 = vmul.f32 0.03125, %v4146_v42 }
 0xe9f   :  { %v5322_v44 = vpop.eup %5321  ;;  %4266 = vst.msk [vmem:[%s8644_s8 + $0x18] sm:$0xff] %vm309_vm0, %v4250_v6  ;;  %v4228_v1 = vmul.f32 %v8519_v55, %v4208_v17  ;;  %v4185_v8 = vadd.f32 1e-05, %v4169_v14 }
 0xea0   :  { %v5324_v16 = vpop.eup %5323  ;;  %v4247_v61 = vadd.f32 %v8522_v39, %v4227_v21  ;;  %v4219_v28 = vmul.f32 %v5322_v44, %v8442_v38  ;;  %v4186_v51 = vadd.f32 1e-05, %v4170_v40  ;;  %v4137_v0 = vpop.xlane.xlu0 %4136 }
 0xea1   :  { %v4248_v56 = vadd.f32 %v8522_v39, %v4228_v1  ;;  %v4220_v52 = vmul.f32 %v5324_v16, %v8446_v54  ;;  %5333 = vrsqrt.f32 %v4185_v8  ;;  %v4167_v43 = vmul.f32 0.03125, %v4137_v0  ;;  %v4140_v30 = vpop.xlane.xlu1 %4139 }
 0xea2   :  { %4263 = vst.msk [vmem:[%s8644_s8] sm:$0xff] %vm309_vm0, %v4247_v61  ;;  %v4239_v34 = vmul.f32 %v8519_v55, %v4219_v28  ;;  %5335 = vrsqrt.f32 %v4186_v51  ;;  %v4168_v48 = vmul.f32 0.03125, %v4140_v30 }
 0xea3   :  { %v5326_v3 = vpop.eup %5325  ;;  %4264 = vst.msk [vmem:[%s8644_s8 + $0x8] sm:$0xff] %vm309_vm0, %v4248_v56  ;;  %v4240_v38 = vmul.f32 %v8519_v55, %v4220_v52  ;;  %v4183_v54 = vadd.f32 1e-05, %v4167_v43 }
 0xea4   :  { %v5328_v37 = vpop.eup %5327  ;;  %v4259_v12 = vadd.f32 %v8522_v39, %v4239_v34  ;;  %v4213_v41 = vmul.f32 %v5326_v3, %v8454_v5  ;;  %v4184_v19 = vadd.f32 1e-05, %v4168_v48  ;;  %v4155_v47 = vpop.xlane.xlu0 %4154 }
 0xea5   :  { %v4260_v53 = vadd.f32 %v8522_v39, %v4240_v38  ;;  %v4214_v49 = vmul.f32 %v5328_v37, %v8458_v29  ;;  %5337 = vrsqrt.f32 %v4183_v54  ;;  %v4173_v32 = vmul.f32 0.03125, %v4155_v47  ;;  %v4158_v2 = vpop.xlane.xlu1 %4157 }
 0xea6   :  { %4275 = vst.msk [vmem:[%s8644_s8 + $0x60] sm:$0xff] %vm309_vm0, %v4259_v12  ;;  %v4233_v63 = vmul.f32 %v8519_v55, %v4213_v41  ;;  %5339 = vrsqrt.f32 %v4184_v19  ;;  %v4174_v60 = vmul.f32 0.03125, %v4158_v2 }
 0xea7   :  { %v5330_v46 = vpop.eup %5329  ;;  %4276 = vst.msk [vmem:[%s8644_s8 + $0x68] sm:$0xff] %vm309_vm0, %v4260_v53  ;;  %v4234_v5 = vmul.f32 %v8519_v55, %v4214_v49  ;;  %v4189_v29 = vadd.f32 1e-05, %v4173_v32 }
 0xea8   :  { %v5332_v35 = vpop.eup %5331  ;;  %v4253_v15 = vadd.f32 %v8522_v39, %v4233_v63  ;;  %v4211_v9 = vmul.f32 %v5330_v46, %v8466_v31  ;;  %v4190_v57 = vadd.f32 1e-05, %v4174_v60 }
 0xea9   :  { %v4254_v7 = vadd.f32 %v8522_v39, %v4234_v5  ;;  %v4212_v24 = vmul.f32 %v5332_v35, %v8470_v33  ;;  %5341 = vrsqrt.f32 %v4189_v29 }
 0xeaa   :  { %4269 = vst.msk [vmem:[%s8644_s8 + $0x30] sm:$0xff] %vm309_vm0, %v4253_v15  ;;  %v4231_v26 = vmul.f32 %v8519_v55, %v4211_v9  ;;  %5343 = vrsqrt.f32 %v4190_v57 }
 0xeab   :  { %v5334_v4 = vpop.eup %5333  ;;  %4270 = vst.msk [vmem:[%s8644_s8 + $0x38] sm:$0xff] %vm309_vm0, %v4254_v7  ;;  %v4232_v31 = vmul.f32 %v8519_v55, %v4212_v24 }
 0xeac   :  { %v5336_v11 = vpop.eup %5335  ;;  %v4251_v33 = vadd.f32 %v8522_v39, %v4231_v26  ;;  %v4217_v62 = vmul.f32 %v5334_v4, %v8478_v45 }
 0xead   :  { %v4252_v58 = vadd.f32 %v8522_v39, %v4232_v31  ;;  %v4218_v50 = vmul.f32 %v5336_v11, %v8482_v23 }
 0xeae   :  { %4267 = vst.msk [vmem:[%s8644_s8 + $0x20] sm:$0xff] %vm309_vm0, %v4251_v33  ;;  %v4237_v13 = vmul.f32 %v8519_v55, %v4217_v62 }
 0xeaf   :  { %v5338_v20 = vpop.eup %5337  ;;  %4268 = vst.msk [vmem:[%s8644_s8 + $0x28] sm:$0xff] %vm309_vm0, %v4252_v58  ;;  %v4238_v18 = vmul.f32 %v8519_v55, %v4218_v50 }
 0xeb0   :  { %v5340_v45 = vpop.eup %5339  ;;  %v4257_v10 = vadd.f32 %v8522_v39, %v4237_v13  ;;  %v4215_v23 = vmul.f32 %v5338_v20, %v8490_v25 }
 0xeb1   :  { %v4258_v22 = vadd.f32 %v8522_v39, %v4238_v18  ;;  %v4216_v6 = vmul.f32 %v5340_v45, %v8494_v27 }
 0xeb2   :  { %4273 = vst.msk [vmem:[%s8644_s8 + $0x50] sm:$0xff] %vm309_vm0, %v4257_v10  ;;  %v4235_v17 = vmul.f32 %v8519_v55, %v4215_v23 }
 0xeb3   :  { %v5342_v14 = vpop.eup %5341  ;;  %4274 = vst.msk [vmem:[%s8644_s8 + $0x58] sm:$0xff] %vm309_vm0, %v4258_v22  ;;  %v4236_v42 = vmul.f32 %v8519_v55, %v4216_v6 }
 0xeb4   :  { %v5344_v25 = vpop.eup %5343  ;;  %v4255_v21 = vadd.f32 %v8522_v39, %v4235_v17  ;;  %v4221_v27 = vmul.f32 %v5342_v14, %v8502_v59 }
 0xeb5   :  { %v4256_v40 = vadd.f32 %v8522_v39, %v4236_v42  ;;  %v4222_v44 = vmul.f32 %v5344_v25, %v8506_v36 }
 0xeb6   :  { %4271 = vst.msk [vmem:[%s8644_s8 + $0x40] sm:$0xff] %vm309_vm0, %v4255_v21  ;;  %v4241_v1 = vmul.f32 %v8519_v55, %v4221_v27 }
 0xeb7   :  { %4272 = vst.msk [vmem:[%s8644_s8 + $0x48] sm:$0xff] %vm309_vm0, %v4256_v40  ;;  %v4242_v8 = vmul.f32 %v8519_v55, %v4222_v44 }
 0xeb8   :  { %v4261_v59 = vadd.f32 %v8522_v39, %v4241_v1 }
 0xeb9   :  { %v4262_v16 = vadd.f32 %v8522_v39, %v4242_v8 }
 0xeba   :  { %4277 = vst.msk [vmem:[%s8644_s8 + $0x70] sm:$0xff] %vm309_vm0, %v4261_v59 }
 0xebb   :  { %4278 = vst.msk [vmem:[%s8644_s8 + $0x78] sm:$0xff] %vm309_vm0, %v4262_v16 }

</bundles_post_ra>
